<compile_context>
chip_gen: v6e
topology: v6e:2x2x1
jax: 0.10.0
libtpu: 0.0.40
codegen_flags: <defaults>
</compile_context>

<pallas_src>
import functools

import jax
import jax.numpy as jnp
from jax.experimental import pallas as pl
from jax.experimental.pallas import tpu as pltpu


# ---------------------------------------------------------------------------
# Pallas kernels
# ---------------------------------------------------------------------------
def _gemm_affine_kernel(a_ref, w_ref, scale_ref, shift_ref, *rest,
                        relu, has_skip):
    """Fused (im2col-patches @ weights) * bn_scale + bn_shift [+skip] [+ReLU].

    a_ref/w_ref are bf16; accumulation and epilogue are f32.
    """
    if has_skip:
        skip_ref, o_ref = rest
    else:
        (o_ref,) = rest
        skip_ref = None

    acc = jnp.dot(a_ref[...], w_ref[...], preferred_element_type=jnp.float32)
    y = acc * scale_ref[...] + shift_ref[...]
    if has_skip:
        y = y + skip_ref[...]          # fused residual add (VPU filler)
    if relu:
        y = jnp.maximum(y, 0.0)
    o_ref[...] = y.astype(o_ref.dtype)


def _corr_softargmin_kernel(l_ref, r_ref, o_ref, *, num_disp):
    """Correlation over `num_disp` horizontal shifts + soft-argmin regression.

    Shifts use pltpu.roll (XLU) + iota mask; softmax/soft-argmin is computed
    with running max / numerator / denominator so no [H,W,D] cost volume is
    materialized (avoids the narrow-last-axis layout).
    """
    l = l_ref[0]                           # [H, W, C] f32
    r = r_ref[0]                           # [H, W, C] f32
    H, W, C = l.shape
    inv_c = jnp.float32(1.0 / C)
    col = jax.lax.broadcasted_iota(jnp.int32, (H, W), 1)
    neg_big = jnp.float32(-1e30)           # mask invalid disparities (not 0!)

    costs = []
    for d in range(num_disp):              # static unrolled loop (num_disp small)
        shifted = pltpu.roll(r, shift=d, axis=1) if d > 0 else r
        c = jnp.sum(l * shifted, axis=-1) * inv_c          # [H, W]
        costs.append(jnp.where(col >= d, c, neg_big))

    # running softmax / soft-argmin over the disparity candidates
    m = costs[0]
    for c in costs[1:]:
        m = jnp.maximum(m, c)
    den = jnp.zeros_like(m)
    num = jnp.zeros_like(m)
    for d, c in enumerate(costs):
        e = jnp.exp(c - m)
        den = den + e
        num = num + jnp.float32(d) * e
    o_ref[0] = num * pl.reciprocal(den, approx=True)       # [H, W]


# ---------------------------------------------------------------------------
# Pallas wrappers
# ---------------------------------------------------------------------------
def _choose_tile_m(M):
    """Pick tm dividing M (largest of 512/256/128 with >=2 grid steps)."""
    for cand in (512, 256, 128):
        if M % cand == 0 and M // cand >= 2:
            return cand, M
    if M % 128 == 0:                       # tiny M (== 128): single tile
        return 128, M
    tm = 128                               # fallback: pad (not hit in this test)
    Mp = ((M + tm - 1) // tm) * tm
    return tm, Mp


def gemm_affine(a, w, scale, shift, skip=None, relu=True):
    """a: [M, K] patches, w: [K, N], scale/shift: [N] folded BN, skip: [M, N]."""
    M, K = a.shape
    _, N = w.shape
    tm, Mp = _choose_tile_m(M)
    if Mp != M:
        a = jnp.pad(a, ((0, Mp - M), (0, 0)))
        if skip is not None:
            skip = jnp.pad(skip, ((0, Mp - M), (0, 0)))

    a16 = a.astype(jnp.bfloat16)           # halve HBM traffic for patches
    w16 = w.astype(jnp.bfloat16)
    has_skip = skip is not None

    in_specs = [
        pl.BlockSpec((tm, K), lambda i: (i, 0)),
        pl.BlockSpec((K, N), lambda i: (0, 0)),
        pl.BlockSpec((1, N), lambda i: (0, 0)),
        pl.BlockSpec((1, N), lambda i: (0, 0)),
    ]
    args = [a16, w16, scale.reshape(1, N), shift.reshape(1, N)]
    if has_skip:
        in_specs.append(pl.BlockSpec((tm, N), lambda i: (i, 0)))
        args.append(skip.astype(jnp.float32))

    out = pl.pallas_call(
        functools.partial(_gemm_affine_kernel, relu=relu, has_skip=has_skip),
        out_shape=jax.ShapeDtypeStruct((Mp, N), jnp.float32),
        grid=(Mp // tm,),
        in_specs=in_specs,
        out_specs=pl.BlockSpec((tm, N), lambda i: (i, 0)),
        compiler_params=pltpu.CompilerParams(
            dimension_semantics=("parallel",),
            vmem_limit_bytes=32 * 1024 * 1024),
    )(*args)
    return out if Mp == M else out[:M]


def corr_softargmin(feat_both, batch, num_disp):
    """feat_both: [2B, H, W, C] (left features first, then right)."""
    _, H, W, C = feat_both.shape
    return pl.pallas_call(
        functools.partial(_corr_softargmin_kernel, num_disp=num_disp),
        out_shape=jax.ShapeDtypeStruct((batch, H, W), jnp.float32),
        grid=(batch,),
        in_specs=[
            pl.BlockSpec((1, H, W, C), lambda b: (b, 0, 0, 0)),          # left
            pl.BlockSpec((1, H, W, C), lambda b: (b + batch, 0, 0, 0)),  # right
        ],
        out_specs=pl.BlockSpec((1, H, W), lambda b: (b, 0, 0)),
        compiler_params=pltpu.CompilerParams(
            dimension_semantics=("parallel",),
            vmem_limit_bytes=32 * 1024 * 1024),
    )(feat_both, feat_both)


# ---------------------------------------------------------------------------
# Conv (im2col glue) + network definition
# ---------------------------------------------------------------------------
def conv_bn_act(x, p, stride, relu=True, skip=None):
    """x: [B,H,W,Cin] NHWC. p['w']: [kh,kw,Cin,Cout]; skip: [B,Ho,Wo,Cout]."""
    w = p["w"]
    kh, kw, cin, cout = w.shape
    pad = kh // 2
    B, H, W, _ = x.shape
    xp = jnp.pad(x, ((0, 0), (pad, pad), (pad, pad), (0, 0)))
    Ho = (H + 2 * pad - kh) // stride + 1
    Wo = (W + 2 * pad - kw) // stride + 1
    cols = []
    for i in range(kh):
        for j in range(kw):
            cols.append(xp[:, i:i + Ho * stride:stride,
                           j:j + Wo * stride:stride, :])
    patches = jnp.concatenate(cols, axis=-1).reshape(B * Ho * Wo, kh * kw * cin)
    wmat = w.reshape(kh * kw * cin, cout)
    skip_mat = skip.reshape(B * Ho * Wo, cout) if skip is not None else None
    y = gemm_affine(patches, wmat, p["scale"], p["shift"],
                    skip=skip_mat, relu=relu)
    return y.reshape(B, Ho, Wo, cout)


def _init_conv(key, kh, kw, cin, cout):
    kw_, ks, kb = jax.random.split(key, 3)
    fan_in = kh * kw * cin
    return {
        "w": jax.random.normal(kw_, (kh, kw, cin, cout), jnp.float32)
             * (2.0 / fan_in) ** 0.5,
        "scale": 1.0 + 0.1 * jax.random.normal(ks, (cout,), jnp.float32),
        "shift": 0.1 * jax.random.normal(kb, (cout,), jnp.float32),
    }


def init_params(key):
    c1, c2, b1a, b1b, b2a, b2b = jax.random.split(key, 6)
    return {
        "conv1": _init_conv(c1, 3, 3, 3, 16),
        "block1a": _init_conv(b1a, 3, 3, 16, 16),
        "block1b": _init_conv(b1b, 3, 3, 16, 16),
        "conv2": _init_conv(c2, 3, 3, 16, 32),
        "block2a": _init_conv(b2a, 3, 3, 32, 32),
        "block2b": _init_conv(b2b, 3, 3, 32, 32),
    }


def feature_extractor(params, x):
    """ResNet-34-style multi-scale feature extractor (left+right batched)."""
    h = conv_bn_act(x, params["conv1"], stride=2)                     # 1/2 res
    r = conv_bn_act(h, params["block1a"], stride=1)
    feat_half = conv_bn_act(r, params["block1b"], stride=1, skip=h)   # fused add+relu
    q = conv_bn_act(feat_half, params["conv2"], stride=2)             # 1/4 res
    r = conv_bn_act(q, params["block2a"], stride=1)
    feat_quarter = conv_bn_act(r, params["block2b"], stride=1, skip=q)
    return feat_half, feat_quarter


def disp_head(image_hw, feat_quarter_both, batch, max_disparity):
    H, W = image_hw
    num_disp = max(max_disparity // 4, 1)
    disp_q = corr_softargmin(feat_quarter_both, batch, num_disp)      # [B, H/4, W/4]
    # TODO(synk): original DispHead likely refines with image / half-res
    # features; only the correlation soft-argmin hot path is implemented.
    disp_half = 2.0 * jax.image.resize(disp_q, (batch, H // 2, W // 2), "bilinear")
    disp_full = 4.0 * jax.image.resize(disp_q, (batch, H, W), "bilinear")
    # disparity scales, finest first, NCHW-style [B, 1, h, w]
    return (disp_full[:, None], disp_half[:, None], disp_q[:, None])


def hdispnet_forward(params, img_left_nchw, img_right_nchw, *, max_disparity):
    xl = jnp.transpose(img_left_nchw, (0, 2, 3, 1))   # NCHW -> NHWC
    xr = jnp.transpose(img_right_nchw, (0, 2, 3, 1))
    B, H, W, _ = xl.shape
    # Shared-weight extractor: run left+right in a single batched pass.
    x_both = jnp.concatenate([xl, xr], axis=0)        # [2B, H, W, 3]
    _, feat_quarter_both = feature_extractor(params, x_both)
    return disp_head((H, W), feat_quarter_both, B, max_disparity)


if __name__ == "__main__":
    key = jax.random.PRNGKey(0)
    k_param, k_l, k_r = jax.random.split(key, 3)
    params = init_params(k_param)
    img_left = jax.random.normal(k_l, (2, 3, 32, 32), jnp.float32)
    img_right = jax.random.normal(k_r, (2, 3, 32, 32), jnp.float32)

    fwd = jax.jit(functools.partial(hdispnet_forward, max_disparity=16))
    disparity_scales = fwd(params, img_left, img_right)
    jax.block_until_ready(disparity_scales)

    assert disparity_scales[0].shape == (2, 1, 32, 32)
    assert disparity_scales[1].shape == (2, 1, 16, 16)
    assert disparity_scales[2].shape == (2, 1, 8, 8)
    print("KERNEL_OK")
</pallas_src>

<mosaic_0001>
module attributes {stable_mosaic.version = 11 : i64} {
  func.func @_gemm_affine_kernel(%arg0: i32, %arg1: memref<512x27xbf16, #tpu.memory_space<vmem>>, %arg2: memref<27x16xbf16, #tpu.memory_space<vmem>>, %arg3: memref<1x16xf32, #tpu.memory_space<vmem>>, %arg4: memref<1x16xf32, #tpu.memory_space<vmem>>, %arg5: memref<512x16xf32, #tpu.memory_space<vmem>>) attributes {dimension_semantics = [#tpu.dimension_semantics<parallel>], iteration_bounds = array<i64: 2>, scalar_prefetch = 0 : i64, scratch_operands = 0 : i64, tpu.core_type = #tpu.core_type<tc>, window_params = [{transform_indices = @transform_0, window_bounds = array<i64: 512, 27>}, {pipeline_mode = #tpu.pipeline_mode<synchronous>, transform_indices = @transform_1, window_bounds = array<i64: 27, 16>}, {pipeline_mode = #tpu.pipeline_mode<synchronous>, transform_indices = @transform_2, window_bounds = array<i64: 1, 16>}, {pipeline_mode = #tpu.pipeline_mode<synchronous>, transform_indices = @transform_3, window_bounds = array<i64: 1, 16>}, {transform_indices = @transform_4, window_bounds = array<i64: 512, 16>}]} {
    %c0 = arith.constant 0 : index
    %c0_0 = arith.constant 0 : index
    %0 = vector.load %arg1[%c0, %c0_0] : memref<512x27xbf16, #tpu.memory_space<vmem>>, vector<512x27xbf16>
    %c0_1 = arith.constant 0 : index
    %c0_2 = arith.constant 0 : index
    %1 = vector.load %arg2[%c0_1, %c0_2] : memref<27x16xbf16, #tpu.memory_space<vmem>>, vector<27x16xbf16>
    %cst = arith.constant dense<0.000000e+00> : vector<512x16xf32>
    %2 = tpu.matmul %0, %1, %cst {dimension_numbers = #tpu.dot_dimension_numbers<[1], [0], [0], [1], [0, 0, 1, 1], [], []>} : vector<512x27xbf16>, vector<27x16xbf16>, vector<512x16xf32> -> vector<512x16xf32>
    %c0_3 = arith.constant 0 : index
    %c0_4 = arith.constant 0 : index
    %3 = vector.load %arg3[%c0_3, %c0_4] : memref<1x16xf32, #tpu.memory_space<vmem>>, vector<1x16xf32>
    %4 = vector.broadcast %3 : vector<1x16xf32> to vector<512x16xf32>
    %5 = arith.mulf %2, %4 : vector<512x16xf32>
    %c0_5 = arith.constant 0 : index
    %c0_6 = arith.constant 0 : index
    %6 = vector.load %arg4[%c0_5, %c0_6] : memref<1x16xf32, #tpu.memory_space<vmem>>, vector<1x16xf32>
    %7 = vector.broadcast %6 : vector<1x16xf32> to vector<512x16xf32>
    %8 = arith.addf %5, %7 : vector<512x16xf32>
    %cst_7 = arith.constant 0.000000e+00 : f32
    %9 = vector.broadcast %cst_7 : f32 to vector<512x16xf32>
    %10 = arith.maximumf %8, %9 : vector<512x16xf32>
    %c0_8 = arith.constant 0 : index
    %c0_9 = arith.constant 0 : index
    %11 = vector.load %arg5[%c0_8, %c0_9] : memref<512x16xf32, #tpu.memory_space<vmem>>, vector<512x16xf32>
    tpu.vector_store %arg5[%c0_8, %c0_9], %10 {strides = array<i32>} : memref<512x16xf32, #tpu.memory_space<vmem>>, vector<512x16xf32>,
    return
  }
  func.func @transform_0(%arg0: i32) -> (i32, i32) {
    %c0_i32 = arith.constant 0 : i32
    %c0_i32_0 = arith.constant 0 : i32
    return %arg0, %c0_i32 : i32, i32
  }
  func.func @transform_1(%arg0: i32) -> (i32, i32) {
    %c0_i32 = arith.constant 0 : i32
    %c0_i32_0 = arith.constant 0 : i32
    %c0_i32_1 = arith.constant 0 : i32
    return %c0_i32, %c0_i32_0 : i32, i32
  }
  func.func @transform_2(%arg0: i32) -> (i32, i32) {
    %c0_i32 = arith.constant 0 : i32
    %c0_i32_0 = arith.constant 0 : i32
    %c0_i32_1 = arith.constant 0 : i32
    return %c0_i32, %c0_i32_0 : i32, i32
  }
  func.func @transform_3(%arg0: i32) -> (i32, i32) {
    %c0_i32 = arith.constant 0 : i32
    %c0_i32_0 = arith.constant 0 : i32
    %c0_i32_1 = arith.constant 0 : i32
    return %c0_i32, %c0_i32_0 : i32, i32
  }
  func.func @transform_4(%arg0: i32) -> (i32, i32) {
    %c0_i32 = arith.constant 0 : i32
    %c0_i32_0 = arith.constant 0 : i32
    return %arg0, %c0_i32 : i32, i32
  }
}

module attributes {stable_mosaic.version = 11 : i64} {
  func.func @_gemm_affine_kernel(%arg0: i32, %arg1: memref<512x144xbf16, #tpu.memory_space<vmem>>, %arg2: memref<144x16xbf16, #tpu.memory_space<vmem>>, %arg3: memref<1x16xf32, #tpu.memory_space<vmem>>, %arg4: memref<1x16xf32, #tpu.memory_space<vmem>>, %arg5: memref<512x16xf32, #tpu.memory_space<vmem>>) attributes {dimension_semantics = [#tpu.dimension_semantics<parallel>], iteration_bounds = array<i64: 2>, scalar_prefetch = 0 : i64, scratch_operands = 0 : i64, tpu.core_type = #tpu.core_type<tc>, window_params = [{transform_indices = @transform_0, window_bounds = array<i64: 512, 144>}, {pipeline_mode = #tpu.pipeline_mode<synchronous>, transform_indices = @transform_1, window_bounds = array<i64: 144, 16>}, {pipeline_mode = #tpu.pipeline_mode<synchronous>, transform_indices = @transform_2, window_bounds = array<i64: 1, 16>}, {pipeline_mode = #tpu.pipeline_mode<synchronous>, transform_indices = @transform_3, window_bounds = array<i64: 1, 16>}, {transform_indices = @transform_4, window_bounds = array<i64: 512, 16>}]} {
    %c0 = arith.constant 0 : index
    %c0_0 = arith.constant 0 : index
    %0 = vector.load %arg1[%c0, %c0_0] : memref<512x144xbf16, #tpu.memory_space<vmem>>, vector<512x144xbf16>
    %c0_1 = arith.constant 0 : index
    %c0_2 = arith.constant 0 : index
    %1 = vector.load %arg2[%c0_1, %c0_2] : memref<144x16xbf16, #tpu.memory_space<vmem>>, vector<144x16xbf16>
    %cst = arith.constant dense<0.000000e+00> : vector<512x16xf32>
    %2 = tpu.matmul %0, %1, %cst {dimension_numbers = #tpu.dot_dimension_numbers<[1], [0], [0], [1], [0, 0, 1, 1], [], []>} : vector<512x144xbf16>, vector<144x16xbf16>, vector<512x16xf32> -> vector<512x16xf32>
    %c0_3 = arith.constant 0 : index
    %c0_4 = arith.constant 0 : index
    %3 = vector.load %arg3[%c0_3, %c0_4] : memref<1x16xf32, #tpu.memory_space<vmem>>, vector<1x16xf32>
    %4 = vector.broadcast %3 : vector<1x16xf32> to vector<512x16xf32>
    %5 = arith.mulf %2, %4 : vector<512x16xf32>
    %c0_5 = arith.constant 0 : index
    %c0_6 = arith.constant 0 : index
    %6 = vector.load %arg4[%c0_5, %c0_6] : memref<1x16xf32, #tpu.memory_space<vmem>>, vector<1x16xf32>
    %7 = vector.broadcast %6 : vector<1x16xf32> to vector<512x16xf32>
    %8 = arith.addf %5, %7 : vector<512x16xf32>
    %cst_7 = arith.constant 0.000000e+00 : f32
    %9 = vector.broadcast %cst_7 : f32 to vector<512x16xf32>
    %10 = arith.maximumf %8, %9 : vector<512x16xf32>
    %c0_8 = arith.constant 0 : index
    %c0_9 = arith.constant 0 : index
    %11 = vector.load %arg5[%c0_8, %c0_9] : memref<512x16xf32, #tpu.memory_space<vmem>>, vector<512x16xf32>
    tpu.vector_store %arg5[%c0_8, %c0_9], %10 {strides = array<i32>} : memref<512x16xf32, #tpu.memory_space<vmem>>, vector<512x16xf32>,
    return
  }
  func.func @transform_0(%arg0: i32) -> (i32, i32) {
    %c0_i32 = arith.constant 0 : i32
    %c0_i32_0 = arith.constant 0 : i32
    return %arg0, %c0_i32 : i32, i32
  }
  func.func @transform_1(%arg0: i32) -> (i32, i32) {
    %c0_i32 = arith.constant 0 : i32
    %c0_i32_0 = arith.constant 0 : i32
    %c0_i32_1 = arith.constant 0 : i32
    return %c0_i32, %c0_i32_0 : i32, i32
  }
  func.func @transform_2(%arg0: i32) -> (i32, i32) {
    %c0_i32 = arith.constant 0 : i32
    %c0_i32_0 = arith.constant 0 : i32
    %c0_i32_1 = arith.constant 0 : i32
    return %c0_i32, %c0_i32_0 : i32, i32
  }
  func.func @transform_3(%arg0: i32) -> (i32, i32) {
    %c0_i32 = arith.constant 0 : i32
    %c0_i32_0 = arith.constant 0 : i32
    %c0_i32_1 = arith.constant 0 : i32
    return %c0_i32, %c0_i32_0 : i32, i32
  }
  func.func @transform_4(%arg0: i32) -> (i32, i32) {
    %c0_i32 = arith.constant 0 : i32
    %c0_i32_0 = arith.constant 0 : i32
    return %arg0, %c0_i32 : i32, i32
  }
}

module attributes {stable_mosaic.version = 11 : i64} {
  func.func @_gemm_affine_kernel(%arg0: i32, %arg1: memref<512x144xbf16, #tpu.memory_space<vmem>>, %arg2: memref<144x16xbf16, #tpu.memory_space<vmem>>, %arg3: memref<1x16xf32, #tpu.memory_space<vmem>>, %arg4: memref<1x16xf32, #tpu.memory_space<vmem>>, %arg5: memref<512x16xf32, #tpu.memory_space<vmem>>, %arg6: memref<512x16xf32, #tpu.memory_space<vmem>>) attributes {dimension_semantics = [#tpu.dimension_semantics<parallel>], iteration_bounds = array<i64: 2>, scalar_prefetch = 0 : i64, scratch_operands = 0 : i64, tpu.core_type = #tpu.core_type<tc>, window_params = [{transform_indices = @transform_0, window_bounds = array<i64: 512, 144>}, {pipeline_mode = #tpu.pipeline_mode<synchronous>, transform_indices = @transform_1, window_bounds = array<i64: 144, 16>}, {pipeline_mode = #tpu.pipeline_mode<synchronous>, transform_indices = @transform_2, window_bounds = array<i64: 1, 16>}, {pipeline_mode = #tpu.pipeline_mode<synchronous>, transform_indices = @transform_3, window_bounds = array<i64: 1, 16>}, {transform_indices = @transform_4, window_bounds = array<i64: 512, 16>}, {transform_indices = @transform_5, window_bounds = array<i64: 512, 16>}]} {
    %c0 = arith.constant 0 : index
    %c0_0 = arith.constant 0 : index
    %0 = vector.load %arg1[%c0, %c0_0] : memref<512x144xbf16, #tpu.memory_space<vmem>>, vector<512x144xbf16>
    %c0_1 = arith.constant 0 : index
    %c0_2 = arith.constant 0 : index
    %1 = vector.load %arg2[%c0_1, %c0_2] : memref<144x16xbf16, #tpu.memory_space<vmem>>, vector<144x16xbf16>
    %cst = arith.constant dense<0.000000e+00> : vector<512x16xf32>
    %2 = tpu.matmul %0, %1, %cst {dimension_numbers = #tpu.dot_dimension_numbers<[1], [0], [0], [1], [0, 0, 1, 1], [], []>} : vector<512x144xbf16>, vector<144x16xbf16>, vector<512x16xf32> -> vector<512x16xf32>
    %c0_3 = arith.constant 0 : index
    %c0_4 = arith.constant 0 : index
    %3 = vector.load %arg3[%c0_3, %c0_4] : memref<1x16xf32, #tpu.memory_space<vmem>>, vector<1x16xf32>
    %4 = vector.broadcast %3 : vector<1x16xf32> to vector<512x16xf32>
    %5 = arith.mulf %2, %4 : vector<512x16xf32>
    %c0_5 = arith.constant 0 : index
    %c0_6 = arith.constant 0 : index
    %6 = vector.load %arg4[%c0_5, %c0_6] : memref<1x16xf32, #tpu.memory_space<vmem>>, vector<1x16xf32>
    %7 = vector.broadcast %6 : vector<1x16xf32> to vector<512x16xf32>
    %8 = arith.addf %5, %7 : vector<512x16xf32>
    %c0_7 = arith.constant 0 : index
    %c0_8 = arith.constant 0 : index
    %9 = vector.load %arg5[%c0_7, %c0_8] : memref<512x16xf32, #tpu.memory_space<vmem>>, vector<512x16xf32>
    %10 = arith.addf %8, %9 : vector<512x16xf32>
    %cst_9 = arith.constant 0.000000e+00 : f32
    %11 = vector.broadcast %cst_9 : f32 to vector<512x16xf32>
    %12 = arith.maximumf %10, %11 : vector<512x16xf32>
    %c0_10 = arith.constant 0 : index
    %c0_11 = arith.constant 0 : index
    %13 = vector.load %arg6[%c0_10, %c0_11] : memref<512x16xf32, #tpu.memory_space<vmem>>, vector<512x16xf32>
    tpu.vector_store %arg6[%c0_10, %c0_11], %12 {strides = array<i32>} : memref<512x16xf32, #tpu.memory_space<vmem>>, vector<512x16xf32>,
    return
  }
  func.func @transform_0(%arg0: i32) -> (i32, i32) {
    %c0_i32 = arith.constant 0 : i32
    %c0_i32_0 = arith.constant 0 : i32
    return %arg0, %c0_i32 : i32, i32
  }
  func.func @transform_1(%arg0: i32) -> (i32, i32) {
    %c0_i32 = arith.constant 0 : i32
    %c0_i32_0 = arith.constant 0 : i32
    %c0_i32_1 = arith.constant 0 : i32
    return %c0_i32, %c0_i32_0 : i32, i32
  }
  func.func @transform_2(%arg0: i32) -> (i32, i32) {
    %c0_i32 = arith.constant 0 : i32
    %c0_i32_0 = arith.constant 0 : i32
    %c0_i32_1 = arith.constant 0 : i32
    return %c0_i32, %c0_i32_0 : i32, i32
  }
  func.func @transform_3(%arg0: i32) -> (i32, i32) {
    %c0_i32 = arith.constant 0 : i32
    %c0_i32_0 = arith.constant 0 : i32
    %c0_i32_1 = arith.constant 0 : i32
    return %c0_i32, %c0_i32_0 : i32, i32
  }
  func.func @transform_4(%arg0: i32) -> (i32, i32) {
    %c0_i32 = arith.constant 0 : i32
    %c0_i32_0 = arith.constant 0 : i32
    return %arg0, %c0_i32 : i32, i32
  }
  func.func @transform_5(%arg0: i32) -> (i32, i32) {
    %c0_i32 = arith.constant 0 : i32
    %c0_i32_0 = arith.constant 0 : i32
    return %arg0, %c0_i32 : i32, i32
  }
}

module attributes {stable_mosaic.version = 11 : i64} {
  func.func @_gemm_affine_kernel(%arg0: i32, %arg1: memref<128x144xbf16, #tpu.memory_space<vmem>>, %arg2: memref<144x32xbf16, #tpu.memory_space<vmem>>, %arg3: memref<1x32xf32, #tpu.memory_space<vmem>>, %arg4: memref<1x32xf32, #tpu.memory_space<vmem>>, %arg5: memref<128x32xf32, #tpu.memory_space<vmem>>) attributes {dimension_semantics = [#tpu.dimension_semantics<parallel>], iteration_bounds = array<i64: 2>, scalar_prefetch = 0 : i64, scratch_operands = 0 : i64, tpu.core_type = #tpu.core_type<tc>, window_params = [{transform_indices = @transform_0, window_bounds = array<i64: 128, 144>}, {pipeline_mode = #tpu.pipeline_mode<synchronous>, transform_indices = @transform_1, window_bounds = array<i64: 144, 32>}, {pipeline_mode = #tpu.pipeline_mode<synchronous>, transform_indices = @transform_2, window_bounds = array<i64: 1, 32>}, {pipeline_mode = #tpu.pipeline_mode<synchronous>, transform_indices = @transform_3, window_bounds = array<i64: 1, 32>}, {transform_indices = @transform_4, window_bounds = array<i64: 128, 32>}]} {
    %c0 = arith.constant 0 : index
    %c0_0 = arith.constant 0 : index
    %0 = vector.load %arg1[%c0, %c0_0] : memref<128x144xbf16, #tpu.memory_space<vmem>>, vector<128x144xbf16>
    %c0_1 = arith.constant 0 : index
    %c0_2 = arith.constant 0 : index
    %1 = vector.load %arg2[%c0_1, %c0_2] : memref<144x32xbf16, #tpu.memory_space<vmem>>, vector<144x32xbf16>
    %cst = arith.constant dense<0.000000e+00> : vector<128x32xf32>
    %2 = tpu.matmul %0, %1, %cst {dimension_numbers = #tpu.dot_dimension_numbers<[1], [0], [0], [1], [0, 0, 1, 1], [], []>} : vector<128x144xbf16>, vector<144x32xbf16>, vector<128x32xf32> -> vector<128x32xf32>
    %c0_3 = arith.constant 0 : index
    %c0_4 = arith.constant 0 : index
    %3 = vector.load %arg3[%c0_3, %c0_4] : memref<1x32xf32, #tpu.memory_space<vmem>>, vector<1x32xf32>
    %4 = vector.broadcast %3 : vector<1x32xf32> to vector<128x32xf32>
    %5 = arith.mulf %2, %4 : vector<128x32xf32>
    %c0_5 = arith.constant 0 : index
    %c0_6 = arith.constant 0 : index
    %6 = vector.load %arg4[%c0_5, %c0_6] : memref<1x32xf32, #tpu.memory_space<vmem>>, vector<1x32xf32>
    %7 = vector.broadcast %6 : vector<1x32xf32> to vector<128x32xf32>
    %8 = arith.addf %5, %7 : vector<128x32xf32>
    %cst_7 = arith.constant 0.000000e+00 : f32
    %9 = vector.broadcast %cst_7 : f32 to vector<128x32xf32>
    %10 = arith.maximumf %8, %9 : vector<128x32xf32>
    %c0_8 = arith.constant 0 : index
    %c0_9 = arith.constant 0 : index
    %11 = vector.load %arg5[%c0_8, %c0_9] : memref<128x32xf32, #tpu.memory_space<vmem>>, vector<128x32xf32>
    tpu.vector_store %arg5[%c0_8, %c0_9], %10 {strides = array<i32>} : memref<128x32xf32, #tpu.memory_space<vmem>>, vector<128x32xf32>,
    return
  }
  func.func @transform_0(%arg0: i32) -> (i32, i32) {
    %c0_i32 = arith.constant 0 : i32
    %c0_i32_0 = arith.constant 0 : i32
    return %arg0, %c0_i32 : i32, i32
  }
  func.func @transform_1(%arg0: i32) -> (i32, i32) {
    %c0_i32 = arith.constant 0 : i32
    %c0_i32_0 = arith.constant 0 : i32
    %c0_i32_1 = arith.constant 0 : i32
    return %c0_i32, %c0_i32_0 : i32, i32
  }
  func.func @transform_2(%arg0: i32) -> (i32, i32) {
    %c0_i32 = arith.constant 0 : i32
    %c0_i32_0 = arith.constant 0 : i32
    %c0_i32_1 = arith.constant 0 : i32
    return %c0_i32, %c0_i32_0 : i32, i32
  }
  func.func @transform_3(%arg0: i32) -> (i32, i32) {
    %c0_i32 = arith.constant 0 : i32
    %c0_i32_0 = arith.constant 0 : i32
    %c0_i32_1 = arith.constant 0 : i32
    return %c0_i32, %c0_i32_0 : i32, i32
  }
  func.func @transform_4(%arg0: i32) -> (i32, i32) {
    %c0_i32 = arith.constant 0 : i32
    %c0_i32_0 = arith.constant 0 : i32
    return %arg0, %c0_i32 : i32, i32
  }
}

module attributes {stable_mosaic.version = 11 : i64} {
  func.func @_gemm_affine_kernel(%arg0: i32, %arg1: memref<128x288xbf16, #tpu.memory_space<vmem>>, %arg2: memref<288x32xbf16, #tpu.memory_space<vmem>>, %arg3: memref<1x32xf32, #tpu.memory_space<vmem>>, %arg4: memref<1x32xf32, #tpu.memory_space<vmem>>, %arg5: memref<128x32xf32, #tpu.memory_space<vmem>>) attributes {dimension_semantics = [#tpu.dimension_semantics<parallel>], iteration_bounds = array<i64: 2>, scalar_prefetch = 0 : i64, scratch_operands = 0 : i64, tpu.core_type = #tpu.core_type<tc>, window_params = [{transform_indices = @transform_0, window_bounds = array<i64: 128, 288>}, {pipeline_mode = #tpu.pipeline_mode<synchronous>, transform_indices = @transform_1, window_bounds = array<i64: 288, 32>}, {pipeline_mode = #tpu.pipeline_mode<synchronous>, transform_indices = @transform_2, window_bounds = array<i64: 1, 32>}, {pipeline_mode = #tpu.pipeline_mode<synchronous>, transform_indices = @transform_3, window_bounds = array<i64: 1, 32>}, {transform_indices = @transform_4, window_bounds = array<i64: 128, 32>}]} {
    %c0 = arith.constant 0 : index
    %c0_0 = arith.constant 0 : index
    %0 = vector.load %arg1[%c0, %c0_0] : memref<128x288xbf16, #tpu.memory_space<vmem>>, vector<128x288xbf16>
    %c0_1 = arith.constant 0 : index
    %c0_2 = arith.constant 0 : index
    %1 = vector.load %arg2[%c0_1, %c0_2] : memref<288x32xbf16, #tpu.memory_space<vmem>>, vector<288x32xbf16>
    %cst = arith.constant dense<0.000000e+00> : vector<128x32xf32>
    %2 = tpu.matmul %0, %1, %cst {dimension_numbers = #tpu.dot_dimension_numbers<[1], [0], [0], [1], [0, 0, 1, 1], [], []>} : vector<128x288xbf16>, vector<288x32xbf16>, vector<128x32xf32> -> vector<128x32xf32>
    %c0_3 = arith.constant 0 : index
    %c0_4 = arith.constant 0 : index
    %3 = vector.load %arg3[%c0_3, %c0_4] : memref<1x32xf32, #tpu.memory_space<vmem>>, vector<1x32xf32>
    %4 = vector.broadcast %3 : vector<1x32xf32> to vector<128x32xf32>
    %5 = arith.mulf %2, %4 : vector<128x32xf32>
    %c0_5 = arith.constant 0 : index
    %c0_6 = arith.constant 0 : index
    %6 = vector.load %arg4[%c0_5, %c0_6] : memref<1x32xf32, #tpu.memory_space<vmem>>, vector<1x32xf32>
    %7 = vector.broadcast %6 : vector<1x32xf32> to vector<128x32xf32>
    %8 = arith.addf %5, %7 : vector<128x32xf32>
    %cst_7 = arith.constant 0.000000e+00 : f32
    %9 = vector.broadcast %cst_7 : f32 to vector<128x32xf32>
    %10 = arith.maximumf %8, %9 : vector<128x32xf32>
    %c0_8 = arith.constant 0 : index
    %c0_9 = arith.constant 0 : index
    %11 = vector.load %arg5[%c0_8, %c0_9] : memref<128x32xf32, #tpu.memory_space<vmem>>, vector<128x32xf32>
    tpu.vector_store %arg5[%c0_8, %c0_9], %10 {strides = array<i32>} : memref<128x32xf32, #tpu.memory_space<vmem>>, vector<128x32xf32>,
    return
  }
  func.func @transform_0(%arg0: i32) -> (i32, i32) {
    %c0_i32 = arith.constant 0 : i32
    %c0_i32_0 = arith.constant 0 : i32
    return %arg0, %c0_i32 : i32, i32
  }
  func.func @transform_1(%arg0: i32) -> (i32, i32) {
    %c0_i32 = arith.constant 0 : i32
    %c0_i32_0 = arith.constant 0 : i32
    %c0_i32_1 = arith.constant 0 : i32
    return %c0_i32, %c0_i32_0 : i32, i32
  }
  func.func @transform_2(%arg0: i32) -> (i32, i32) {
    %c0_i32 = arith.constant 0 : i32
    %c0_i32_0 = arith.constant 0 : i32
    %c0_i32_1 = arith.constant 0 : i32
    return %c0_i32, %c0_i32_0 : i32, i32
  }
  func.func @transform_3(%arg0: i32) -> (i32, i32) {
    %c0_i32 = arith.constant 0 : i32
    %c0_i32_0 = arith.constant 0 : i32
    %c0_i32_1 = arith.constant 0 : i32
    return %c0_i32, %c0_i32_0 : i32, i32
  }
  func.func @transform_4(%arg0: i32) -> (i32, i32) {
    %c0_i32 = arith.constant 0 : i32
    %c0_i32_0 = arith.constant 0 : i32
    return %arg0, %c0_i32 : i32, i32
  }
}

module attributes {stable_mosaic.version = 11 : i64} {
  func.func @_gemm_affine_kernel(%arg0: i32, %arg1: memref<128x288xbf16, #tpu.memory_space<vmem>>, %arg2: memref<288x32xbf16, #tpu.memory_space<vmem>>, %arg3: memref<1x32xf32, #tpu.memory_space<vmem>>, %arg4: memref<1x32xf32, #tpu.memory_space<vmem>>, %arg5: memref<128x32xf32, #tpu.memory_space<vmem>>, %arg6: memref<128x32xf32, #tpu.memory_space<vmem>>) attributes {dimension_semantics = [#tpu.dimension_semantics<parallel>], iteration_bounds = array<i64: 2>, scalar_prefetch = 0 : i64, scratch_operands = 0 : i64, tpu.core_type = #tpu.core_type<tc>, window_params = [{transform_indices = @transform_0, window_bounds = array<i64: 128, 288>}, {pipeline_mode = #tpu.pipeline_mode<synchronous>, transform_indices = @transform_1, window_bounds = array<i64: 288, 32>}, {pipeline_mode = #tpu.pipeline_mode<synchronous>, transform_indices = @transform_2, window_bounds = array<i64: 1, 32>}, {pipeline_mode = #tpu.pipeline_mode<synchronous>, transform_indices = @transform_3, window_bounds = array<i64: 1, 32>}, {transform_indices = @transform_4, window_bounds = array<i64: 128, 32>}, {transform_indices = @transform_5, window_bounds = array<i64: 128, 32>}]} {
    %c0 = arith.constant 0 : index
    %c0_0 = arith.constant 0 : index
    %0 = vector.load %arg1[%c0, %c0_0] : memref<128x288xbf16, #tpu.memory_space<vmem>>, vector<128x288xbf16>
    %c0_1 = arith.constant 0 : index
    %c0_2 = arith.constant 0 : index
    %1 = vector.load %arg2[%c0_1, %c0_2] : memref<288x32xbf16, #tpu.memory_space<vmem>>, vector<288x32xbf16>
    %cst = arith.constant dense<0.000000e+00> : vector<128x32xf32>
    %2 = tpu.matmul %0, %1, %cst {dimension_numbers = #tpu.dot_dimension_numbers<[1], [0], [0], [1], [0, 0, 1, 1], [], []>} : vector<128x288xbf16>, vector<288x32xbf16>, vector<128x32xf32> -> vector<128x32xf32>
    %c0_3 = arith.constant 0 : index
    %c0_4 = arith.constant 0 : index
    %3 = vector.load %arg3[%c0_3, %c0_4] : memref<1x32xf32, #tpu.memory_space<vmem>>, vector<1x32xf32>
    %4 = vector.broadcast %3 : vector<1x32xf32> to vector<128x32xf32>
    %5 = arith.mulf %2, %4 : vector<128x32xf32>
    %c0_5 = arith.constant 0 : index
    %c0_6 = arith.constant 0 : index
    %6 = vector.load %arg4[%c0_5, %c0_6] : memref<1x32xf32, #tpu.memory_space<vmem>>, vector<1x32xf32>
    %7 = vector.broadcast %6 : vector<1x32xf32> to vector<128x32xf32>
    %8 = arith.addf %5, %7 : vector<128x32xf32>
    %c0_7 = arith.constant 0 : index
    %c0_8 = arith.constant 0 : index
    %9 = vector.load %arg5[%c0_7, %c0_8] : memref<128x32xf32, #tpu.memory_space<vmem>>, vector<128x32xf32>
    %10 = arith.addf %8, %9 : vector<128x32xf32>
    %cst_9 = arith.constant 0.000000e+00 : f32
    %11 = vector.broadcast %cst_9 : f32 to vector<128x32xf32>
    %12 = arith.maximumf %10, %11 : vector<128x32xf32>
    %c0_10 = arith.constant 0 : index
    %c0_11 = arith.constant 0 : index
    %13 = vector.load %arg6[%c0_10, %c0_11] : memref<128x32xf32, #tpu.memory_space<vmem>>, vector<128x32xf32>
    tpu.vector_store %arg6[%c0_10, %c0_11], %12 {strides = array<i32>} : memref<128x32xf32, #tpu.memory_space<vmem>>, vector<128x32xf32>,
    return
  }
  func.func @transform_0(%arg0: i32) -> (i32, i32) {
    %c0_i32 = arith.constant 0 : i32
    %c0_i32_0 = arith.constant 0 : i32
    return %arg0, %c0_i32 : i32, i32
  }
  func.func @transform_1(%arg0: i32) -> (i32, i32) {
    %c0_i32 = arith.constant 0 : i32
    %c0_i32_0 = arith.constant 0 : i32
    %c0_i32_1 = arith.constant 0 : i32
    return %c0_i32, %c0_i32_0 : i32, i32
  }
  func.func @transform_2(%arg0: i32) -> (i32, i32) {
    %c0_i32 = arith.constant 0 : i32
    %c0_i32_0 = arith.constant 0 : i32
    %c0_i32_1 = arith.constant 0 : i32
    return %c0_i32, %c0_i32_0 : i32, i32
  }
  func.func @transform_3(%arg0: i32) -> (i32, i32) {
    %c0_i32 = arith.constant 0 : i32
    %c0_i32_0 = arith.constant 0 : i32
    %c0_i32_1 = arith.constant 0 : i32
    return %c0_i32, %c0_i32_0 : i32, i32
  }
  func.func @transform_4(%arg0: i32) -> (i32, i32) {
    %c0_i32 = arith.constant 0 : i32
    %c0_i32_0 = arith.constant 0 : i32
    return %arg0, %c0_i32 : i32, i32
  }
  func.func @transform_5(%arg0: i32) -> (i32, i32) {
    %c0_i32 = arith.constant 0 : i32
    %c0_i32_0 = arith.constant 0 : i32
    return %arg0, %c0_i32 : i32, i32
  }
}

module attributes {stable_mosaic.version = 11 : i64} {
  func.func @_corr_softargmin_kernel(%arg0: i32, %arg1: memref<1x8x8x32xf32, #tpu.memory_space<vmem>>, %arg2: memref<1x8x8x32xf32, #tpu.memory_space<vmem>>, %arg3: memref<1x8x8xf32, #tpu.memory_space<vmem>>) attributes {dimension_semantics = [#tpu.dimension_semantics<parallel>], iteration_bounds = array<i64: 2>, scalar_prefetch = 0 : i64, scratch_operands = 0 : i64, tpu.core_type = #tpu.core_type<tc>, window_params = [{transform_indices = @transform_0, window_bounds = array<i64: 1, 8, 8, 32>}, {transform_indices = @transform_1, window_bounds = array<i64: 1, 8, 8, 32>}, {transform_indices = @transform_2, window_bounds = array<i64: 1, 8, 8>}]} {
    %c0 = arith.constant 0 : index
    %c0_0 = arith.constant 0 : index
    %c0_1 = arith.constant 0 : index
    %c0_2 = arith.constant 0 : index
    %0 = vector.load %arg1[%c0, %c0_0, %c0_1, %c0_2] : memref<1x8x8x32xf32, #tpu.memory_space<vmem>>, vector<1x8x8x32xf32>
    %1 = vector.shape_cast %0 : vector<1x8x8x32xf32> to vector<8x8x32xf32>
    %c0_3 = arith.constant 0 : index
    %c0_4 = arith.constant 0 : index
    %c0_5 = arith.constant 0 : index
    %c0_6 = arith.constant 0 : index
    %2 = vector.load %arg2[%c0_3, %c0_4, %c0_5, %c0_6] : memref<1x8x8x32xf32, #tpu.memory_space<vmem>>, vector<1x8x8x32xf32>
    %3 = vector.shape_cast %2 : vector<1x8x8x32xf32> to vector<8x8x32xf32>
    %4 = tpu.iota {dimensions = array<i32: 1>} : vector<8x8xi32>
    %5 = arith.mulf %1, %3 : vector<8x8x32xf32>
    %cst = arith.constant dense<0.000000e+00> : vector<8x8xf32>
    %6 = vector.multi_reduction <add>, %5, %cst [2] : vector<8x8x32xf32> to vector<8x8xf32>
    %cst_7 = arith.constant 3.125000e-02 : f32
    %7 = vector.broadcast %cst_7 : f32 to vector<8x8xf32>
    %8 = arith.mulf %6, %7 : vector<8x8xf32>
    %c0_i32 = arith.constant 0 : i32
    %9 = vector.broadcast %c0_i32 : i32 to vector<8x8xi32>
    %10 = arith.cmpi sge, %4, %9 : vector<8x8xi32>
    %cst_8 = arith.constant -1.000000e+30 : f32
    %11 = vector.broadcast %cst_8 : f32 to vector<8x8xf32>
    %12 = arith.select %10, %8, %11 : vector<8x8xi1>, vector<8x8xf32>
    %c1_i32 = arith.constant 1 : i32
    %13 = tpu.dynamic_rotate %3 by %c1_i32 dim 1 : vector<8x8x32xf32>, i32 -> vector<8x8x32xf32>
    %14 = arith.mulf %1, %13 : vector<8x8x32xf32>
    %cst_9 = arith.constant dense<0.000000e+00> : vector<8x8xf32>
    %15 = vector.multi_reduction <add>, %14, %cst_9 [2] : vector<8x8x32xf32> to vector<8x8xf32>
    %cst_10 = arith.constant 3.125000e-02 : f32
    %16 = vector.broadcast %cst_10 : f32 to vector<8x8xf32>
    %17 = arith.mulf %15, %16 : vector<8x8xf32>
    %c1_i32_11 = arith.constant 1 : i32
    %18 = vector.broadcast %c1_i32_11 : i32 to vector<8x8xi32>
    %19 = arith.cmpi sge, %4, %18 : vector<8x8xi32>
    %cst_12 = arith.constant -1.000000e+30 : f32
    %20 = vector.broadcast %cst_12 : f32 to vector<8x8xf32>
    %21 = arith.select %19, %17, %20 : vector<8x8xi1>, vector<8x8xf32>
    %c2_i32 = arith.constant 2 : i32
    %22 = tpu.dynamic_rotate %3 by %c2_i32 dim 1 : vector<8x8x32xf32>, i32 -> vector<8x8x32xf32>
    %23 = arith.mulf %1, %22 : vector<8x8x32xf32>
    %cst_13 = arith.constant dense<0.000000e+00> : vector<8x8xf32>
    %24 = vector.multi_reduction <add>, %23, %cst_13 [2] : vector<8x8x32xf32> to vector<8x8xf32>
    %cst_14 = arith.constant 3.125000e-02 : f32
    %25 = vector.broadcast %cst_14 : f32 to vector<8x8xf32>
    %26 = arith.mulf %24, %25 : vector<8x8xf32>
    %c2_i32_15 = arith.constant 2 : i32
    %27 = vector.broadcast %c2_i32_15 : i32 to vector<8x8xi32>
    %28 = arith.cmpi sge, %4, %27 : vector<8x8xi32>
    %cst_16 = arith.constant -1.000000e+30 : f32
    %29 = vector.broadcast %cst_16 : f32 to vector<8x8xf32>
    %30 = arith.select %28, %26, %29 : vector<8x8xi1>, vector<8x8xf32>
    %c3_i32 = arith.constant 3 : i32
    %31 = tpu.dynamic_rotate %3 by %c3_i32 dim 1 : vector<8x8x32xf32>, i32 -> vector<8x8x32xf32>
    %32 = arith.mulf %1, %31 : vector<8x8x32xf32>
    %cst_17 = arith.constant dense<0.000000e+00> : vector<8x8xf32>
    %33 = vector.multi_reduction <add>, %32, %cst_17 [2] : vector<8x8x32xf32> to vector<8x8xf32>
    %cst_18 = arith.constant 3.125000e-02 : f32
    %34 = vector.broadcast %cst_18 : f32 to vector<8x8xf32>
    %35 = arith.mulf %33, %34 : vector<8x8xf32>
    %c3_i32_19 = arith.constant 3 : i32
    %36 = vector.broadcast %c3_i32_19 : i32 to vector<8x8xi32>
    %37 = arith.cmpi sge, %4, %36 : vector<8x8xi32>
    %cst_20 = arith.constant -1.000000e+30 : f32
    %38 = vector.broadcast %cst_20 : f32 to vector<8x8xf32>
    %39 = arith.select %37, %35, %38 : vector<8x8xi1>, vector<8x8xf32>
    %40 = arith.maximumf %12, %21 : vector<8x8xf32>
    %41 = arith.maximumf %40, %30 : vector<8x8xf32>
    %42 = arith.maximumf %41, %39 : vector<8x8xf32>
    %cst_21 = arith.constant 0.000000e+00 : f32
    %43 = vector.broadcast %cst_21 : f32 to vector<8x8xf32>
    %cst_22 = arith.constant 0.000000e+00 : f32
    %44 = vector.broadcast %cst_22 : f32 to vector<8x8xf32>
    %45 = arith.subf %12, %42 : vector<8x8xf32>
    %46 = math.exp %45 : vector<8x8xf32>
    %47 = arith.addf %43, %46 : vector<8x8xf32>
    %cst_23 = arith.constant 0.000000e+00 : f32
    %48 = vector.broadcast %cst_23 : f32 to vector<8x8xf32>
    %49 = arith.mulf %48, %46 : vector<8x8xf32>
    %50 = arith.addf %44, %49 : vector<8x8xf32>
    %51 = arith.subf %21, %42 : vector<8x8xf32>
    %52 = math.exp %51 : vector<8x8xf32>
    %53 = arith.addf %47, %52 : vector<8x8xf32>
    %cst_24 = arith.constant 1.000000e+00 : f32
    %54 = vector.broadcast %cst_24 : f32 to vector<8x8xf32>
    %55 = arith.mulf %54, %52 : vector<8x8xf32>
    %56 = arith.addf %50, %55 : vector<8x8xf32>
    %57 = arith.subf %30, %42 : vector<8x8xf32>
    %58 = math.exp %57 : vector<8x8xf32>
    %59 = arith.addf %53, %58 : vector<8x8xf32>
    %cst_25 = arith.constant 2.000000e+00 : f32
    %60 = vector.broadcast %cst_25 : f32 to vector<8x8xf32>
    %61 = arith.mulf %60, %58 : vector<8x8xf32>
    %62 = arith.addf %56, %61 : vector<8x8xf32>
    %63 = arith.subf %39, %42 : vector<8x8xf32>
    %64 = math.exp %63 : vector<8x8xf32>
    %65 = arith.addf %59, %64 : vector<8x8xf32>
    %cst_26 = arith.constant 3.000000e+00 : f32
    %66 = vector.broadcast %cst_26 : f32 to vector<8x8xf32>
    %67 = arith.mulf %66, %64 : vector<8x8xf32>
    %68 = arith.addf %62, %67 : vector<8x8xf32>
    %69 = tpu.reciprocal %65 {approx = true} : vector<8x8xf32> -> vector<8x8xf32>
    %70 = arith.mulf %68, %69 : vector<8x8xf32>
    %c0_27 = arith.constant 0 : index
    %c0_28 = arith.constant 0 : index
    %c0_29 = arith.constant 0 : index
    %71 = vector.load %arg3[%c0_27, %c0_28, %c0_29] : memref<1x8x8xf32, #tpu.memory_space<vmem>>, vector<1x8x8xf32>
    %72 = vector.shape_cast %71 : vector<1x8x8xf32> to vector<8x8xf32>
    %73 = vector.shape_cast %70 : vector<8x8xf32> to vector<1x8x8xf32>
    tpu.vector_store %arg3[%c0_27, %c0_28, %c0_29], %73 {strides = array<i32>} : memref<1x8x8xf32, #tpu.memory_space<vmem>>, vector<1x8x8xf32>,
    return
  }
  func.func @transform_0(%arg0: i32) -> (i32, i32, i32, i32) {
    %c0_i32 = arith.constant 0 : i32
    %c0_i32_0 = arith.constant 0 : i32
    %c0_i32_1 = arith.constant 0 : i32
    %c0_i32_2 = arith.constant 0 : i32
    return %arg0, %c0_i32, %c0_i32_0, %c0_i32_1 : i32, i32, i32, i32
  }
  func.func @transform_1(%arg0: i32) -> (i32, i32, i32, i32) {
    %c2_i32 = arith.constant 2 : i32
    %0 = arith.addi %arg0, %c2_i32 : i32
    %c0_i32 = arith.constant 0 : i32
    %c0_i32_0 = arith.constant 0 : i32
    %c0_i32_1 = arith.constant 0 : i32
    %c0_i32_2 = arith.constant 0 : i32
    return %0, %c0_i32, %c0_i32_0, %c0_i32_1 : i32, i32, i32, i32
  }
  func.func @transform_2(%arg0: i32) -> (i32, i32, i32) {
    %c0_i32 = arith.constant 0 : i32
    %c0_i32_0 = arith.constant 0 : i32
    %c0_i32_1 = arith.constant 0 : i32
    return %arg0, %c0_i32, %c0_i32_0 : i32, i32, i32
  }
}

</mosaic_0001>

<bundles_post_ra>
// kernel: hdispnet_forward.7
= control target key start
LH: loop header
LB: loop body
LE: loop exit
PB: predicated region body
PF: predicated region fallthrough
CT: control target
= control target key end

     0   :  { %s1423_s15 = smov 0   ;;  %s1784_s0 = inlined_call_operand.vmem [shape: bf16[1024,27], index: 0, kind: input, shape index: {}]   ;;  %s1785_s1 = inlined_call_operand.vmem [shape: bf16[27,16], index: 1, kind: input, shape index: {}]   ;;  %s1786_s2 = inlined_call_operand.vmem [shape: f32[1,16], index: 2, kind: input, shape index: {}]   ;;  %s1787_s3 = inlined_call_operand.vmem [shape: f32[1,16], index: 3, kind: input, shape index: {}]   ;;  %s1788_s4 = inlined_call_operand.vmem [shape: f32[1024,16], index: 4, kind: output, shape index: {}]  }
   0x1 LB: > { %s1161_s16 = sadd.s32 4294967295, %s1395_s15   ;;  %p1165_p0 = scmp.ge.s32.totalorder %s1395_s15, 1  ;;  %s1395_s15 = sphi %s1423_s15, %s14_s15  }
   0x2   : > { %p163_p1 = scmp.lt.s32.totalorder %s1395_s15, 3 }
   0x4   : > { %p164_p2 = pnand %p1165_p0, %p163_p1 }
   0x5   : > { %s1166_s19 = sshll.u32 (!%p164_p2), %s1161_s16, 6 }
   0x6   : > { %167 = sbr.rel (%p164_p2) target bundleno = 286 (0x11e), region = 36  ;;  %p190_p3 = scmp.lt.s32.totalorder (!%p164_p2), %s1166_s19, 127 }
   0xb   : > { %v1355_v0 = vld [vmem:[%s1785_s1 + $0x8] sm:$0x3f]   ;;  %vm538_vm0 = vcmask 1044480   ;;  %vm539_vm1 = vcmask 1045504   ;;  %v1397_v1 = vmov 65535   ;;  %v1356_v5 = vld [vmem:[%s1785_s1] sm:$0xff]  }
   0xc   : > { %v540_v2 = vsel %vm538_vm0, 4294967295, %v1397_v1  ;;  %s1790_s19 = smov (!%p190_p3, %s1166_s19), 127  ;;  %vm441_vm2 = vcmask 220160   ;;  %v1512_v38 = vld [vmem:[%s1786_s2] ss:$0 sm:$0xff]  ;;  %vm1040_vm3 = vcmask 130048  }
   0xd   : > { %v541_v3 = vsel %vm539_vm1, %v540_v2, 0  ;;  %s1167_s22 = sshll.u32 %s1790_s19, 2  ;;  %v1517_v40 = vld [vmem:[%s1787_s3] ss:$0 sm:$0xff]  ;;  %s1169_s30 = sshll.u32 %s1790_s19, 3 }
   0xe   : > { %v543_v4 = vand.u32 %v1355_v0, %v541_v3  ;;  %s1443_s25 = scalar_lea.vmem %s1784_s0, %s1167_s22  ;;  %s1529_s7 = scalar_lea.vmem %s1788_s4, %s1169_s30 }
   0xf   : > { %v1357_v6 = vld [vmem:[%s1443_s25] sm:$0xff]   ;;  %v1359_v8 = vld [vmem:[%s1443_s25 + $0x8] sm:$0xff]   ;;  %v1361_v10 = vld [vmem:[%s1443_s25 + $0x10] sm:$0xff]  }
  0x10   : > { %1274 = vmatprep.subr.bf16.mxu0 %v543_v4  ;;  %1342 = vmatprep.subr.bf16.mxu1 %v543_v4  ;;  %v1358_v7 = vld [vmem:[%s1443_s25 + $0x80] sm:$0xff]   ;;  %v1360_v9 = vld [vmem:[%s1443_s25 + $0x88] sm:$0xff]   ;;  %v1362_v11 = vld [vmem:[%s1443_s25 + $0x90] sm:$0xff]  }
  0x11   : > { %1275 = vmatpush3.bf16.msra.mxu0 %v543_v4  ;;  %1344 = vmatpush3.bf16.msra.mxu1 %v543_v4  ;;  %v1363_v12 = vld [vmem:[%s1443_s25 + $0x18] sm:$0xff]   ;;  %v1365_v14 = vld [vmem:[%s1443_s25 + $0x20] sm:$0xff]   ;;  %v1367_v16 = vld [vmem:[%s1443_s25 + $0x28] sm:$0xff]  }
  0x12   : > { %1276 = vmatprep.subr.bf16.mxu0 %v1356_v5  ;;  %1343 = vmatprep.subr.bf16.mxu1 %v1356_v5  ;;  %v1364_v13 = vld [vmem:[%s1443_s25 + $0x98] sm:$0xff]   ;;  %v1366_v15 = vld [vmem:[%s1443_s25 + $0xa0] sm:$0xff]   ;;  %v1368_v17 = vld [vmem:[%s1443_s25 + $0xa8] sm:$0xff]  }
  0x13   : > { %1278 = vmatprep.mubr.msk.bf16.mxu0 %vm441_vm2, %v1357_v6  ;;  %1310 = vmatprep.mubr.msk.bf16.mxu1 %vm441_vm2, %v1358_v7  ;;  %v1369_v18 = vld [vmem:[%s1443_s25 + $0x30] sm:$0xff]   ;;  %v1371_v20 = vld [vmem:[%s1443_s25 + $0x38] sm:$0xff]   ;;  %v1373_v22 = vld [vmem:[%s1443_s25 + $0x40] sm:$0xff]  }
  0x14   : > { %v1370_v19 = vld [vmem:[%s1443_s25 + $0xb0] sm:$0xff]   ;;  %v1372_v21 = vld [vmem:[%s1443_s25 + $0xb8] sm:$0xff]   ;;  %v1374_v23 = vld [vmem:[%s1443_s25 + $0xc0] sm:$0xff]  }
  0x15   : > { %1277 = vmatpush3.bf16.msra.mxu0 %v1356_v5  ;;  %1345 = vmatpush3.bf16.msra.mxu1 %v1356_v5  ;;  %v1375_v24 = vld [vmem:[%s1443_s25 + $0x48] sm:$0xff]   ;;  %v1377_v26 = vld [vmem:[%s1443_s25 + $0x50] sm:$0xff]   ;;  %v1379_v28 = vld [vmem:[%s1443_s25 + $0x58] sm:$0xff]  }
  0x16   : > { %v1376_v25 = vld [vmem:[%s1443_s25 + $0xc8] sm:$0xff]   ;;  %v1378_v27 = vld [vmem:[%s1443_s25 + $0xd0] sm:$0xff]   ;;  %v1380_v29 = vld [vmem:[%s1443_s25 + $0xd8] sm:$0xff]  }
  0x17   : > { %v1381_v30 = vld [vmem:[%s1443_s25 + $0x60] sm:$0xff]   ;;  %v1383_v32 = vld [vmem:[%s1443_s25 + $0x68] sm:$0xff]   ;;  %v1385_v34 = vld [vmem:[%s1443_s25 + $0x70] sm:$0xff]  }
  0x18   : > { %1279 = vmatmul.mubr.msk.bf16.vlgmr.msra.gmra.mxu0 %vm441_vm2, %v1359_v8  ;;  %1311 = vmatmul.mubr.msk.bf16.vlgmr.msra.gmra.mxu1 %vm441_vm2, %v1360_v9  ;;  %v1382_v31 = vld [vmem:[%s1443_s25 + $0xe0] sm:$0xff]   ;;  %v1384_v33 = vld [vmem:[%s1443_s25 + $0xe8] sm:$0xff]   ;;  %v1386_v35 = vld [vmem:[%s1443_s25 + $0xf0] sm:$0xff]  }
  0x19   : > { %1282 = vmatprep.mubr.msk.bf16.mxu0 %vm441_vm2, %v1361_v10  ;;  %1314 = vmatprep.mubr.msk.bf16.mxu1 %vm441_vm2, %v1362_v11  ;;  %v1387_v36 = vld [vmem:[%s1443_s25 + $0x78] sm:$0xff]  }
  0x1a   : > { %v1388_v37 = vld [vmem:[%s1443_s25 + $0xf8] sm:$0xff]  }
  0x20   : > { %1283 = vmatmul.mubr.msk.bf16.gmra.mxu0 %vm441_vm2, %v1363_v12  ;;  %1315 = vmatmul.mubr.msk.bf16.gmra.mxu1 %vm441_vm2, %v1364_v13 }
  0x21   : > { %1286 = vmatprep.mubr.msk.bf16.mxu0 %vm441_vm2, %v1365_v14  ;;  %1318 = vmatprep.mubr.msk.bf16.mxu1 %vm441_vm2, %v1366_v15 }
  0x28   : > { %1287 = vmatmul.mubr.msk.bf16.gmra.mxu0 %vm441_vm2, %v1367_v16  ;;  %1319 = vmatmul.mubr.msk.bf16.gmra.mxu1 %vm441_vm2, %v1368_v17 }
  0x29   : > { %1290 = vmatprep.mubr.msk.bf16.mxu0 %vm441_vm2, %v1369_v18  ;;  %1322 = vmatprep.mubr.msk.bf16.mxu1 %vm441_vm2, %v1370_v19 }
  0x30   : > { %1291 = vmatmul.mubr.msk.bf16.gmra.mxu0 %vm441_vm2, %v1371_v20  ;;  %1323 = vmatmul.mubr.msk.bf16.gmra.mxu1 %vm441_vm2, %v1372_v21 }
  0x31   : > { %1294 = vmatprep.mubr.msk.bf16.mxu0 %vm441_vm2, %v1373_v22  ;;  %1326 = vmatprep.mubr.msk.bf16.mxu1 %vm441_vm2, %v1374_v23 }
  0x38   : > { %1295 = vmatmul.mubr.msk.bf16.gmra.mxu0 %vm441_vm2, %v1375_v24  ;;  %1327 = vmatmul.mubr.msk.bf16.gmra.mxu1 %vm441_vm2, %v1376_v25 }
  0x39   : > { %1298 = vmatprep.mubr.msk.bf16.mxu0 %vm441_vm2, %v1377_v26  ;;  %1330 = vmatprep.mubr.msk.bf16.mxu1 %vm441_vm2, %v1378_v27 }
  0x40   : > { %1299 = vmatmul.mubr.msk.bf16.gmra.mxu0 %vm441_vm2, %v1379_v28  ;;  %1331 = vmatmul.mubr.msk.bf16.gmra.mxu1 %vm441_vm2, %v1380_v29 }
  0x41   : > { %1302 = vmatprep.mubr.msk.bf16.mxu0 %vm441_vm2, %v1381_v30  ;;  %1334 = vmatprep.mubr.msk.bf16.mxu1 %vm441_vm2, %v1382_v31 }
  0x48   : > { %1303 = vmatmul.mubr.msk.bf16.gmra.mxu0 %vm441_vm2, %v1383_v32  ;;  %1335 = vmatmul.mubr.msk.bf16.gmra.mxu1 %vm441_vm2, %v1384_v33 }
  0x49   : > { %1306 = vmatprep.mubr.msk.bf16.mxu0 %vm441_vm2, %v1385_v34  ;;  %1338 = vmatprep.mubr.msk.bf16.mxu1 %vm441_vm2, %v1386_v35 }
  0x50   : > { %1307 = vmatmul.mubr.msk.bf16.gmra.mxu0 %vm441_vm2, %v1387_v36  ;;  %1339 = vmatmul.mubr.msk.bf16.gmra.mxu1 %vm441_vm2, %v1388_v37 }
  0xd8   : > { %v1280_v39 = vpop.f32.mrf.mxu0  ;;  %v1312_v41 = vpop.f32.mrf.mxu1 }
  0xd9   : > { %v843_v42 = vmul.f32 %v1280_v39, %v1512_v38  ;;  %v875_v43 = vmul.f32 %v1312_v41, %v1512_v38 }
  0xda   : > { %v579_v44 = vpop.f32.mrf.mxu0  ;;  %v707_v45 = vpop.f32.mrf.mxu1 }
  0xdb   : > { %v914_v46 = vadd.f32 %v1517_v40, %v843_v42  ;;  %v946_v47 = vadd.f32 %v1517_v40, %v875_v43  ;;  %v841_v48 = vmul.f32 %v1512_v38, %v579_v44  ;;  %v873_v49 = vmul.f32 %v1512_v38, %v707_v45 }
  0xdc   : > { %v1281_v50 = vpop.f32.mrf.mxu0  ;;  %v1313_v51 = vpop.f32.mrf.mxu1 }
  0xdd   : > { %v978_v52 = vmax.f32 %v914_v46, 0.0  ;;  %v1010_v53 = vmax.f32 %v946_v47, 0.0  ;;  %v912_v54 = vadd.f32 %v1517_v40, %v841_v48  ;;  %v944_v55 = vadd.f32 %v1517_v40, %v873_v49 }
  0xde   : > { %v844_v56 = vmul.f32 %v1281_v50, %v1512_v38  ;;  %v876_v57 = vmul.f32 %v1313_v51, %v1512_v38  ;;  %v582_v58 = vpop.f32.mrf.mxu0  ;;  %v710_v59 = vpop.f32.mrf.mxu1 }
  0xdf   : > { %1043 = vst.msk [vmem:[%s1529_s7 + $0x10] sm:$0xff] %vm1040_vm3, %v978_v52  ;;  %1075 = vst.msk [vmem:[%s1529_s7 + $0x110] sm:$0xff] %vm1040_vm3, %v1010_v53  ;;  %v976_v60 = vmax.f32 %v912_v54, 0.0  ;;  %v1008_v61 = vmax.f32 %v944_v55, 0.0  ;;  %v842_v62 = vmul.f32 %v1512_v38, %v582_v58  ;;  %v874_v63 = vmul.f32 %v1512_v38, %v710_v59 }
  0xe0   : > { %v915_v0 = vadd.f32 %v1517_v40, %v844_v56  ;;  %v947_v1 = vadd.f32 %v1517_v40, %v876_v57  ;;  %v1284_v2 = vpop.f32.mrf.mxu0  ;;  %v1316_v3 = vpop.f32.mrf.mxu1 }
  0xe1   : > { %1041 = vst.msk [vmem:[%s1529_s7] sm:$0xff] %vm1040_vm3, %v976_v60  ;;  %1073 = vst.msk [vmem:[%s1529_s7 + $0x100] sm:$0xff] %vm1040_vm3, %v1008_v61  ;;  %v913_v4 = vadd.f32 %v1517_v40, %v842_v62  ;;  %v945_v5 = vadd.f32 %v1517_v40, %v874_v63  ;;  %v847_v6 = vmul.f32 %v1284_v2, %v1512_v38 }
  0xe2   : > { %v879_v7 = vmul.f32 %v1316_v3, %v1512_v38  ;;  %v979_v8 = vmax.f32 %v915_v0, 0.0  ;;  %v1011_v9 = vmax.f32 %v947_v1, 0.0  ;;  %v595_v10 = vpop.f32.mrf.mxu0  ;;  %v723_v11 = vpop.f32.mrf.mxu1 }
  0xe3   : > { %v977_v12 = vmax.f32 %v913_v4, 0.0  ;;  %v1009_v13 = vmax.f32 %v945_v5, 0.0  ;;  %v918_v14 = vadd.f32 %v1517_v40, %v847_v6  ;;  %v845_v16 = vmul.f32 %v1512_v38, %v595_v10 }
  0xe4   : > { %v950_v15 = vadd.f32 %v1517_v40, %v879_v7  ;;  %1044 = vst.msk [vmem:[%s1529_s7 + $0x18] sm:$0xff] %vm1040_vm3, %v979_v8  ;;  %1076 = vst.msk [vmem:[%s1529_s7 + $0x118] sm:$0xff] %vm1040_vm3, %v1011_v9  ;;  %v877_v17 = vmul.f32 %v1512_v38, %v723_v11  ;;  %v1285_v18 = vpop.f32.mrf.mxu0  ;;  %v1317_v19 = vpop.f32.mrf.mxu1 }
  0xe5   : > { %1042 = vst.msk [vmem:[%s1529_s7 + $0x8] sm:$0xff] %vm1040_vm3, %v977_v12  ;;  %1074 = vst.msk [vmem:[%s1529_s7 + $0x108] sm:$0xff] %vm1040_vm3, %v1009_v13  ;;  %v982_v20 = vmax.f32 %v918_v14, 0.0  ;;  %v848_v22 = vmul.f32 %v1285_v18, %v1512_v38  ;;  %v880_v23 = vmul.f32 %v1317_v19, %v1512_v38  ;;  %v916_v24 = vadd.f32 %v1517_v40, %v845_v16 }
  0xe6   : > { %v1014_v21 = vmax.f32 %v950_v15, 0.0  ;;  %v948_v25 = vadd.f32 %v1517_v40, %v877_v17  ;;  %v598_v26 = vpop.f32.mrf.mxu0  ;;  %v726_v27 = vpop.f32.mrf.mxu1 }
  0xe7   : > { %1047 = vst.msk [vmem:[%s1529_s7 + $0x30] sm:$0xff] %vm1040_vm3, %v982_v20  ;;  %v919_v28 = vadd.f32 %v1517_v40, %v848_v22  ;;  %v951_v29 = vadd.f32 %v1517_v40, %v880_v23  ;;  %v846_v30 = vmul.f32 %v1512_v38, %v598_v26  ;;  %v878_v31 = vmul.f32 %v1512_v38, %v726_v27 }
  0xe8   : > { %1079 = vst.msk [vmem:[%s1529_s7 + $0x130] sm:$0xff] %vm1040_vm3, %v1014_v21  ;;  %v980_v32 = vmax.f32 %v916_v24, 0.0  ;;  %v1012_v33 = vmax.f32 %v948_v25, 0.0  ;;  %v1288_v34 = vpop.f32.mrf.mxu0  ;;  %v1320_v35 = vpop.f32.mrf.mxu1 }
  0xe9   : > { %v983_v36 = vmax.f32 %v919_v28, 0.0  ;;  %v1015_v37 = vmax.f32 %v951_v29, 0.0  ;;  %v917_v39 = vadd.f32 %v1517_v40, %v846_v30  ;;  %v949_v41 = vadd.f32 %v1517_v40, %v878_v31 }
  0xea   : > { %1045 = vst.msk [vmem:[%s1529_s7 + $0x20] sm:$0xff] %vm1040_vm3, %v980_v32  ;;  %1077 = vst.msk [vmem:[%s1529_s7 + $0x120] sm:$0xff] %vm1040_vm3, %v1012_v33  ;;  %v851_v42 = vmul.f32 %v1288_v34, %v1512_v38  ;;  %v883_v43 = vmul.f32 %v1320_v35, %v1512_v38  ;;  %v611_v44 = vpop.f32.mrf.mxu0  ;;  %v739_v45 = vpop.f32.mrf.mxu1 }
  0xeb   : > { %1048 = vst.msk [vmem:[%s1529_s7 + $0x38] sm:$0xff] %vm1040_vm3, %v983_v36  ;;  %1080 = vst.msk [vmem:[%s1529_s7 + $0x138] sm:$0xff] %vm1040_vm3, %v1015_v37  ;;  %v981_v46 = vmax.f32 %v917_v39, 0.0  ;;  %v1013_v47 = vmax.f32 %v949_v41, 0.0  ;;  %v849_v48 = vmul.f32 %v1512_v38, %v611_v44  ;;  %v881_v49 = vmul.f32 %v1512_v38, %v739_v45 }
  0xec   : > { %v922_v50 = vadd.f32 %v1517_v40, %v851_v42  ;;  %v954_v51 = vadd.f32 %v1517_v40, %v883_v43  ;;  %v1289_v52 = vpop.f32.mrf.mxu0  ;;  %v1321_v53 = vpop.f32.mrf.mxu1 }
  0xed   : > { %1046 = vst.msk [vmem:[%s1529_s7 + $0x28] sm:$0xff] %vm1040_vm3, %v981_v46  ;;  %1078 = vst.msk [vmem:[%s1529_s7 + $0x128] sm:$0xff] %vm1040_vm3, %v1013_v47  ;;  %v920_v54 = vadd.f32 %v1517_v40, %v849_v48  ;;  %v952_v55 = vadd.f32 %v1517_v40, %v881_v49  ;;  %v852_v56 = vmul.f32 %v1289_v52, %v1512_v38 }
  0xee   : > { %v884_v57 = vmul.f32 %v1321_v53, %v1512_v38  ;;  %v986_v58 = vmax.f32 %v922_v50, 0.0  ;;  %v1018_v59 = vmax.f32 %v954_v51, 0.0  ;;  %v614_v60 = vpop.f32.mrf.mxu0  ;;  %v742_v61 = vpop.f32.mrf.mxu1 }
  0xef   : > { %v984_v62 = vmax.f32 %v920_v54, 0.0  ;;  %v1016_v63 = vmax.f32 %v952_v55, 0.0  ;;  %v923_v0 = vadd.f32 %v1517_v40, %v852_v56  ;;  %v850_v2 = vmul.f32 %v1512_v38, %v614_v60 }
  0xf0   : > { %v955_v1 = vadd.f32 %v1517_v40, %v884_v57  ;;  %1051 = vst.msk [vmem:[%s1529_s7 + $0x50] sm:$0xff] %vm1040_vm3, %v986_v58  ;;  %1083 = vst.msk [vmem:[%s1529_s7 + $0x150] sm:$0xff] %vm1040_vm3, %v1018_v59  ;;  %v882_v3 = vmul.f32 %v1512_v38, %v742_v61  ;;  %v1292_v4 = vpop.f32.mrf.mxu0  ;;  %v1324_v5 = vpop.f32.mrf.mxu1 }
  0xf1   : > { %1049 = vst.msk [vmem:[%s1529_s7 + $0x40] sm:$0xff] %vm1040_vm3, %v984_v62  ;;  %1081 = vst.msk [vmem:[%s1529_s7 + $0x140] sm:$0xff] %vm1040_vm3, %v1016_v63  ;;  %v987_v6 = vmax.f32 %v923_v0, 0.0  ;;  %v855_v8 = vmul.f32 %v1292_v4, %v1512_v38  ;;  %v887_v9 = vmul.f32 %v1324_v5, %v1512_v38  ;;  %v921_v10 = vadd.f32 %v1517_v40, %v850_v2 }
  0xf2   : > { %v1019_v7 = vmax.f32 %v955_v1, 0.0  ;;  %v953_v11 = vadd.f32 %v1517_v40, %v882_v3  ;;  %v627_v12 = vpop.f32.mrf.mxu0  ;;  %v755_v13 = vpop.f32.mrf.mxu1 }
  0xf3   : > { %1052 = vst.msk [vmem:[%s1529_s7 + $0x58] sm:$0xff] %vm1040_vm3, %v987_v6  ;;  %v926_v14 = vadd.f32 %v1517_v40, %v855_v8  ;;  %v958_v15 = vadd.f32 %v1517_v40, %v887_v9  ;;  %v853_v16 = vmul.f32 %v1512_v38, %v627_v12  ;;  %v885_v17 = vmul.f32 %v1512_v38, %v755_v13 }
  0xf4   : > { %1084 = vst.msk [vmem:[%s1529_s7 + $0x158] sm:$0xff] %vm1040_vm3, %v1019_v7  ;;  %v985_v18 = vmax.f32 %v921_v10, 0.0  ;;  %v1017_v19 = vmax.f32 %v953_v11, 0.0  ;;  %v1293_v20 = vpop.f32.mrf.mxu0  ;;  %v1325_v21 = vpop.f32.mrf.mxu1 }
  0xf5   : > { %v990_v22 = vmax.f32 %v926_v14, 0.0  ;;  %v1022_v23 = vmax.f32 %v958_v15, 0.0  ;;  %v924_v24 = vadd.f32 %v1517_v40, %v853_v16  ;;  %v956_v25 = vadd.f32 %v1517_v40, %v885_v17 }
  0xf6   : > { %1050 = vst.msk [vmem:[%s1529_s7 + $0x48] sm:$0xff] %vm1040_vm3, %v985_v18  ;;  %1082 = vst.msk [vmem:[%s1529_s7 + $0x148] sm:$0xff] %vm1040_vm3, %v1017_v19  ;;  %v856_v26 = vmul.f32 %v1293_v20, %v1512_v38  ;;  %v888_v27 = vmul.f32 %v1325_v21, %v1512_v38  ;;  %v630_v28 = vpop.f32.mrf.mxu0  ;;  %v758_v29 = vpop.f32.mrf.mxu1 }
  0xf7   : > { %1055 = vst.msk [vmem:[%s1529_s7 + $0x70] sm:$0xff] %vm1040_vm3, %v990_v22  ;;  %1087 = vst.msk [vmem:[%s1529_s7 + $0x170] sm:$0xff] %vm1040_vm3, %v1022_v23  ;;  %v988_v30 = vmax.f32 %v924_v24, 0.0  ;;  %v1020_v31 = vmax.f32 %v956_v25, 0.0  ;;  %v854_v32 = vmul.f32 %v1512_v38, %v630_v28  ;;  %v886_v33 = vmul.f32 %v1512_v38, %v758_v29 }
  0xf8   : > { %v927_v34 = vadd.f32 %v1517_v40, %v856_v26  ;;  %v959_v35 = vadd.f32 %v1517_v40, %v888_v27  ;;  %v1296_v36 = vpop.f32.mrf.mxu0  ;;  %v1328_v37 = vpop.f32.mrf.mxu1 }
  0xf9   : > { %1053 = vst.msk [vmem:[%s1529_s7 + $0x60] sm:$0xff] %vm1040_vm3, %v988_v30  ;;  %1085 = vst.msk [vmem:[%s1529_s7 + $0x160] sm:$0xff] %vm1040_vm3, %v1020_v31  ;;  %v925_v39 = vadd.f32 %v1517_v40, %v854_v32  ;;  %v957_v41 = vadd.f32 %v1517_v40, %v886_v33  ;;  %v859_v42 = vmul.f32 %v1296_v36, %v1512_v38 }
  0xfa   : > { %v891_v43 = vmul.f32 %v1328_v37, %v1512_v38  ;;  %v991_v44 = vmax.f32 %v927_v34, 0.0  ;;  %v1023_v45 = vmax.f32 %v959_v35, 0.0  ;;  %v643_v46 = vpop.f32.mrf.mxu0  ;;  %v771_v47 = vpop.f32.mrf.mxu1 }
  0xfb   : > { %v989_v48 = vmax.f32 %v925_v39, 0.0  ;;  %v1021_v49 = vmax.f32 %v957_v41, 0.0  ;;  %v930_v50 = vadd.f32 %v1517_v40, %v859_v42  ;;  %v857_v52 = vmul.f32 %v1512_v38, %v643_v46 }
  0xfc   : > { %v962_v51 = vadd.f32 %v1517_v40, %v891_v43  ;;  %1056 = vst.msk [vmem:[%s1529_s7 + $0x78] sm:$0xff] %vm1040_vm3, %v991_v44  ;;  %1088 = vst.msk [vmem:[%s1529_s7 + $0x178] sm:$0xff] %vm1040_vm3, %v1023_v45  ;;  %v889_v53 = vmul.f32 %v1512_v38, %v771_v47  ;;  %v1297_v54 = vpop.f32.mrf.mxu0  ;;  %v1329_v55 = vpop.f32.mrf.mxu1 }
  0xfd   : > { %1054 = vst.msk [vmem:[%s1529_s7 + $0x68] sm:$0xff] %vm1040_vm3, %v989_v48  ;;  %1086 = vst.msk [vmem:[%s1529_s7 + $0x168] sm:$0xff] %vm1040_vm3, %v1021_v49  ;;  %v994_v56 = vmax.f32 %v930_v50, 0.0  ;;  %v860_v58 = vmul.f32 %v1297_v54, %v1512_v38  ;;  %v892_v59 = vmul.f32 %v1329_v55, %v1512_v38  ;;  %v928_v60 = vadd.f32 %v1517_v40, %v857_v52 }
  0xfe   : > { %v1026_v57 = vmax.f32 %v962_v51, 0.0  ;;  %v960_v61 = vadd.f32 %v1517_v40, %v889_v53  ;;  %v646_v62 = vpop.f32.mrf.mxu0  ;;  %v774_v63 = vpop.f32.mrf.mxu1 }
  0xff   : > { %1059 = vst.msk [vmem:[%s1529_s7 + $0x90] sm:$0xff] %vm1040_vm3, %v994_v56  ;;  %v931_v0 = vadd.f32 %v1517_v40, %v860_v58  ;;  %v963_v1 = vadd.f32 %v1517_v40, %v892_v59  ;;  %v858_v2 = vmul.f32 %v1512_v38, %v646_v62  ;;  %v890_v3 = vmul.f32 %v1512_v38, %v774_v63 }
 0x100   : > { %1091 = vst.msk [vmem:[%s1529_s7 + $0x190] sm:$0xff] %vm1040_vm3, %v1026_v57  ;;  %v992_v4 = vmax.f32 %v928_v60, 0.0  ;;  %v1024_v5 = vmax.f32 %v960_v61, 0.0  ;;  %v1300_v6 = vpop.f32.mrf.mxu0  ;;  %v1332_v7 = vpop.f32.mrf.mxu1 }
 0x101   : > { %v995_v8 = vmax.f32 %v931_v0, 0.0  ;;  %v1027_v9 = vmax.f32 %v963_v1, 0.0  ;;  %v929_v10 = vadd.f32 %v1517_v40, %v858_v2  ;;  %v961_v11 = vadd.f32 %v1517_v40, %v890_v3 }
 0x102   : > { %1057 = vst.msk [vmem:[%s1529_s7 + $0x80] sm:$0xff] %vm1040_vm3, %v992_v4  ;;  %1089 = vst.msk [vmem:[%s1529_s7 + $0x180] sm:$0xff] %vm1040_vm3, %v1024_v5  ;;  %v863_v12 = vmul.f32 %v1300_v6, %v1512_v38  ;;  %v895_v13 = vmul.f32 %v1332_v7, %v1512_v38  ;;  %v659_v14 = vpop.f32.mrf.mxu0  ;;  %v787_v15 = vpop.f32.mrf.mxu1 }
 0x103   : > { %1060 = vst.msk [vmem:[%s1529_s7 + $0x98] sm:$0xff] %vm1040_vm3, %v995_v8  ;;  %1092 = vst.msk [vmem:[%s1529_s7 + $0x198] sm:$0xff] %vm1040_vm3, %v1027_v9  ;;  %v993_v16 = vmax.f32 %v929_v10, 0.0  ;;  %v1025_v17 = vmax.f32 %v961_v11, 0.0  ;;  %v861_v18 = vmul.f32 %v1512_v38, %v659_v14  ;;  %v893_v19 = vmul.f32 %v1512_v38, %v787_v15 }
 0x104   : > { %v934_v20 = vadd.f32 %v1517_v40, %v863_v12  ;;  %v966_v21 = vadd.f32 %v1517_v40, %v895_v13  ;;  %v1301_v22 = vpop.f32.mrf.mxu0  ;;  %v1333_v23 = vpop.f32.mrf.mxu1 }
 0x105   : > { %1058 = vst.msk [vmem:[%s1529_s7 + $0x88] sm:$0xff] %vm1040_vm3, %v993_v16  ;;  %1090 = vst.msk [vmem:[%s1529_s7 + $0x188] sm:$0xff] %vm1040_vm3, %v1025_v17  ;;  %v932_v24 = vadd.f32 %v1517_v40, %v861_v18  ;;  %v964_v25 = vadd.f32 %v1517_v40, %v893_v19  ;;  %v864_v26 = vmul.f32 %v1301_v22, %v1512_v38 }
 0x106   : > { %v896_v27 = vmul.f32 %v1333_v23, %v1512_v38  ;;  %v998_v28 = vmax.f32 %v934_v20, 0.0  ;;  %v1030_v29 = vmax.f32 %v966_v21, 0.0  ;;  %v662_v30 = vpop.f32.mrf.mxu0  ;;  %v790_v31 = vpop.f32.mrf.mxu1 }
 0x107   : > { %v996_v32 = vmax.f32 %v932_v24, 0.0  ;;  %v1028_v33 = vmax.f32 %v964_v25, 0.0  ;;  %v935_v34 = vadd.f32 %v1517_v40, %v864_v26  ;;  %v862_v36 = vmul.f32 %v1512_v38, %v662_v30 }
 0x108   : > { %v967_v35 = vadd.f32 %v1517_v40, %v896_v27  ;;  %1063 = vst.msk [vmem:[%s1529_s7 + $0xb0] sm:$0xff] %vm1040_vm3, %v998_v28  ;;  %1095 = vst.msk [vmem:[%s1529_s7 + $0x1b0] sm:$0xff] %vm1040_vm3, %v1030_v29  ;;  %v894_v37 = vmul.f32 %v1512_v38, %v790_v31  ;;  %v1304_v39 = vpop.f32.mrf.mxu0  ;;  %v1336_v41 = vpop.f32.mrf.mxu1 }
 0x109   : > { %1061 = vst.msk [vmem:[%s1529_s7 + $0xa0] sm:$0xff] %vm1040_vm3, %v996_v32  ;;  %1093 = vst.msk [vmem:[%s1529_s7 + $0x1a0] sm:$0xff] %vm1040_vm3, %v1028_v33  ;;  %v999_v42 = vmax.f32 %v935_v34, 0.0  ;;  %v867_v44 = vmul.f32 %v1304_v39, %v1512_v38  ;;  %v899_v45 = vmul.f32 %v1336_v41, %v1512_v38  ;;  %v933_v46 = vadd.f32 %v1517_v40, %v862_v36 }
 0x10a   : > { %v1031_v43 = vmax.f32 %v967_v35, 0.0  ;;  %v965_v47 = vadd.f32 %v1517_v40, %v894_v37  ;;  %v675_v48 = vpop.f32.mrf.mxu0  ;;  %v803_v49 = vpop.f32.mrf.mxu1 }
 0x10b   : > { %1064 = vst.msk [vmem:[%s1529_s7 + $0xb8] sm:$0xff] %vm1040_vm3, %v999_v42  ;;  %v938_v50 = vadd.f32 %v1517_v40, %v867_v44  ;;  %v970_v51 = vadd.f32 %v1517_v40, %v899_v45  ;;  %v865_v52 = vmul.f32 %v1512_v38, %v675_v48  ;;  %v897_v53 = vmul.f32 %v1512_v38, %v803_v49 }
 0x10c   : > { %1096 = vst.msk [vmem:[%s1529_s7 + $0x1b8] sm:$0xff] %vm1040_vm3, %v1031_v43  ;;  %v997_v54 = vmax.f32 %v933_v46, 0.0  ;;  %v1029_v55 = vmax.f32 %v965_v47, 0.0  ;;  %v1305_v56 = vpop.f32.mrf.mxu0  ;;  %v1337_v57 = vpop.f32.mrf.mxu1 }
 0x10d   : > { %v1002_v58 = vmax.f32 %v938_v50, 0.0  ;;  %v1034_v59 = vmax.f32 %v970_v51, 0.0  ;;  %v936_v60 = vadd.f32 %v1517_v40, %v865_v52  ;;  %v968_v61 = vadd.f32 %v1517_v40, %v897_v53 }
 0x10e   : > { %1062 = vst.msk [vmem:[%s1529_s7 + $0xa8] sm:$0xff] %vm1040_vm3, %v997_v54  ;;  %1094 = vst.msk [vmem:[%s1529_s7 + $0x1a8] sm:$0xff] %vm1040_vm3, %v1029_v55  ;;  %v868_v62 = vmul.f32 %v1305_v56, %v1512_v38  ;;  %v900_v63 = vmul.f32 %v1337_v57, %v1512_v38  ;;  %v678_v0 = vpop.f32.mrf.mxu0  ;;  %v806_v1 = vpop.f32.mrf.mxu1 }
 0x10f   : > { %1067 = vst.msk [vmem:[%s1529_s7 + $0xd0] sm:$0xff] %vm1040_vm3, %v1002_v58  ;;  %1099 = vst.msk [vmem:[%s1529_s7 + $0x1d0] sm:$0xff] %vm1040_vm3, %v1034_v59  ;;  %v1000_v2 = vmax.f32 %v936_v60, 0.0  ;;  %v1032_v3 = vmax.f32 %v968_v61, 0.0  ;;  %v866_v4 = vmul.f32 %v1512_v38, %v678_v0  ;;  %v898_v5 = vmul.f32 %v1512_v38, %v806_v1 }
 0x110   : > { %v939_v6 = vadd.f32 %v1517_v40, %v868_v62  ;;  %v971_v7 = vadd.f32 %v1517_v40, %v900_v63  ;;  %v1308_v8 = vpop.f32.mrf.mxu0  ;;  %v1340_v9 = vpop.f32.mrf.mxu1 }
 0x111   : > { %1065 = vst.msk [vmem:[%s1529_s7 + $0xc0] sm:$0xff] %vm1040_vm3, %v1000_v2  ;;  %1097 = vst.msk [vmem:[%s1529_s7 + $0x1c0] sm:$0xff] %vm1040_vm3, %v1032_v3  ;;  %v937_v10 = vadd.f32 %v1517_v40, %v866_v4  ;;  %v969_v11 = vadd.f32 %v1517_v40, %v898_v5  ;;  %v871_v12 = vmul.f32 %v1308_v8, %v1512_v38 }
 0x112   : > { %v903_v13 = vmul.f32 %v1340_v9, %v1512_v38  ;;  %v1003_v14 = vmax.f32 %v939_v6, 0.0  ;;  %v1035_v15 = vmax.f32 %v971_v7, 0.0  ;;  %v691_v16 = vpop.f32.mrf.mxu0  ;;  %v819_v17 = vpop.f32.mrf.mxu1 }
 0x113   : > { %v1001_v18 = vmax.f32 %v937_v10, 0.0  ;;  %v1033_v19 = vmax.f32 %v969_v11, 0.0  ;;  %v942_v20 = vadd.f32 %v1517_v40, %v871_v12  ;;  %v869_v22 = vmul.f32 %v1512_v38, %v691_v16 }
 0x114   : > { %v974_v21 = vadd.f32 %v1517_v40, %v903_v13  ;;  %1068 = vst.msk [vmem:[%s1529_s7 + $0xd8] sm:$0xff] %vm1040_vm3, %v1003_v14  ;;  %1100 = vst.msk [vmem:[%s1529_s7 + $0x1d8] sm:$0xff] %vm1040_vm3, %v1035_v15  ;;  %v901_v23 = vmul.f32 %v1512_v38, %v819_v17  ;;  %v1309_v24 = vpop.f32.mrf.mxu0  ;;  %v1341_v25 = vpop.f32.mrf.mxu1 }
 0x115   : > { %1066 = vst.msk [vmem:[%s1529_s7 + $0xc8] sm:$0xff] %vm1040_vm3, %v1001_v18  ;;  %1098 = vst.msk [vmem:[%s1529_s7 + $0x1c8] sm:$0xff] %vm1040_vm3, %v1033_v19  ;;  %v1006_v26 = vmax.f32 %v942_v20, 0.0  ;;  %v872_v28 = vmul.f32 %v1309_v24, %v1512_v38  ;;  %v904_v29 = vmul.f32 %v1341_v25, %v1512_v38  ;;  %v940_v30 = vadd.f32 %v1517_v40, %v869_v22 }
 0x116   : > { %v1038_v27 = vmax.f32 %v974_v21, 0.0  ;;  %v972_v31 = vadd.f32 %v1517_v40, %v901_v23  ;;  %v694_v32 = vpop.f32.mrf.mxu0  ;;  %v822_v33 = vpop.f32.mrf.mxu1 }
 0x117   : > { %1071 = vst.msk [vmem:[%s1529_s7 + $0xf0] sm:$0xff] %vm1040_vm3, %v1006_v26  ;;  %v943_v34 = vadd.f32 %v1517_v40, %v872_v28  ;;  %v975_v35 = vadd.f32 %v1517_v40, %v904_v29  ;;  %v870_v36 = vmul.f32 %v1512_v38, %v694_v32  ;;  %v902_v37 = vmul.f32 %v1512_v38, %v822_v33 }
 0x118   : > { %1103 = vst.msk [vmem:[%s1529_s7 + $0x1f0] sm:$0xff] %vm1040_vm3, %v1038_v27  ;;  %v1004_v39 = vmax.f32 %v940_v30, 0.0  ;;  %v1036_v41 = vmax.f32 %v972_v31, 0.0 }
 0x119   : > { %v1007_v42 = vmax.f32 %v943_v34, 0.0  ;;  %v1039_v43 = vmax.f32 %v975_v35, 0.0  ;;  %v941_v44 = vadd.f32 %v1517_v40, %v870_v36  ;;  %v973_v45 = vadd.f32 %v1517_v40, %v902_v37 }
 0x11a   : > { %1069 = vst.msk [vmem:[%s1529_s7 + $0xe0] sm:$0xff] %vm1040_vm3, %v1004_v39  ;;  %1101 = vst.msk [vmem:[%s1529_s7 + $0x1e0] sm:$0xff] %vm1040_vm3, %v1036_v41 }
 0x11b   : > { %1072 = vst.msk [vmem:[%s1529_s7 + $0xf8] sm:$0xff] %vm1040_vm3, %v1007_v42  ;;  %1104 = vst.msk [vmem:[%s1529_s7 + $0x1f8] sm:$0xff] %vm1040_vm3, %v1039_v43  ;;  %v1005_v46 = vmax.f32 %v941_v44, 0.0  ;;  %v1037_v47 = vmax.f32 %v973_v45, 0.0 }
 0x11d   : > { %1070 = vst.msk [vmem:[%s1529_s7 + $0xe8] sm:$0xff] %vm1040_vm3, %v1005_v46  ;;  %1102 = vst.msk [vmem:[%s1529_s7 + $0x1e8] sm:$0xff] %vm1040_vm3, %v1037_v47 }
 0x11e PF: > { %s14_s15 = sadd.s32 1, %s1395_s15  }
 0x11f   : > { %p11_p4 = scmp.ge.s32.totalorder %s14_s15, 4  }
 0x121   :  { %13 = sbr.rel (!%p11_p4) target bundleno = 1 (0x1), region = 66 }

// kernel: hdispnet_forward.8
= control target key start
LH: loop header
LB: loop body
LE: loop exit
PB: predicated region body
PF: predicated region fallthrough
CT: control target
= control target key end

     0   :  { %s1627_s15 = smov 0   ;;  %s2044_s0 = inlined_call_operand.vmem [shape: bf16[1024,144], index: 0, kind: input, shape index: {}]   ;;  %s2045_s1 = inlined_call_operand.vmem [shape: bf16[144,16], index: 1, kind: input, shape index: {}]   ;;  %s2046_s2 = inlined_call_operand.vmem [shape: f32[1,16], index: 2, kind: input, shape index: {}]   ;;  %s2047_s3 = inlined_call_operand.vmem [shape: f32[1,16], index: 3, kind: input, shape index: {}]   ;;  %s2048_s4 = inlined_call_operand.vmem [shape: f32[1024,16], index: 4, kind: output, shape index: {}]  }
   0x1 LB: > { %s1341_s16 = sadd.s32 4294967295, %s1599_s15   ;;  %p1345_p0 = scmp.ge.s32.totalorder %s1599_s15, 1  ;;  %s1599_s15 = sphi %s1627_s15, %s14_s15  }
   0x2   : > { %p164_p1 = scmp.lt.s32.totalorder %s1599_s15, 3 }
   0x4   : > { %p165_p2 = pnand %p1345_p0, %p164_p1 }
   0x5   : > { %s1346_s19 = sshll.u32 (!%p165_p2), %s1341_s16, 6 }
   0x6   : > { %168 = sbr.rel (%p165_p2) target bundleno = 372 (0x174), region = 36  ;;  %p192_p3 = scmp.lt.s32.totalorder (!%p165_p2), %s1346_s19, 127 }
   0xb   : > { %v1488_v0 = vld [vmem:[%s2045_s1 + $0x38] sm:$0xff]   ;;  %v1601_v1 = vmov 0   ;;  %v1489_v2 = vld [vmem:[%s2045_s1 + $0x30] sm:$0xff]   ;;  %s2050_s19 = smov (!%p192_p3, %s1346_s19), 127  ;;  %v1490_v3 = vld [vmem:[%s2045_s1 + $0x28] sm:$0xff]   ;;  %vm629_vm0 = vcmask 130048  }
   0xc   : > { %726 = vmatprep.subr.bf16.mxu0 %v1601_v1  ;;  %1461 = vmatprep.subr.bf16.mxu1 %v1601_v1  ;;  %s1460_s24 = sshll.u32 %s2050_s19, 3  ;;  %v1491_v4 = vld [vmem:[%s2045_s1 + $0x20] sm:$0xff]   ;;  %v1492_v7 = vld [vmem:[%s2045_s1 + $0x18] sm:$0xff]   ;;  %v1493_v8 = vld [vmem:[%s2045_s1 + $0x10] sm:$0xff]  }
   0xd   : > { %727 = vmatpush1.bf16.msra.mxu0 %v1488_v0  ;;  %1470 = vmatpush1.bf16.msra.mxu1 %v1488_v0  ;;  %s1652_s27 = scalar_lea.vmem %s2044_s0, %s1460_s24  ;;  %v1494_v9 = vld [vmem:[%s2045_s1 + $0x8] sm:$0xff]   ;;  %v1495_v10 = vld [vmem:[%s2045_s1] sm:$0xff]   ;;  %s1787_s22 = scalar_lea.vmem %s2048_s4, %s1460_s24 }
   0xe   : > { %728 = vmatprep.subr.bf16.mxu0 %v1601_v1  ;;  %1462 = vmatprep.subr.bf16.mxu1 %v1601_v1  ;;  %v1499_v5 = vld [vmem:[%s1652_s27 + $0x4] ss:$8 sps:$4 sm:$0xff]   ;;  %v1497_v12 = vld [vmem:[%s1652_s27] ss:$8 sps:$4 sm:$0xff]   ;;  %v1503_v14 = vld [vmem:[%s1652_s27 + $0x14] ss:$8 sps:$4 sm:$0xff]  }
   0xf   : > { %v1502_v6 = vld [vmem:[%s1652_s27 + $0x104] ss:$8 sps:$4 sm:$0xff]   ;;  %1424 = vmatprep.mubr.msk.bf16.mxu0 %vm629_vm0, %v1499_v5  ;;  %v1500_v13 = vld [vmem:[%s1652_s27 + $0x100] ss:$8 sps:$4 sm:$0xff]   ;;  %v1505_v15 = vld [vmem:[%s1652_s27 + $0x114] ss:$8 sps:$4 sm:$0xff]  }
  0x10   : > { %1440 = vmatprep.mubr.msk.bf16.mxu1 %vm629_vm0, %v1502_v6  ;;  %v1496_v11 = vld [vmem:[%s2045_s1 + $0x40] sm:$0xff]   ;;  %v1507_v16 = vld [vmem:[%s1652_s27 + $0x10] ss:$8 sps:$4 sm:$0xff]   ;;  %v1515_v22 = vld [vmem:[%s1652_s27 + $0x34] ss:$8 sps:$4 sm:$0xff]  }
  0x11   : > { %729 = vmatpush1.bf16.msra.mxu0 %v1489_v2  ;;  %1471 = vmatpush1.bf16.msra.mxu1 %v1489_v2  ;;  %v1508_v17 = vld [vmem:[%s1652_s27 + $0x110] ss:$8 sps:$4 sm:$0xff]   ;;  %v1509_v18 = vld [vmem:[%s1652_s27 + $0x24] ss:$8 sps:$4 sm:$0xff]   ;;  %v1513_v20 = vld [vmem:[%s1652_s27 + $0x20] ss:$8 sps:$4 sm:$0xff]  }
  0x12   : > { %730 = vmatprep.subr.bf16.mxu0 %v1601_v1  ;;  %1463 = vmatprep.subr.bf16.mxu1 %v1601_v1  ;;  %v1511_v19 = vld [vmem:[%s1652_s27 + $0x124] ss:$8 sps:$4 sm:$0xff]   ;;  %v1514_v21 = vld [vmem:[%s1652_s27 + $0x120] ss:$8 sps:$4 sm:$0xff]   ;;  %v1517_v23 = vld [vmem:[%s1652_s27 + $0x134] ss:$8 sps:$4 sm:$0xff]  }
  0x13   : > { %v1519_v24 = vld [vmem:[%s1652_s27 + $0x30] ss:$8 sps:$4 sm:$0xff]   ;;  %v1521_v26 = vld [vmem:[%s1652_s27 + $0x44] ss:$8 sps:$4 sm:$0xff]   ;;  %v1525_v28 = vld [vmem:[%s1652_s27 + $0x40] ss:$8 sps:$4 sm:$0xff]  }
  0x14   : > { %v1520_v25 = vld [vmem:[%s1652_s27 + $0x130] ss:$8 sps:$4 sm:$0xff]   ;;  %v1523_v27 = vld [vmem:[%s1652_s27 + $0x144] ss:$8 sps:$4 sm:$0xff]   ;;  %v1526_v29 = vld [vmem:[%s1652_s27 + $0x140] ss:$8 sps:$4 sm:$0xff]  }
  0x15   : > { %731 = vmatpush1.bf16.msra.mxu0 %v1490_v3  ;;  %1472 = vmatpush1.bf16.msra.mxu1 %v1490_v3  ;;  %v1527_v30 = vld [vmem:[%s1652_s27 + $0x54] ss:$8 sps:$4 sm:$0xff]   ;;  %v1531_v32 = vld [vmem:[%s1652_s27 + $0x50] ss:$8 sps:$4 sm:$0xff]   ;;  %v1533_v34 = vld [vmem:[%s1652_s27 + $0x64] ss:$8 sps:$4 sm:$0xff]  }
  0x16   : > { %732 = vmatprep.subr.bf16.mxu0 %v1601_v1  ;;  %1464 = vmatprep.subr.bf16.mxu1 %v1601_v1  ;;  %v1529_v31 = vld [vmem:[%s1652_s27 + $0x154] ss:$8 sps:$4 sm:$0xff]   ;;  %v1532_v33 = vld [vmem:[%s1652_s27 + $0x150] ss:$8 sps:$4 sm:$0xff]   ;;  %v1535_v35 = vld [vmem:[%s1652_s27 + $0x164] ss:$8 sps:$4 sm:$0xff]  }
  0x17   : > { %v1537_v36 = vld [vmem:[%s1652_s27 + $0x60] ss:$8 sps:$4 sm:$0xff]   ;;  %v1539_v38 = vld [vmem:[%s1652_s27 + $0x74] ss:$8 sps:$4 sm:$0xff]   ;;  %v1543_v40 = vld [vmem:[%s1652_s27 + $0x70] ss:$8 sps:$4 sm:$0xff]  }
  0x18   : > { %v1538_v37 = vld [vmem:[%s1652_s27 + $0x160] ss:$8 sps:$4 sm:$0xff]   ;;  %v1541_v39 = vld [vmem:[%s1652_s27 + $0x174] ss:$8 sps:$4 sm:$0xff]   ;;  %v1544_v41 = vld [vmem:[%s1652_s27 + $0x170] ss:$8 sps:$4 sm:$0xff]  }
  0x19   : > { %733 = vmatpush1.bf16.msra.mxu0 %v1491_v4  ;;  %1473 = vmatpush1.bf16.msra.mxu1 %v1491_v4  ;;  %v1545_v42 = vld [vmem:[%s1652_s27 + $0x84] ss:$8 sps:$4 sm:$0xff]   ;;  %v1549_v44 = vld [vmem:[%s1652_s27 + $0x80] ss:$8 sps:$4 sm:$0xff]   ;;  %v1551_v46 = vld [vmem:[%s1652_s27 + $0x94] ss:$8 sps:$4 sm:$0xff]  }
  0x1a   : > { %734 = vmatprep.subr.bf16.mxu0 %v1601_v1  ;;  %1465 = vmatprep.subr.bf16.mxu1 %v1601_v1  ;;  %v1547_v43 = vld [vmem:[%s1652_s27 + $0x184] ss:$8 sps:$4 sm:$0xff]   ;;  %v1550_v45 = vld [vmem:[%s1652_s27 + $0x180] ss:$8 sps:$4 sm:$0xff]   ;;  %v1553_v47 = vld [vmem:[%s1652_s27 + $0x194] ss:$8 sps:$4 sm:$0xff]  }
  0x1b   : > { %v1555_v48 = vld [vmem:[%s1652_s27 + $0x90] ss:$8 sps:$4 sm:$0xff]   ;;  %v1557_v50 = vld [vmem:[%s1652_s27 + $0xa4] ss:$8 sps:$4 sm:$0xff]   ;;  %v1561_v52 = vld [vmem:[%s1652_s27 + $0xa0] ss:$8 sps:$4 sm:$0xff]  }
  0x1c   : > { %v1556_v49 = vld [vmem:[%s1652_s27 + $0x190] ss:$8 sps:$4 sm:$0xff]   ;;  %v1559_v51 = vld [vmem:[%s1652_s27 + $0x1a4] ss:$8 sps:$4 sm:$0xff]   ;;  %v1562_v53 = vld [vmem:[%s1652_s27 + $0x1a0] ss:$8 sps:$4 sm:$0xff]  }
  0x1d   : > { %735 = vmatpush1.bf16.msra.mxu0 %v1492_v7  ;;  %1474 = vmatpush1.bf16.msra.mxu1 %v1492_v7  ;;  %v1563_v54 = vld [vmem:[%s1652_s27 + $0xb4] ss:$8 sps:$4 sm:$0xff]   ;;  %v1567_v56 = vld [vmem:[%s1652_s27 + $0xb0] ss:$8 sps:$4 sm:$0xff]   ;;  %v1569_v58 = vld [vmem:[%s1652_s27 + $0xc4] ss:$8 sps:$4 sm:$0xff]  }
  0x1e   : > { %736 = vmatprep.subr.bf16.mxu0 %v1601_v1  ;;  %1466 = vmatprep.subr.bf16.mxu1 %v1601_v1  ;;  %v1565_v55 = vld [vmem:[%s1652_s27 + $0x1b4] ss:$8 sps:$4 sm:$0xff]   ;;  %v1568_v57 = vld [vmem:[%s1652_s27 + $0x1b0] ss:$8 sps:$4 sm:$0xff]   ;;  %v1571_v59 = vld [vmem:[%s1652_s27 + $0x1c4] ss:$8 sps:$4 sm:$0xff]  }
  0x1f   : > { %v1573_v60 = vld [vmem:[%s1652_s27 + $0xc0] ss:$8 sps:$4 sm:$0xff]   ;;  %v1575_v62 = vld [vmem:[%s1652_s27 + $0xd4] ss:$8 sps:$4 sm:$0xff]   ;;  %v1579_v0 = vld [vmem:[%s1652_s27 + $0xd0] ss:$8 sps:$4 sm:$0xff]  }
  0x20   : > { %v1574_v61 = vld [vmem:[%s1652_s27 + $0x1c0] ss:$8 sps:$4 sm:$0xff]   ;;  %v1577_v63 = vld [vmem:[%s1652_s27 + $0x1d4] ss:$8 sps:$4 sm:$0xff]   ;;  %v1581_v2 = vld [vmem:[%s1652_s27 + $0xe4] ss:$8 sps:$4 sm:$0xff]  }
  0x21   : > { %737 = vmatpush1.bf16.msra.mxu0 %v1493_v8  ;;  %1475 = vmatpush1.bf16.msra.mxu1 %v1493_v8  ;;  %v1583_v3 = vld [vmem:[%s1652_s27 + $0x1e4] ss:$8 sps:$4 sm:$0xff]   ;;  %v1585_v4 = vld [vmem:[%s1652_s27 + $0xe0] ss:$8 sps:$4 sm:$0xff]   ;;  %v1587_v6 = vld [vmem:[%s1652_s27 + $0xf4] ss:$8 sps:$4 sm:$0xff]  }
  0x22   : > { %738 = vmatprep.subr.bf16.mxu0 %v1601_v1  ;;  %1467 = vmatprep.subr.bf16.mxu1 %v1601_v1  ;;  %v1586_v5 = vld [vmem:[%s1652_s27 + $0x1e0] ss:$8 sps:$4 sm:$0xff]   ;;  %v1589_v7 = vld [vmem:[%s1652_s27 + $0x1f4] ss:$8 sps:$4 sm:$0xff]   ;;  %v1591_v8 = vld [vmem:[%s1652_s27 + $0xf0] ss:$8 sps:$4 sm:$0xff]  }
  0x25   : > { %739 = vmatpush1.bf16.msra.mxu0 %v1494_v9  ;;  %1476 = vmatpush1.bf16.msra.mxu1 %v1494_v9  ;;  %v1592_v9 = vld [vmem:[%s1652_s27 + $0x1f0] ss:$8 sps:$4 sm:$0xff]  }
  0x26   : > { %740 = vmatprep.subr.bf16.mxu0 %v1601_v1  ;;  %1468 = vmatprep.subr.bf16.mxu1 %v1601_v1 }
  0x29   : > { %741 = vmatpush1.bf16.msra.mxu0 %v1495_v10  ;;  %1477 = vmatpush1.bf16.msra.mxu1 %v1495_v10  ;;  %v1771_v10 = vld [vmem:[%s2046_s2] ss:$0 sm:$0xff] }
  0x2a   : > { %756 = vmatprep.subr.bf16.mxu0 %v1601_v1  ;;  %1469 = vmatprep.subr.bf16.mxu1 %v1601_v1  ;;  %v1580_v1 = vld [vmem:[%s1652_s27 + $0x1d0] ss:$8 sps:$4 sm:$0xff]  }
  0x2d   : > { %757 = vmatpush2.bf16.msra.mxu0 %v1496_v11  ;;  %1478 = vmatpush2.bf16.msra.mxu1 %v1496_v11 }
  0x30   : > { %759 = vmatmul.mubr.bf16.vlgmr.msra.gmra.mxu0 %v1497_v12  ;;  %887 = vmatmul.mubr.bf16.vlgmr.msra.gmra.mxu1 %v1500_v13  ;;  %v1776_v12 = vld [vmem:[%s2047_s3] ss:$0 sm:$0xff] }
  0x31   : > { %1425 = vmatprep.mubr.msk.bf16.mxu0 %vm629_vm0, %v1503_v14  ;;  %1441 = vmatprep.mubr.msk.bf16.mxu1 %vm629_vm0, %v1505_v15 }
  0x38   : > { %767 = vmatmul.mubr.bf16.gmra.mxu0 %v1507_v16  ;;  %895 = vmatmul.mubr.bf16.gmra.mxu1 %v1508_v17 }
  0x39   : > { %1426 = vmatprep.mubr.msk.bf16.mxu0 %vm629_vm0, %v1509_v18  ;;  %1442 = vmatprep.mubr.msk.bf16.mxu1 %vm629_vm0, %v1511_v19 }
  0x40   : > { %775 = vmatmul.mubr.bf16.gmra.mxu0 %v1513_v20  ;;  %903 = vmatmul.mubr.bf16.gmra.mxu1 %v1514_v21 }
  0x41   : > { %1427 = vmatprep.mubr.msk.bf16.mxu0 %vm629_vm0, %v1515_v22  ;;  %1443 = vmatprep.mubr.msk.bf16.mxu1 %vm629_vm0, %v1517_v23 }
  0x48   : > { %783 = vmatmul.mubr.bf16.gmra.mxu0 %v1519_v24  ;;  %911 = vmatmul.mubr.bf16.gmra.mxu1 %v1520_v25 }
  0x49   : > { %1428 = vmatprep.mubr.msk.bf16.mxu0 %vm629_vm0, %v1521_v26  ;;  %1444 = vmatprep.mubr.msk.bf16.mxu1 %vm629_vm0, %v1523_v27 }
  0x50   : > { %791 = vmatmul.mubr.bf16.gmra.mxu0 %v1525_v28  ;;  %919 = vmatmul.mubr.bf16.gmra.mxu1 %v1526_v29 }
  0x51   : > { %1429 = vmatprep.mubr.msk.bf16.mxu0 %vm629_vm0, %v1527_v30  ;;  %1445 = vmatprep.mubr.msk.bf16.mxu1 %vm629_vm0, %v1529_v31 }
  0x58   : > { %799 = vmatmul.mubr.bf16.gmra.mxu0 %v1531_v32  ;;  %927 = vmatmul.mubr.bf16.gmra.mxu1 %v1532_v33 }
  0x59   : > { %1430 = vmatprep.mubr.msk.bf16.mxu0 %vm629_vm0, %v1533_v34  ;;  %1446 = vmatprep.mubr.msk.bf16.mxu1 %vm629_vm0, %v1535_v35 }
  0x60   : > { %807 = vmatmul.mubr.bf16.gmra.mxu0 %v1537_v36  ;;  %935 = vmatmul.mubr.bf16.gmra.mxu1 %v1538_v37 }
  0x61   : > { %1431 = vmatprep.mubr.msk.bf16.mxu0 %vm629_vm0, %v1539_v38  ;;  %1447 = vmatprep.mubr.msk.bf16.mxu1 %vm629_vm0, %v1541_v39 }
  0x68   : > { %815 = vmatmul.mubr.bf16.gmra.mxu0 %v1543_v40  ;;  %943 = vmatmul.mubr.bf16.gmra.mxu1 %v1544_v41 }
  0x69   : > { %1432 = vmatprep.mubr.msk.bf16.mxu0 %vm629_vm0, %v1545_v42  ;;  %1448 = vmatprep.mubr.msk.bf16.mxu1 %vm629_vm0, %v1547_v43 }
  0x70   : > { %823 = vmatmul.mubr.bf16.gmra.mxu0 %v1549_v44  ;;  %951 = vmatmul.mubr.bf16.gmra.mxu1 %v1550_v45 }
  0x71   : > { %1433 = vmatprep.mubr.msk.bf16.mxu0 %vm629_vm0, %v1551_v46  ;;  %1449 = vmatprep.mubr.msk.bf16.mxu1 %vm629_vm0, %v1553_v47 }
  0x78   : > { %831 = vmatmul.mubr.bf16.gmra.mxu0 %v1555_v48  ;;  %959 = vmatmul.mubr.bf16.gmra.mxu1 %v1556_v49 }
  0x79   : > { %1434 = vmatprep.mubr.msk.bf16.mxu0 %vm629_vm0, %v1557_v50  ;;  %1450 = vmatprep.mubr.msk.bf16.mxu1 %vm629_vm0, %v1559_v51 }
  0x80   : > { %839 = vmatmul.mubr.bf16.gmra.mxu0 %v1561_v52  ;;  %967 = vmatmul.mubr.bf16.gmra.mxu1 %v1562_v53 }
  0x81   : > { %1435 = vmatprep.mubr.msk.bf16.mxu0 %vm629_vm0, %v1563_v54  ;;  %1451 = vmatprep.mubr.msk.bf16.mxu1 %vm629_vm0, %v1565_v55 }
  0x88   : > { %847 = vmatmul.mubr.bf16.gmra.mxu0 %v1567_v56  ;;  %975 = vmatmul.mubr.bf16.gmra.mxu1 %v1568_v57 }
  0x89   : > { %1436 = vmatprep.mubr.msk.bf16.mxu0 %vm629_vm0, %v1569_v58  ;;  %1452 = vmatprep.mubr.msk.bf16.mxu1 %vm629_vm0, %v1571_v59 }
  0x90   : > { %855 = vmatmul.mubr.bf16.gmra.mxu0 %v1573_v60  ;;  %983 = vmatmul.mubr.bf16.gmra.mxu1 %v1574_v61 }
  0x91   : > { %1437 = vmatprep.mubr.msk.bf16.mxu0 %vm629_vm0, %v1575_v62  ;;  %1453 = vmatprep.mubr.msk.bf16.mxu1 %vm629_vm0, %v1577_v63 }
  0x98   : > { %863 = vmatmul.mubr.bf16.gmra.mxu0 %v1579_v0  ;;  %991 = vmatmul.mubr.bf16.gmra.mxu1 %v1580_v1 }
  0x99   : > { %1438 = vmatprep.mubr.msk.bf16.mxu0 %vm629_vm0, %v1581_v2  ;;  %1454 = vmatprep.mubr.msk.bf16.mxu1 %vm629_vm0, %v1583_v3 }
  0xa0   : > { %871 = vmatmul.mubr.bf16.gmra.mxu0 %v1585_v4  ;;  %999 = vmatmul.mubr.bf16.gmra.mxu1 %v1586_v5 }
  0xa1   : > { %1439 = vmatprep.mubr.msk.bf16.mxu0 %vm629_vm0, %v1587_v6  ;;  %1455 = vmatprep.mubr.msk.bf16.mxu1 %vm629_vm0, %v1589_v7 }
  0xa8   : > { %879 = vmatmul.mubr.bf16.gmra.mxu0 %v1591_v8  ;;  %1007 = vmatmul.mubr.bf16.gmra.mxu1 %v1592_v9 }
  0xf0   : > { %v760_v11 = vpop.f32.mrf.mxu0  ;;  %v888_v13 = vpop.f32.mrf.mxu1 }
  0xf1   : > { %v1022_v14 = vmul.f32 %v1771_v10, %v760_v11  ;;  %v1054_v15 = vmul.f32 %v1771_v10, %v888_v13 }
  0xf2   : > { %v762_v16 = vpop.f32.mrf.mxu0  ;;  %v890_v17 = vpop.f32.mrf.mxu1 }
  0xf3   : > { %v1093_v18 = vadd.f32 %v1776_v12, %v1022_v14  ;;  %v1125_v19 = vadd.f32 %v1776_v12, %v1054_v15 }
  0xf4   : > { %v763_v20 = vpop.f32.mrf.mxu0  ;;  %v891_v21 = vpop.f32.mrf.mxu1 }
  0xf5   : > { %v1157_v22 = vmax.f32 %v1093_v18, 0.0  ;;  %v1189_v23 = vmax.f32 %v1125_v19, 0.0  ;;  %v1023_v24 = vmul.f32 %v1771_v10, %v763_v20  ;;  %v1055_v25 = vmul.f32 %v1771_v10, %v891_v21 }
  0xf6   : > { %v765_v26 = vpop.f32.mrf.mxu0  ;;  %v893_v27 = vpop.f32.mrf.mxu1 }
  0xf7   : > { %1221 = vst.msk [vmem:[%s1787_s22] sm:$0xff] %vm629_vm0, %v1157_v22  ;;  %1253 = vst.msk [vmem:[%s1787_s22 + $0x100] sm:$0xff] %vm629_vm0, %v1189_v23  ;;  %v1094_v28 = vadd.f32 %v1776_v12, %v1023_v24  ;;  %v1126_v29 = vadd.f32 %v1776_v12, %v1055_v25 }
  0xf8   : > { %v768_v30 = vpop.f32.mrf.mxu0  ;;  %v896_v31 = vpop.f32.mrf.mxu1 }
  0xf9   : > { %v1158_v32 = vmax.f32 %v1094_v28, 0.0  ;;  %v1190_v33 = vmax.f32 %v1126_v29, 0.0  ;;  %v1024_v34 = vmul.f32 %v1771_v10, %v768_v30  ;;  %v1056_v35 = vmul.f32 %v1771_v10, %v896_v31 }
  0xfa   : > { %v770_v36 = vpop.f32.mrf.mxu0  ;;  %v898_v37 = vpop.f32.mrf.mxu1 }
  0xfb   : > { %1222 = vst.msk [vmem:[%s1787_s22 + $0x8] sm:$0xff] %vm629_vm0, %v1158_v32  ;;  %1254 = vst.msk [vmem:[%s1787_s22 + $0x108] sm:$0xff] %vm629_vm0, %v1190_v33  ;;  %v1095_v38 = vadd.f32 %v1776_v12, %v1024_v34  ;;  %v1127_v39 = vadd.f32 %v1776_v12, %v1056_v35 }
  0xfc   : > { %v771_v40 = vpop.f32.mrf.mxu0  ;;  %v899_v41 = vpop.f32.mrf.mxu1 }
  0xfd   : > { %v1159_v42 = vmax.f32 %v1095_v38, 0.0  ;;  %v1191_v43 = vmax.f32 %v1127_v39, 0.0  ;;  %v1025_v44 = vmul.f32 %v1771_v10, %v771_v40  ;;  %v1057_v45 = vmul.f32 %v1771_v10, %v899_v41 }
  0xfe   : > { %v773_v46 = vpop.f32.mrf.mxu0  ;;  %v901_v47 = vpop.f32.mrf.mxu1 }
  0xff   : > { %1223 = vst.msk [vmem:[%s1787_s22 + $0x10] sm:$0xff] %vm629_vm0, %v1159_v42  ;;  %1255 = vst.msk [vmem:[%s1787_s22 + $0x110] sm:$0xff] %vm629_vm0, %v1191_v43  ;;  %v1096_v48 = vadd.f32 %v1776_v12, %v1025_v44  ;;  %v1128_v49 = vadd.f32 %v1776_v12, %v1057_v45 }
 0x100   : > { %v776_v50 = vpop.f32.mrf.mxu0  ;;  %v904_v51 = vpop.f32.mrf.mxu1 }
 0x101   : > { %v1160_v52 = vmax.f32 %v1096_v48, 0.0  ;;  %v1192_v53 = vmax.f32 %v1128_v49, 0.0  ;;  %v1026_v54 = vmul.f32 %v1771_v10, %v776_v50  ;;  %v1058_v55 = vmul.f32 %v1771_v10, %v904_v51 }
 0x102   : > { %v778_v56 = vpop.f32.mrf.mxu0  ;;  %v906_v57 = vpop.f32.mrf.mxu1 }
 0x103   : > { %1224 = vst.msk [vmem:[%s1787_s22 + $0x18] sm:$0xff] %vm629_vm0, %v1160_v52  ;;  %1256 = vst.msk [vmem:[%s1787_s22 + $0x118] sm:$0xff] %vm629_vm0, %v1192_v53  ;;  %v1097_v58 = vadd.f32 %v1776_v12, %v1026_v54  ;;  %v1129_v59 = vadd.f32 %v1776_v12, %v1058_v55 }
 0x104   : > { %v779_v60 = vpop.f32.mrf.mxu0  ;;  %v907_v61 = vpop.f32.mrf.mxu1 }
 0x105   : > { %v1161_v62 = vmax.f32 %v1097_v58, 0.0  ;;  %v1193_v63 = vmax.f32 %v1129_v59, 0.0  ;;  %v1027_v0 = vmul.f32 %v1771_v10, %v779_v60  ;;  %v1059_v1 = vmul.f32 %v1771_v10, %v907_v61 }
 0x106   : > { %v781_v2 = vpop.f32.mrf.mxu0  ;;  %v909_v3 = vpop.f32.mrf.mxu1 }
 0x107   : > { %1225 = vst.msk [vmem:[%s1787_s22 + $0x20] sm:$0xff] %vm629_vm0, %v1161_v62  ;;  %1257 = vst.msk [vmem:[%s1787_s22 + $0x120] sm:$0xff] %vm629_vm0, %v1193_v63  ;;  %v1098_v4 = vadd.f32 %v1776_v12, %v1027_v0  ;;  %v1130_v5 = vadd.f32 %v1776_v12, %v1059_v1 }
 0x108   : > { %v784_v6 = vpop.f32.mrf.mxu0  ;;  %v912_v7 = vpop.f32.mrf.mxu1 }
 0x109   : > { %v1162_v8 = vmax.f32 %v1098_v4, 0.0  ;;  %v1194_v9 = vmax.f32 %v1130_v5, 0.0  ;;  %v1028_v11 = vmul.f32 %v1771_v10, %v784_v6  ;;  %v1060_v13 = vmul.f32 %v1771_v10, %v912_v7 }
 0x10a   : > { %v786_v14 = vpop.f32.mrf.mxu0  ;;  %v914_v15 = vpop.f32.mrf.mxu1 }
 0x10b   : > { %1226 = vst.msk [vmem:[%s1787_s22 + $0x28] sm:$0xff] %vm629_vm0, %v1162_v8  ;;  %1258 = vst.msk [vmem:[%s1787_s22 + $0x128] sm:$0xff] %vm629_vm0, %v1194_v9  ;;  %v1099_v16 = vadd.f32 %v1776_v12, %v1028_v11  ;;  %v1131_v17 = vadd.f32 %v1776_v12, %v1060_v13 }
 0x10c   : > { %v787_v18 = vpop.f32.mrf.mxu0  ;;  %v915_v19 = vpop.f32.mrf.mxu1 }
 0x10d   : > { %v1163_v20 = vmax.f32 %v1099_v16, 0.0  ;;  %v1195_v21 = vmax.f32 %v1131_v17, 0.0  ;;  %v1029_v22 = vmul.f32 %v1771_v10, %v787_v18  ;;  %v1061_v23 = vmul.f32 %v1771_v10, %v915_v19 }
 0x10e   : > { %v789_v24 = vpop.f32.mrf.mxu0  ;;  %v917_v25 = vpop.f32.mrf.mxu1 }
 0x10f   : > { %1227 = vst.msk [vmem:[%s1787_s22 + $0x30] sm:$0xff] %vm629_vm0, %v1163_v20  ;;  %1259 = vst.msk [vmem:[%s1787_s22 + $0x130] sm:$0xff] %vm629_vm0, %v1195_v21  ;;  %v1100_v26 = vadd.f32 %v1776_v12, %v1029_v22  ;;  %v1132_v27 = vadd.f32 %v1776_v12, %v1061_v23 }
 0x110   : > { %v792_v28 = vpop.f32.mrf.mxu0  ;;  %v920_v29 = vpop.f32.mrf.mxu1 }
 0x111   : > { %v1164_v30 = vmax.f32 %v1100_v26, 0.0  ;;  %v1196_v31 = vmax.f32 %v1132_v27, 0.0  ;;  %v1030_v32 = vmul.f32 %v1771_v10, %v792_v28  ;;  %v1062_v33 = vmul.f32 %v1771_v10, %v920_v29 }
 0x112   : > { %v794_v34 = vpop.f32.mrf.mxu0  ;;  %v922_v35 = vpop.f32.mrf.mxu1 }
 0x113   : > { %1228 = vst.msk [vmem:[%s1787_s22 + $0x38] sm:$0xff] %vm629_vm0, %v1164_v30  ;;  %1260 = vst.msk [vmem:[%s1787_s22 + $0x138] sm:$0xff] %vm629_vm0, %v1196_v31  ;;  %v1101_v36 = vadd.f32 %v1776_v12, %v1030_v32  ;;  %v1133_v37 = vadd.f32 %v1776_v12, %v1062_v33 }
 0x114   : > { %v795_v38 = vpop.f32.mrf.mxu0  ;;  %v923_v39 = vpop.f32.mrf.mxu1 }
 0x115   : > { %v1165_v40 = vmax.f32 %v1101_v36, 0.0  ;;  %v1197_v41 = vmax.f32 %v1133_v37, 0.0  ;;  %v1031_v42 = vmul.f32 %v1771_v10, %v795_v38  ;;  %v1063_v43 = vmul.f32 %v1771_v10, %v923_v39 }
 0x116   : > { %v797_v44 = vpop.f32.mrf.mxu0  ;;  %v925_v45 = vpop.f32.mrf.mxu1 }
 0x117   : > { %1229 = vst.msk [vmem:[%s1787_s22 + $0x40] sm:$0xff] %vm629_vm0, %v1165_v40  ;;  %1261 = vst.msk [vmem:[%s1787_s22 + $0x140] sm:$0xff] %vm629_vm0, %v1197_v41  ;;  %v1102_v46 = vadd.f32 %v1776_v12, %v1031_v42  ;;  %v1134_v47 = vadd.f32 %v1776_v12, %v1063_v43 }
 0x118   : > { %v800_v48 = vpop.f32.mrf.mxu0  ;;  %v928_v49 = vpop.f32.mrf.mxu1 }
 0x119   : > { %v1166_v50 = vmax.f32 %v1102_v46, 0.0  ;;  %v1198_v51 = vmax.f32 %v1134_v47, 0.0  ;;  %v1032_v52 = vmul.f32 %v1771_v10, %v800_v48  ;;  %v1064_v53 = vmul.f32 %v1771_v10, %v928_v49 }
 0x11a   : > { %v802_v54 = vpop.f32.mrf.mxu0  ;;  %v930_v55 = vpop.f32.mrf.mxu1 }
 0x11b   : > { %1230 = vst.msk [vmem:[%s1787_s22 + $0x48] sm:$0xff] %vm629_vm0, %v1166_v50  ;;  %1262 = vst.msk [vmem:[%s1787_s22 + $0x148] sm:$0xff] %vm629_vm0, %v1198_v51  ;;  %v1103_v56 = vadd.f32 %v1776_v12, %v1032_v52  ;;  %v1135_v57 = vadd.f32 %v1776_v12, %v1064_v53 }
 0x11c   : > { %v803_v58 = vpop.f32.mrf.mxu0  ;;  %v931_v59 = vpop.f32.mrf.mxu1 }
 0x11d   : > { %v1167_v60 = vmax.f32 %v1103_v56, 0.0  ;;  %v1199_v61 = vmax.f32 %v1135_v57, 0.0  ;;  %v1033_v62 = vmul.f32 %v1771_v10, %v803_v58  ;;  %v1065_v63 = vmul.f32 %v1771_v10, %v931_v59 }
 0x11e   : > { %v805_v0 = vpop.f32.mrf.mxu0  ;;  %v933_v1 = vpop.f32.mrf.mxu1 }
 0x11f   : > { %1231 = vst.msk [vmem:[%s1787_s22 + $0x50] sm:$0xff] %vm629_vm0, %v1167_v60  ;;  %1263 = vst.msk [vmem:[%s1787_s22 + $0x150] sm:$0xff] %vm629_vm0, %v1199_v61  ;;  %v1104_v2 = vadd.f32 %v1776_v12, %v1033_v62  ;;  %v1136_v3 = vadd.f32 %v1776_v12, %v1065_v63 }
 0x120   : > { %v808_v4 = vpop.f32.mrf.mxu0  ;;  %v936_v5 = vpop.f32.mrf.mxu1 }
 0x121   : > { %v1168_v6 = vmax.f32 %v1104_v2, 0.0  ;;  %v1200_v7 = vmax.f32 %v1136_v3, 0.0  ;;  %v1034_v8 = vmul.f32 %v1771_v10, %v808_v4  ;;  %v1066_v9 = vmul.f32 %v1771_v10, %v936_v5 }
 0x122   : > { %v810_v11 = vpop.f32.mrf.mxu0  ;;  %v938_v13 = vpop.f32.mrf.mxu1 }
 0x123   : > { %1232 = vst.msk [vmem:[%s1787_s22 + $0x58] sm:$0xff] %vm629_vm0, %v1168_v6  ;;  %1264 = vst.msk [vmem:[%s1787_s22 + $0x158] sm:$0xff] %vm629_vm0, %v1200_v7  ;;  %v1105_v14 = vadd.f32 %v1776_v12, %v1034_v8  ;;  %v1137_v15 = vadd.f32 %v1776_v12, %v1066_v9 }
 0x124   : > { %v811_v16 = vpop.f32.mrf.mxu0  ;;  %v939_v17 = vpop.f32.mrf.mxu1 }
 0x125   : > { %v1169_v18 = vmax.f32 %v1105_v14, 0.0  ;;  %v1201_v19 = vmax.f32 %v1137_v15, 0.0  ;;  %v1035_v20 = vmul.f32 %v1771_v10, %v811_v16  ;;  %v1067_v21 = vmul.f32 %v1771_v10, %v939_v17 }
 0x126   : > { %v813_v22 = vpop.f32.mrf.mxu0  ;;  %v941_v23 = vpop.f32.mrf.mxu1 }
 0x127   : > { %1233 = vst.msk [vmem:[%s1787_s22 + $0x60] sm:$0xff] %vm629_vm0, %v1169_v18  ;;  %1265 = vst.msk [vmem:[%s1787_s22 + $0x160] sm:$0xff] %vm629_vm0, %v1201_v19  ;;  %v1106_v24 = vadd.f32 %v1776_v12, %v1035_v20  ;;  %v1138_v25 = vadd.f32 %v1776_v12, %v1067_v21 }
 0x128   : > { %v816_v26 = vpop.f32.mrf.mxu0  ;;  %v944_v27 = vpop.f32.mrf.mxu1 }
 0x129   : > { %v1170_v28 = vmax.f32 %v1106_v24, 0.0  ;;  %v1202_v29 = vmax.f32 %v1138_v25, 0.0  ;;  %v1036_v30 = vmul.f32 %v1771_v10, %v816_v26  ;;  %v1068_v31 = vmul.f32 %v1771_v10, %v944_v27 }
 0x12a   : > { %v818_v32 = vpop.f32.mrf.mxu0  ;;  %v946_v33 = vpop.f32.mrf.mxu1 }
 0x12b   : > { %1234 = vst.msk [vmem:[%s1787_s22 + $0x68] sm:$0xff] %vm629_vm0, %v1170_v28  ;;  %1266 = vst.msk [vmem:[%s1787_s22 + $0x168] sm:$0xff] %vm629_vm0, %v1202_v29  ;;  %v1107_v34 = vadd.f32 %v1776_v12, %v1036_v30  ;;  %v1139_v35 = vadd.f32 %v1776_v12, %v1068_v31 }
 0x12c   : > { %v819_v36 = vpop.f32.mrf.mxu0  ;;  %v947_v37 = vpop.f32.mrf.mxu1 }
 0x12d   : > { %v1171_v38 = vmax.f32 %v1107_v34, 0.0  ;;  %v1203_v39 = vmax.f32 %v1139_v35, 0.0  ;;  %v1037_v40 = vmul.f32 %v1771_v10, %v819_v36  ;;  %v1069_v41 = vmul.f32 %v1771_v10, %v947_v37 }
 0x12e   : > { %v821_v42 = vpop.f32.mrf.mxu0  ;;  %v949_v43 = vpop.f32.mrf.mxu1 }
 0x12f   : > { %1235 = vst.msk [vmem:[%s1787_s22 + $0x70] sm:$0xff] %vm629_vm0, %v1171_v38  ;;  %1267 = vst.msk [vmem:[%s1787_s22 + $0x170] sm:$0xff] %vm629_vm0, %v1203_v39  ;;  %v1108_v44 = vadd.f32 %v1776_v12, %v1037_v40  ;;  %v1140_v45 = vadd.f32 %v1776_v12, %v1069_v41 }
 0x130   : > { %v824_v46 = vpop.f32.mrf.mxu0  ;;  %v952_v47 = vpop.f32.mrf.mxu1 }
 0x131   : > { %v1172_v48 = vmax.f32 %v1108_v44, 0.0  ;;  %v1204_v49 = vmax.f32 %v1140_v45, 0.0  ;;  %v1038_v50 = vmul.f32 %v1771_v10, %v824_v46  ;;  %v1070_v51 = vmul.f32 %v1771_v10, %v952_v47 }
 0x132   : > { %v826_v52 = vpop.f32.mrf.mxu0  ;;  %v954_v53 = vpop.f32.mrf.mxu1 }
 0x133   : > { %1236 = vst.msk [vmem:[%s1787_s22 + $0x78] sm:$0xff] %vm629_vm0, %v1172_v48  ;;  %1268 = vst.msk [vmem:[%s1787_s22 + $0x178] sm:$0xff] %vm629_vm0, %v1204_v49  ;;  %v1109_v54 = vadd.f32 %v1776_v12, %v1038_v50  ;;  %v1141_v55 = vadd.f32 %v1776_v12, %v1070_v51 }
 0x134   : > { %v827_v56 = vpop.f32.mrf.mxu0  ;;  %v955_v57 = vpop.f32.mrf.mxu1 }
 0x135   : > { %v1173_v58 = vmax.f32 %v1109_v54, 0.0  ;;  %v1205_v59 = vmax.f32 %v1141_v55, 0.0  ;;  %v1039_v60 = vmul.f32 %v1771_v10, %v827_v56  ;;  %v1071_v61 = vmul.f32 %v1771_v10, %v955_v57 }
 0x136   : > { %v829_v62 = vpop.f32.mrf.mxu0  ;;  %v957_v63 = vpop.f32.mrf.mxu1 }
 0x137   : > { %1237 = vst.msk [vmem:[%s1787_s22 + $0x80] sm:$0xff] %vm629_vm0, %v1173_v58  ;;  %1269 = vst.msk [vmem:[%s1787_s22 + $0x180] sm:$0xff] %vm629_vm0, %v1205_v59  ;;  %v1110_v0 = vadd.f32 %v1776_v12, %v1039_v60  ;;  %v1142_v1 = vadd.f32 %v1776_v12, %v1071_v61 }
 0x138   : > { %v832_v2 = vpop.f32.mrf.mxu0  ;;  %v960_v3 = vpop.f32.mrf.mxu1 }
 0x139   : > { %v1174_v4 = vmax.f32 %v1110_v0, 0.0  ;;  %v1206_v5 = vmax.f32 %v1142_v1, 0.0  ;;  %v1040_v6 = vmul.f32 %v1771_v10, %v832_v2  ;;  %v1072_v7 = vmul.f32 %v1771_v10, %v960_v3 }
 0x13a   : > { %v834_v8 = vpop.f32.mrf.mxu0  ;;  %v962_v9 = vpop.f32.mrf.mxu1 }
 0x13b   : > { %1238 = vst.msk [vmem:[%s1787_s22 + $0x88] sm:$0xff] %vm629_vm0, %v1174_v4  ;;  %1270 = vst.msk [vmem:[%s1787_s22 + $0x188] sm:$0xff] %vm629_vm0, %v1206_v5  ;;  %v1111_v11 = vadd.f32 %v1776_v12, %v1040_v6  ;;  %v1143_v13 = vadd.f32 %v1776_v12, %v1072_v7 }
 0x13c   : > { %v835_v14 = vpop.f32.mrf.mxu0  ;;  %v963_v15 = vpop.f32.mrf.mxu1 }
 0x13d   : > { %v1175_v16 = vmax.f32 %v1111_v11, 0.0  ;;  %v1207_v17 = vmax.f32 %v1143_v13, 0.0  ;;  %v1041_v18 = vmul.f32 %v1771_v10, %v835_v14  ;;  %v1073_v19 = vmul.f32 %v1771_v10, %v963_v15 }
 0x13e   : > { %v837_v20 = vpop.f32.mrf.mxu0  ;;  %v965_v21 = vpop.f32.mrf.mxu1 }
 0x13f   : > { %1239 = vst.msk [vmem:[%s1787_s22 + $0x90] sm:$0xff] %vm629_vm0, %v1175_v16  ;;  %1271 = vst.msk [vmem:[%s1787_s22 + $0x190] sm:$0xff] %vm629_vm0, %v1207_v17  ;;  %v1112_v22 = vadd.f32 %v1776_v12, %v1041_v18  ;;  %v1144_v23 = vadd.f32 %v1776_v12, %v1073_v19 }
 0x140   : > { %v840_v24 = vpop.f32.mrf.mxu0  ;;  %v968_v25 = vpop.f32.mrf.mxu1 }
 0x141   : > { %v1176_v26 = vmax.f32 %v1112_v22, 0.0  ;;  %v1208_v27 = vmax.f32 %v1144_v23, 0.0  ;;  %v1042_v28 = vmul.f32 %v1771_v10, %v840_v24  ;;  %v1074_v29 = vmul.f32 %v1771_v10, %v968_v25 }
 0x142   : > { %v842_v30 = vpop.f32.mrf.mxu0  ;;  %v970_v31 = vpop.f32.mrf.mxu1 }
 0x143   : > { %1240 = vst.msk [vmem:[%s1787_s22 + $0x98] sm:$0xff] %vm629_vm0, %v1176_v26  ;;  %1272 = vst.msk [vmem:[%s1787_s22 + $0x198] sm:$0xff] %vm629_vm0, %v1208_v27  ;;  %v1113_v32 = vadd.f32 %v1776_v12, %v1042_v28  ;;  %v1145_v33 = vadd.f32 %v1776_v12, %v1074_v29 }
 0x144   : > { %v843_v34 = vpop.f32.mrf.mxu0  ;;  %v971_v35 = vpop.f32.mrf.mxu1 }
 0x145   : > { %v1177_v36 = vmax.f32 %v1113_v32, 0.0  ;;  %v1209_v37 = vmax.f32 %v1145_v33, 0.0  ;;  %v1043_v38 = vmul.f32 %v1771_v10, %v843_v34  ;;  %v1075_v39 = vmul.f32 %v1771_v10, %v971_v35 }
 0x146   : > { %v845_v40 = vpop.f32.mrf.mxu0  ;;  %v973_v41 = vpop.f32.mrf.mxu1 }
 0x147   : > { %1241 = vst.msk [vmem:[%s1787_s22 + $0xa0] sm:$0xff] %vm629_vm0, %v1177_v36  ;;  %1273 = vst.msk [vmem:[%s1787_s22 + $0x1a0] sm:$0xff] %vm629_vm0, %v1209_v37  ;;  %v1114_v42 = vadd.f32 %v1776_v12, %v1043_v38  ;;  %v1146_v43 = vadd.f32 %v1776_v12, %v1075_v39 }
 0x148   : > { %v848_v44 = vpop.f32.mrf.mxu0  ;;  %v976_v45 = vpop.f32.mrf.mxu1 }
 0x149   : > { %v1178_v46 = vmax.f32 %v1114_v42, 0.0  ;;  %v1210_v47 = vmax.f32 %v1146_v43, 0.0  ;;  %v1044_v48 = vmul.f32 %v1771_v10, %v848_v44  ;;  %v1076_v49 = vmul.f32 %v1771_v10, %v976_v45 }
 0x14a   : > { %v850_v50 = vpop.f32.mrf.mxu0  ;;  %v978_v51 = vpop.f32.mrf.mxu1 }
 0x14b   : > { %1242 = vst.msk [vmem:[%s1787_s22 + $0xa8] sm:$0xff] %vm629_vm0, %v1178_v46  ;;  %1274 = vst.msk [vmem:[%s1787_s22 + $0x1a8] sm:$0xff] %vm629_vm0, %v1210_v47  ;;  %v1115_v52 = vadd.f32 %v1776_v12, %v1044_v48  ;;  %v1147_v53 = vadd.f32 %v1776_v12, %v1076_v49 }
 0x14c   : > { %v851_v54 = vpop.f32.mrf.mxu0  ;;  %v979_v55 = vpop.f32.mrf.mxu1 }
 0x14d   : > { %v1179_v56 = vmax.f32 %v1115_v52, 0.0  ;;  %v1211_v57 = vmax.f32 %v1147_v53, 0.0  ;;  %v1045_v58 = vmul.f32 %v1771_v10, %v851_v54  ;;  %v1077_v59 = vmul.f32 %v1771_v10, %v979_v55 }
 0x14e   : > { %v853_v60 = vpop.f32.mrf.mxu0  ;;  %v981_v61 = vpop.f32.mrf.mxu1 }
 0x14f   : > { %1243 = vst.msk [vmem:[%s1787_s22 + $0xb0] sm:$0xff] %vm629_vm0, %v1179_v56  ;;  %1275 = vst.msk [vmem:[%s1787_s22 + $0x1b0] sm:$0xff] %vm629_vm0, %v1211_v57  ;;  %v1116_v62 = vadd.f32 %v1776_v12, %v1045_v58  ;;  %v1148_v63 = vadd.f32 %v1776_v12, %v1077_v59 }
 0x150   : > { %v856_v0 = vpop.f32.mrf.mxu0  ;;  %v984_v1 = vpop.f32.mrf.mxu1 }
 0x151   : > { %v1180_v2 = vmax.f32 %v1116_v62, 0.0  ;;  %v1212_v3 = vmax.f32 %v1148_v63, 0.0  ;;  %v1046_v4 = vmul.f32 %v1771_v10, %v856_v0  ;;  %v1078_v5 = vmul.f32 %v1771_v10, %v984_v1 }
 0x152   : > { %v858_v6 = vpop.f32.mrf.mxu0  ;;  %v986_v7 = vpop.f32.mrf.mxu1 }
 0x153   : > { %1244 = vst.msk [vmem:[%s1787_s22 + $0xb8] sm:$0xff] %vm629_vm0, %v1180_v2  ;;  %1276 = vst.msk [vmem:[%s1787_s22 + $0x1b8] sm:$0xff] %vm629_vm0, %v1212_v3  ;;  %v1117_v8 = vadd.f32 %v1776_v12, %v1046_v4  ;;  %v1149_v9 = vadd.f32 %v1776_v12, %v1078_v5 }
 0x154   : > { %v859_v11 = vpop.f32.mrf.mxu0  ;;  %v987_v13 = vpop.f32.mrf.mxu1 }
 0x155   : > { %v1181_v14 = vmax.f32 %v1117_v8, 0.0  ;;  %v1213_v15 = vmax.f32 %v1149_v9, 0.0  ;;  %v1047_v16 = vmul.f32 %v1771_v10, %v859_v11  ;;  %v1079_v17 = vmul.f32 %v1771_v10, %v987_v13 }
 0x156   : > { %v861_v18 = vpop.f32.mrf.mxu0  ;;  %v989_v19 = vpop.f32.mrf.mxu1 }
 0x157   : > { %1245 = vst.msk [vmem:[%s1787_s22 + $0xc0] sm:$0xff] %vm629_vm0, %v1181_v14  ;;  %1277 = vst.msk [vmem:[%s1787_s22 + $0x1c0] sm:$0xff] %vm629_vm0, %v1213_v15  ;;  %v1118_v20 = vadd.f32 %v1776_v12, %v1047_v16  ;;  %v1150_v21 = vadd.f32 %v1776_v12, %v1079_v17 }
 0x158   : > { %v864_v22 = vpop.f32.mrf.mxu0  ;;  %v992_v23 = vpop.f32.mrf.mxu1 }
 0x159   : > { %v1182_v24 = vmax.f32 %v1118_v20, 0.0  ;;  %v1214_v25 = vmax.f32 %v1150_v21, 0.0  ;;  %v1048_v26 = vmul.f32 %v1771_v10, %v864_v22  ;;  %v1080_v27 = vmul.f32 %v1771_v10, %v992_v23 }
 0x15a   : > { %v866_v28 = vpop.f32.mrf.mxu0  ;;  %v994_v29 = vpop.f32.mrf.mxu1 }
 0x15b   : > { %1246 = vst.msk [vmem:[%s1787_s22 + $0xc8] sm:$0xff] %vm629_vm0, %v1182_v24  ;;  %1278 = vst.msk [vmem:[%s1787_s22 + $0x1c8] sm:$0xff] %vm629_vm0, %v1214_v25  ;;  %v1119_v30 = vadd.f32 %v1776_v12, %v1048_v26  ;;  %v1151_v31 = vadd.f32 %v1776_v12, %v1080_v27 }
 0x15c   : > { %v867_v32 = vpop.f32.mrf.mxu0  ;;  %v995_v33 = vpop.f32.mrf.mxu1 }
 0x15d   : > { %v1183_v34 = vmax.f32 %v1119_v30, 0.0  ;;  %v1215_v35 = vmax.f32 %v1151_v31, 0.0  ;;  %v1049_v36 = vmul.f32 %v1771_v10, %v867_v32  ;;  %v1081_v37 = vmul.f32 %v1771_v10, %v995_v33 }
 0x15e   : > { %v869_v38 = vpop.f32.mrf.mxu0  ;;  %v997_v39 = vpop.f32.mrf.mxu1 }
 0x15f   : > { %1247 = vst.msk [vmem:[%s1787_s22 + $0xd0] sm:$0xff] %vm629_vm0, %v1183_v34  ;;  %1279 = vst.msk [vmem:[%s1787_s22 + $0x1d0] sm:$0xff] %vm629_vm0, %v1215_v35  ;;  %v1120_v40 = vadd.f32 %v1776_v12, %v1049_v36  ;;  %v1152_v41 = vadd.f32 %v1776_v12, %v1081_v37 }
 0x160   : > { %v872_v42 = vpop.f32.mrf.mxu0  ;;  %v1000_v43 = vpop.f32.mrf.mxu1 }
 0x161   : > { %v1184_v44 = vmax.f32 %v1120_v40, 0.0  ;;  %v1216_v45 = vmax.f32 %v1152_v41, 0.0  ;;  %v1050_v46 = vmul.f32 %v1771_v10, %v872_v42  ;;  %v1082_v47 = vmul.f32 %v1771_v10, %v1000_v43 }
 0x162   : > { %v874_v48 = vpop.f32.mrf.mxu0  ;;  %v1002_v49 = vpop.f32.mrf.mxu1 }
 0x163   : > { %1248 = vst.msk [vmem:[%s1787_s22 + $0xd8] sm:$0xff] %vm629_vm0, %v1184_v44  ;;  %1280 = vst.msk [vmem:[%s1787_s22 + $0x1d8] sm:$0xff] %vm629_vm0, %v1216_v45  ;;  %v1121_v50 = vadd.f32 %v1776_v12, %v1050_v46  ;;  %v1153_v51 = vadd.f32 %v1776_v12, %v1082_v47 }
 0x164   : > { %v875_v52 = vpop.f32.mrf.mxu0  ;;  %v1003_v53 = vpop.f32.mrf.mxu1 }
 0x165   : > { %v1185_v54 = vmax.f32 %v1121_v50, 0.0  ;;  %v1217_v55 = vmax.f32 %v1153_v51, 0.0  ;;  %v1051_v56 = vmul.f32 %v1771_v10, %v875_v52  ;;  %v1083_v57 = vmul.f32 %v1771_v10, %v1003_v53 }
 0x166   : > { %v877_v58 = vpop.f32.mrf.mxu0  ;;  %v1005_v59 = vpop.f32.mrf.mxu1 }
 0x167   : > { %1249 = vst.msk [vmem:[%s1787_s22 + $0xe0] sm:$0xff] %vm629_vm0, %v1185_v54  ;;  %1281 = vst.msk [vmem:[%s1787_s22 + $0x1e0] sm:$0xff] %vm629_vm0, %v1217_v55  ;;  %v1122_v60 = vadd.f32 %v1776_v12, %v1051_v56  ;;  %v1154_v61 = vadd.f32 %v1776_v12, %v1083_v57 }
 0x168   : > { %v880_v62 = vpop.f32.mrf.mxu0  ;;  %v1008_v63 = vpop.f32.mrf.mxu1 }
 0x169   : > { %v1186_v0 = vmax.f32 %v1122_v60, 0.0  ;;  %v1218_v1 = vmax.f32 %v1154_v61, 0.0  ;;  %v1052_v2 = vmul.f32 %v1771_v10, %v880_v62  ;;  %v1084_v3 = vmul.f32 %v1771_v10, %v1008_v63 }
 0x16a   : > { %v882_v4 = vpop.f32.mrf.mxu0  ;;  %v1010_v5 = vpop.f32.mrf.mxu1 }
 0x16b   : > { %1250 = vst.msk [vmem:[%s1787_s22 + $0xe8] sm:$0xff] %vm629_vm0, %v1186_v0  ;;  %1282 = vst.msk [vmem:[%s1787_s22 + $0x1e8] sm:$0xff] %vm629_vm0, %v1218_v1  ;;  %v1123_v6 = vadd.f32 %v1776_v12, %v1052_v2  ;;  %v1155_v7 = vadd.f32 %v1776_v12, %v1084_v3 }
 0x16c   : > { %v883_v8 = vpop.f32.mrf.mxu0  ;;  %v1011_v9 = vpop.f32.mrf.mxu1 }
 0x16d   : > { %v1187_v11 = vmax.f32 %v1123_v6, 0.0  ;;  %v1219_v13 = vmax.f32 %v1155_v7, 0.0  ;;  %v1053_v14 = vmul.f32 %v1771_v10, %v883_v8  ;;  %v1085_v15 = vmul.f32 %v1771_v10, %v1011_v9 }
 0x16e   : > { %v885_v16 = vpop.f32.mrf.mxu0  ;;  %v1013_v17 = vpop.f32.mrf.mxu1 }
 0x16f   : > { %1251 = vst.msk [vmem:[%s1787_s22 + $0xf0] sm:$0xff] %vm629_vm0, %v1187_v11  ;;  %1283 = vst.msk [vmem:[%s1787_s22 + $0x1f0] sm:$0xff] %vm629_vm0, %v1219_v13  ;;  %v1124_v18 = vadd.f32 %v1776_v12, %v1053_v14  ;;  %v1156_v19 = vadd.f32 %v1776_v12, %v1085_v15 }
 0x171   : > { %v1188_v20 = vmax.f32 %v1124_v18, 0.0  ;;  %v1220_v21 = vmax.f32 %v1156_v19, 0.0 }
 0x173   : > { %1252 = vst.msk [vmem:[%s1787_s22 + $0xf8] sm:$0xff] %vm629_vm0, %v1188_v20  ;;  %1284 = vst.msk [vmem:[%s1787_s22 + $0x1f8] sm:$0xff] %vm629_vm0, %v1220_v21 }
 0x174 PF: > { %s14_s15 = sadd.s32 1, %s1599_s15  }
 0x175   : > { %p11_p4 = scmp.ge.s32.totalorder %s14_s15, 4  }
 0x177   :  { %13 = sbr.rel (!%p11_p4) target bundleno = 1 (0x1), region = 66 }

// kernel: hdispnet_forward.9
= control target key start
LH: loop header
LB: loop body
LE: loop exit
PB: predicated region body
PF: predicated region fallthrough
CT: control target
= control target key end

     0   :  { %s1823_s18 = smov 0   ;;  %s2307_s0 = inlined_call_operand.vmem [shape: bf16[1024,144], index: 0, kind: input, shape index: {}]   ;;  %s2308_s1 = inlined_call_operand.vmem [shape: bf16[144,16], index: 1, kind: input, shape index: {}]   ;;  %s2309_s2 = inlined_call_operand.vmem [shape: f32[1,16], index: 2, kind: input, shape index: {}]   ;;  %s2310_s3 = inlined_call_operand.vmem [shape: f32[1,16], index: 3, kind: input, shape index: {}]   ;;  %s2311_s4 = inlined_call_operand.vmem [shape: f32[1024,16], index: 4, kind: input, shape index: {}]   ;;  %s2312_s5 = inlined_call_operand.vmem [shape: f32[1024,16], index: 5, kind: output, shape index: {}]  }
   0x1 LB: > { %s1530_s19 = sadd.s32 4294967295, %s1790_s18   ;;  %p1534_p0 = scmp.ge.s32.totalorder %s1790_s18, 1  ;;  %s1790_s18 = sphi %s1823_s18, %s15_s18  }
   0x2   : > { %p200_p1 = scmp.lt.s32.totalorder %s1790_s18, 3 }
   0x4   : > { %p201_p2 = pnand %p1534_p0, %p200_p1 }
   0x5   : > { %s1535_s22 = sshll.u32 (!%p201_p2), %s1530_s19, 6 }
   0x6   : > { %204 = sbr.rel (%p201_p2) target bundleno = 374 (0x176), region = 40  ;;  %p235_p3 = scmp.lt.s32.totalorder (!%p201_p2), %s1535_s22, 127 }
   0xb   : > { %v1679_v0 = vld [vmem:[%s2308_s1 + $0x38] sm:$0xff]   ;;  %v1792_v1 = vmov 0   ;;  %v1680_v2 = vld [vmem:[%s2308_s1 + $0x30] sm:$0xff]   ;;  %s2314_s22 = smov (!%p235_p3, %s1535_s22), 127  ;;  %v1681_v3 = vld [vmem:[%s2308_s1 + $0x28] sm:$0xff]   ;;  %vm678_vm0 = vcmask 130048  }
   0xc   : > { %775 = vmatprep.subr.bf16.mxu0 %v1792_v1  ;;  %1652 = vmatprep.subr.bf16.mxu1 %v1792_v1  ;;  %s1840_s27 = sshll.u32 %s2314_s22, 3  ;;  %v1682_v4 = vld [vmem:[%s2308_s1 + $0x20] sm:$0xff]   ;;  %v1683_v7 = vld [vmem:[%s2308_s1 + $0x18] sm:$0xff]   ;;  %v1684_v8 = vld [vmem:[%s2308_s1 + $0x10] sm:$0xff]  }
   0xd   : > { %776 = vmatpush1.bf16.msra.mxu0 %v1679_v0  ;;  %1661 = vmatpush1.bf16.msra.mxu1 %v1679_v0  ;;  %s1846_s30 = scalar_lea.vmem %s2307_s0, %s1840_s27  ;;  %v1685_v9 = vld [vmem:[%s2308_s1 + $0x8] sm:$0xff]   ;;  %v1686_v10 = vld [vmem:[%s2308_s1] sm:$0xff]   ;;  %s1971_s23 = scalar_lea.vmem %s2311_s4, %s1840_s27 }
   0xe   : > { %777 = vmatprep.subr.bf16.mxu0 %v1792_v1  ;;  %1653 = vmatprep.subr.bf16.mxu1 %v1792_v1  ;;  %v1690_v5 = vld [vmem:[%s1846_s30 + $0x4] ss:$8 sps:$4 sm:$0xff]   ;;  %v1688_v12 = vld [vmem:[%s1846_s30] ss:$8 sps:$4 sm:$0xff]   ;;  %v1694_v14 = vld [vmem:[%s1846_s30 + $0x14] ss:$8 sps:$4 sm:$0xff]   ;;  %s1990_s29 = scalar_lea.vmem %s2312_s5, %s1840_s27 }
   0xf   : > { %v1693_v6 = vld [vmem:[%s1846_s30 + $0x104] ss:$8 sps:$4 sm:$0xff]   ;;  %1615 = vmatprep.mubr.msk.bf16.mxu0 %vm678_vm0, %v1690_v5  ;;  %v1691_v13 = vld [vmem:[%s1846_s30 + $0x100] ss:$8 sps:$4 sm:$0xff]   ;;  %v1696_v15 = vld [vmem:[%s1846_s30 + $0x114] ss:$8 sps:$4 sm:$0xff]  }
  0x10   : > { %1631 = vmatprep.mubr.msk.bf16.mxu1 %vm678_vm0, %v1693_v6  ;;  %v1687_v11 = vld [vmem:[%s2308_s1 + $0x40] sm:$0xff]   ;;  %v1698_v16 = vld [vmem:[%s1846_s30 + $0x10] ss:$8 sps:$4 sm:$0xff]   ;;  %v1706_v22 = vld [vmem:[%s1846_s30 + $0x34] ss:$8 sps:$4 sm:$0xff]  }
  0x11   : > { %778 = vmatpush1.bf16.msra.mxu0 %v1680_v2  ;;  %1662 = vmatpush1.bf16.msra.mxu1 %v1680_v2  ;;  %v1699_v17 = vld [vmem:[%s1846_s30 + $0x110] ss:$8 sps:$4 sm:$0xff]   ;;  %v1700_v18 = vld [vmem:[%s1846_s30 + $0x24] ss:$8 sps:$4 sm:$0xff]   ;;  %v1704_v20 = vld [vmem:[%s1846_s30 + $0x20] ss:$8 sps:$4 sm:$0xff]  }
  0x12   : > { %779 = vmatprep.subr.bf16.mxu0 %v1792_v1  ;;  %1654 = vmatprep.subr.bf16.mxu1 %v1792_v1  ;;  %v1702_v19 = vld [vmem:[%s1846_s30 + $0x124] ss:$8 sps:$4 sm:$0xff]   ;;  %v1705_v21 = vld [vmem:[%s1846_s30 + $0x120] ss:$8 sps:$4 sm:$0xff]   ;;  %v1708_v23 = vld [vmem:[%s1846_s30 + $0x134] ss:$8 sps:$4 sm:$0xff]  }
  0x13   : > { %v1710_v24 = vld [vmem:[%s1846_s30 + $0x30] ss:$8 sps:$4 sm:$0xff]   ;;  %v1712_v26 = vld [vmem:[%s1846_s30 + $0x44] ss:$8 sps:$4 sm:$0xff]   ;;  %v1716_v28 = vld [vmem:[%s1846_s30 + $0x40] ss:$8 sps:$4 sm:$0xff]  }
  0x14   : > { %v1711_v25 = vld [vmem:[%s1846_s30 + $0x130] ss:$8 sps:$4 sm:$0xff]   ;;  %v1714_v27 = vld [vmem:[%s1846_s30 + $0x144] ss:$8 sps:$4 sm:$0xff]   ;;  %v1717_v29 = vld [vmem:[%s1846_s30 + $0x140] ss:$8 sps:$4 sm:$0xff]  }
  0x15   : > { %780 = vmatpush1.bf16.msra.mxu0 %v1681_v3  ;;  %1663 = vmatpush1.bf16.msra.mxu1 %v1681_v3  ;;  %v1718_v30 = vld [vmem:[%s1846_s30 + $0x54] ss:$8 sps:$4 sm:$0xff]   ;;  %v1722_v32 = vld [vmem:[%s1846_s30 + $0x50] ss:$8 sps:$4 sm:$0xff]   ;;  %v1724_v34 = vld [vmem:[%s1846_s30 + $0x64] ss:$8 sps:$4 sm:$0xff]  }
  0x16   : > { %781 = vmatprep.subr.bf16.mxu0 %v1792_v1  ;;  %1655 = vmatprep.subr.bf16.mxu1 %v1792_v1  ;;  %v1720_v31 = vld [vmem:[%s1846_s30 + $0x154] ss:$8 sps:$4 sm:$0xff]   ;;  %v1723_v33 = vld [vmem:[%s1846_s30 + $0x150] ss:$8 sps:$4 sm:$0xff]   ;;  %v1726_v35 = vld [vmem:[%s1846_s30 + $0x164] ss:$8 sps:$4 sm:$0xff]  }
  0x17   : > { %v1728_v36 = vld [vmem:[%s1846_s30 + $0x60] ss:$8 sps:$4 sm:$0xff]   ;;  %v1730_v38 = vld [vmem:[%s1846_s30 + $0x74] ss:$8 sps:$4 sm:$0xff]   ;;  %v1734_v40 = vld [vmem:[%s1846_s30 + $0x70] ss:$8 sps:$4 sm:$0xff]  }
  0x18   : > { %v1729_v37 = vld [vmem:[%s1846_s30 + $0x160] ss:$8 sps:$4 sm:$0xff]   ;;  %v1732_v39 = vld [vmem:[%s1846_s30 + $0x174] ss:$8 sps:$4 sm:$0xff]   ;;  %v1735_v41 = vld [vmem:[%s1846_s30 + $0x170] ss:$8 sps:$4 sm:$0xff]  }
  0x19   : > { %782 = vmatpush1.bf16.msra.mxu0 %v1682_v4  ;;  %1664 = vmatpush1.bf16.msra.mxu1 %v1682_v4  ;;  %v1736_v42 = vld [vmem:[%s1846_s30 + $0x84] ss:$8 sps:$4 sm:$0xff]   ;;  %v1740_v44 = vld [vmem:[%s1846_s30 + $0x80] ss:$8 sps:$4 sm:$0xff]   ;;  %v1742_v46 = vld [vmem:[%s1846_s30 + $0x94] ss:$8 sps:$4 sm:$0xff]  }
  0x1a   : > { %783 = vmatprep.subr.bf16.mxu0 %v1792_v1  ;;  %1656 = vmatprep.subr.bf16.mxu1 %v1792_v1  ;;  %v1738_v43 = vld [vmem:[%s1846_s30 + $0x184] ss:$8 sps:$4 sm:$0xff]   ;;  %v1741_v45 = vld [vmem:[%s1846_s30 + $0x180] ss:$8 sps:$4 sm:$0xff]   ;;  %v1744_v47 = vld [vmem:[%s1846_s30 + $0x194] ss:$8 sps:$4 sm:$0xff]  }
  0x1b   : > { %v1746_v48 = vld [vmem:[%s1846_s30 + $0x90] ss:$8 sps:$4 sm:$0xff]   ;;  %v1748_v50 = vld [vmem:[%s1846_s30 + $0xa4] ss:$8 sps:$4 sm:$0xff]   ;;  %v1752_v52 = vld [vmem:[%s1846_s30 + $0xa0] ss:$8 sps:$4 sm:$0xff]  }
  0x1c   : > { %v1747_v49 = vld [vmem:[%s1846_s30 + $0x190] ss:$8 sps:$4 sm:$0xff]   ;;  %v1750_v51 = vld [vmem:[%s1846_s30 + $0x1a4] ss:$8 sps:$4 sm:$0xff]   ;;  %v1753_v53 = vld [vmem:[%s1846_s30 + $0x1a0] ss:$8 sps:$4 sm:$0xff]  }
  0x1d   : > { %784 = vmatpush1.bf16.msra.mxu0 %v1683_v7  ;;  %1665 = vmatpush1.bf16.msra.mxu1 %v1683_v7  ;;  %v1754_v54 = vld [vmem:[%s1846_s30 + $0xb4] ss:$8 sps:$4 sm:$0xff]   ;;  %v1758_v56 = vld [vmem:[%s1846_s30 + $0xb0] ss:$8 sps:$4 sm:$0xff]   ;;  %v1760_v58 = vld [vmem:[%s1846_s30 + $0xc4] ss:$8 sps:$4 sm:$0xff]  }
  0x1e   : > { %785 = vmatprep.subr.bf16.mxu0 %v1792_v1  ;;  %1657 = vmatprep.subr.bf16.mxu1 %v1792_v1  ;;  %v1756_v55 = vld [vmem:[%s1846_s30 + $0x1b4] ss:$8 sps:$4 sm:$0xff]   ;;  %v1759_v57 = vld [vmem:[%s1846_s30 + $0x1b0] ss:$8 sps:$4 sm:$0xff]   ;;  %v1762_v59 = vld [vmem:[%s1846_s30 + $0x1c4] ss:$8 sps:$4 sm:$0xff]  }
  0x1f   : > { %v1764_v60 = vld [vmem:[%s1846_s30 + $0xc0] ss:$8 sps:$4 sm:$0xff]   ;;  %v1766_v62 = vld [vmem:[%s1846_s30 + $0xd4] ss:$8 sps:$4 sm:$0xff]   ;;  %v1770_v0 = vld [vmem:[%s1846_s30 + $0xd0] ss:$8 sps:$4 sm:$0xff]  }
  0x20   : > { %v1765_v61 = vld [vmem:[%s1846_s30 + $0x1c0] ss:$8 sps:$4 sm:$0xff]   ;;  %v1768_v63 = vld [vmem:[%s1846_s30 + $0x1d4] ss:$8 sps:$4 sm:$0xff]   ;;  %v1772_v2 = vld [vmem:[%s1846_s30 + $0xe4] ss:$8 sps:$4 sm:$0xff]  }
  0x21   : > { %786 = vmatpush1.bf16.msra.mxu0 %v1684_v8  ;;  %1666 = vmatpush1.bf16.msra.mxu1 %v1684_v8  ;;  %v1774_v3 = vld [vmem:[%s1846_s30 + $0x1e4] ss:$8 sps:$4 sm:$0xff]   ;;  %v1776_v4 = vld [vmem:[%s1846_s30 + $0xe0] ss:$8 sps:$4 sm:$0xff]   ;;  %v1778_v6 = vld [vmem:[%s1846_s30 + $0xf4] ss:$8 sps:$4 sm:$0xff]  }
  0x22   : > { %787 = vmatprep.subr.bf16.mxu0 %v1792_v1  ;;  %1658 = vmatprep.subr.bf16.mxu1 %v1792_v1  ;;  %v1777_v5 = vld [vmem:[%s1846_s30 + $0x1e0] ss:$8 sps:$4 sm:$0xff]   ;;  %v1780_v7 = vld [vmem:[%s1846_s30 + $0x1f4] ss:$8 sps:$4 sm:$0xff]   ;;  %v1782_v8 = vld [vmem:[%s1846_s30 + $0xf0] ss:$8 sps:$4 sm:$0xff]  }
  0x25   : > { %788 = vmatpush1.bf16.msra.mxu0 %v1685_v9  ;;  %1667 = vmatpush1.bf16.msra.mxu1 %v1685_v9  ;;  %v1783_v9 = vld [vmem:[%s1846_s30 + $0x1f0] ss:$8 sps:$4 sm:$0xff]  }
  0x26   : > { %789 = vmatprep.subr.bf16.mxu0 %v1792_v1  ;;  %1659 = vmatprep.subr.bf16.mxu1 %v1792_v1 }
  0x29   : > { %790 = vmatpush1.bf16.msra.mxu0 %v1686_v10  ;;  %1668 = vmatpush1.bf16.msra.mxu1 %v1686_v10  ;;  %v1965_v10 = vld [vmem:[%s2309_s2] ss:$0 sm:$0xff] }
  0x2a   : > { %805 = vmatprep.subr.bf16.mxu0 %v1792_v1  ;;  %1660 = vmatprep.subr.bf16.mxu1 %v1792_v1  ;;  %v1771_v1 = vld [vmem:[%s1846_s30 + $0x1d0] ss:$8 sps:$4 sm:$0xff]  }
  0x2d   : > { %806 = vmatpush2.bf16.msra.mxu0 %v1687_v11  ;;  %1669 = vmatpush2.bf16.msra.mxu1 %v1687_v11 }
  0x30   : > { %808 = vmatmul.mubr.bf16.vlgmr.msra.gmra.mxu0 %v1688_v12  ;;  %936 = vmatmul.mubr.bf16.vlgmr.msra.gmra.mxu1 %v1691_v13  ;;  %v1976_v12 = vld [vmem:[%s2310_s3] ss:$0 sm:$0xff] }
  0x31   : > { %1616 = vmatprep.mubr.msk.bf16.mxu0 %vm678_vm0, %v1694_v14  ;;  %1632 = vmatprep.mubr.msk.bf16.mxu1 %vm678_vm0, %v1696_v15 }
  0x38   : > { %816 = vmatmul.mubr.bf16.gmra.mxu0 %v1698_v16  ;;  %944 = vmatmul.mubr.bf16.gmra.mxu1 %v1699_v17  ;;  %v1206_v16 = vld [vmem:[%s1971_s23] sm:$0xff] }
  0x39   : > { %1617 = vmatprep.mubr.msk.bf16.mxu0 %vm678_vm0, %v1700_v18  ;;  %1633 = vmatprep.mubr.msk.bf16.mxu1 %vm678_vm0, %v1702_v19  ;;  %v1238_v17 = vld [vmem:[%s1971_s23 + $0x100] sm:$0xff] }
  0x40   : > { %824 = vmatmul.mubr.bf16.gmra.mxu0 %v1704_v20  ;;  %952 = vmatmul.mubr.bf16.gmra.mxu1 %v1705_v21 }
  0x41   : > { %1618 = vmatprep.mubr.msk.bf16.mxu0 %vm678_vm0, %v1706_v22  ;;  %1634 = vmatprep.mubr.msk.bf16.mxu1 %vm678_vm0, %v1708_v23 }
  0x48   : > { %832 = vmatmul.mubr.bf16.gmra.mxu0 %v1710_v24  ;;  %960 = vmatmul.mubr.bf16.gmra.mxu1 %v1711_v25 }
  0x49   : > { %1619 = vmatprep.mubr.msk.bf16.mxu0 %vm678_vm0, %v1712_v26  ;;  %1635 = vmatprep.mubr.msk.bf16.mxu1 %vm678_vm0, %v1714_v27 }
  0x50   : > { %840 = vmatmul.mubr.bf16.gmra.mxu0 %v1716_v28  ;;  %968 = vmatmul.mubr.bf16.gmra.mxu1 %v1717_v29  ;;  %v1207_v28 = vld [vmem:[%s1971_s23 + $0x8] sm:$0xff] }
  0x51   : > { %1620 = vmatprep.mubr.msk.bf16.mxu0 %vm678_vm0, %v1718_v30  ;;  %1636 = vmatprep.mubr.msk.bf16.mxu1 %vm678_vm0, %v1720_v31  ;;  %v1239_v29 = vld [vmem:[%s1971_s23 + $0x108] sm:$0xff] }
  0x58   : > { %848 = vmatmul.mubr.bf16.gmra.mxu0 %v1722_v32  ;;  %976 = vmatmul.mubr.bf16.gmra.mxu1 %v1723_v33 }
  0x59   : > { %1621 = vmatprep.mubr.msk.bf16.mxu0 %vm678_vm0, %v1724_v34  ;;  %1637 = vmatprep.mubr.msk.bf16.mxu1 %vm678_vm0, %v1726_v35 }
  0x60   : > { %856 = vmatmul.mubr.bf16.gmra.mxu0 %v1728_v36  ;;  %984 = vmatmul.mubr.bf16.gmra.mxu1 %v1729_v37 }
  0x61   : > { %1622 = vmatprep.mubr.msk.bf16.mxu0 %vm678_vm0, %v1730_v38  ;;  %1638 = vmatprep.mubr.msk.bf16.mxu1 %vm678_vm0, %v1732_v39 }
  0x68   : > { %864 = vmatmul.mubr.bf16.gmra.mxu0 %v1734_v40  ;;  %992 = vmatmul.mubr.bf16.gmra.mxu1 %v1735_v41 }
  0x69   : > { %1623 = vmatprep.mubr.msk.bf16.mxu0 %vm678_vm0, %v1736_v42  ;;  %1639 = vmatprep.mubr.msk.bf16.mxu1 %vm678_vm0, %v1738_v43  ;;  %v1208_v42 = vld [vmem:[%s1971_s23 + $0x10] sm:$0xff] }
  0x6a   : > { %v1240_v43 = vld [vmem:[%s1971_s23 + $0x110] sm:$0xff] }
  0x70   : > { %872 = vmatmul.mubr.bf16.gmra.mxu0 %v1740_v44  ;;  %1000 = vmatmul.mubr.bf16.gmra.mxu1 %v1741_v45 }
  0x71   : > { %1624 = vmatprep.mubr.msk.bf16.mxu0 %vm678_vm0, %v1742_v46  ;;  %1640 = vmatprep.mubr.msk.bf16.mxu1 %vm678_vm0, %v1744_v47 }
  0x78   : > { %880 = vmatmul.mubr.bf16.gmra.mxu0 %v1746_v48  ;;  %1008 = vmatmul.mubr.bf16.gmra.mxu1 %v1747_v49 }
  0x79   : > { %1625 = vmatprep.mubr.msk.bf16.mxu0 %vm678_vm0, %v1748_v50  ;;  %1641 = vmatprep.mubr.msk.bf16.mxu1 %vm678_vm0, %v1750_v51 }
  0x80   : > { %888 = vmatmul.mubr.bf16.gmra.mxu0 %v1752_v52  ;;  %1016 = vmatmul.mubr.bf16.gmra.mxu1 %v1753_v53 }
  0x81   : > { %1626 = vmatprep.mubr.msk.bf16.mxu0 %vm678_vm0, %v1754_v54  ;;  %1642 = vmatprep.mubr.msk.bf16.mxu1 %vm678_vm0, %v1756_v55 }
  0x88   : > { %896 = vmatmul.mubr.bf16.gmra.mxu0 %v1758_v56  ;;  %1024 = vmatmul.mubr.bf16.gmra.mxu1 %v1759_v57  ;;  %v1209_v56 = vld [vmem:[%s1971_s23 + $0x18] sm:$0xff] }
  0x89   : > { %1627 = vmatprep.mubr.msk.bf16.mxu0 %vm678_vm0, %v1760_v58  ;;  %1643 = vmatprep.mubr.msk.bf16.mxu1 %vm678_vm0, %v1762_v59  ;;  %v1241_v57 = vld [vmem:[%s1971_s23 + $0x118] sm:$0xff] }
  0x90   : > { %904 = vmatmul.mubr.bf16.gmra.mxu0 %v1764_v60  ;;  %1032 = vmatmul.mubr.bf16.gmra.mxu1 %v1765_v61 }
  0x91   : > { %1628 = vmatprep.mubr.msk.bf16.mxu0 %vm678_vm0, %v1766_v62  ;;  %1644 = vmatprep.mubr.msk.bf16.mxu1 %vm678_vm0, %v1768_v63 }
  0x98   : > { %912 = vmatmul.mubr.bf16.gmra.mxu0 %v1770_v0  ;;  %1040 = vmatmul.mubr.bf16.gmra.mxu1 %v1771_v1 }
  0x99   : > { %1629 = vmatprep.mubr.msk.bf16.mxu0 %vm678_vm0, %v1772_v2  ;;  %1645 = vmatprep.mubr.msk.bf16.mxu1 %vm678_vm0, %v1774_v3 }
  0xa0   : > { %920 = vmatmul.mubr.bf16.gmra.mxu0 %v1776_v4  ;;  %1048 = vmatmul.mubr.bf16.gmra.mxu1 %v1777_v5 }
  0xa1   : > { %1630 = vmatprep.mubr.msk.bf16.mxu0 %vm678_vm0, %v1778_v6  ;;  %1646 = vmatprep.mubr.msk.bf16.mxu1 %vm678_vm0, %v1780_v7  ;;  %v1210_v6 = vld [vmem:[%s1971_s23 + $0x20] sm:$0xff] }
  0xa2   : > { %v1242_v7 = vld [vmem:[%s1971_s23 + $0x120] sm:$0xff] }
  0xa8   : > { %928 = vmatmul.mubr.bf16.gmra.mxu0 %v1782_v8  ;;  %1056 = vmatmul.mubr.bf16.gmra.mxu1 %v1783_v9 }
  0xf0   : > { %v809_v11 = vpop.f32.mrf.mxu0  ;;  %v937_v13 = vpop.f32.mrf.mxu1 }
  0xf1   : > { %v1071_v14 = vmul.f32 %v1965_v10, %v809_v11  ;;  %v1103_v15 = vmul.f32 %v1965_v10, %v937_v13 }
  0xf2   : > { %v811_v18 = vpop.f32.mrf.mxu0  ;;  %v939_v19 = vpop.f32.mrf.mxu1 }
  0xf3   : > { %v1142_v20 = vadd.f32 %v1976_v12, %v1071_v14  ;;  %v1174_v21 = vadd.f32 %v1976_v12, %v1103_v15 }
  0xf4   : > { %v812_v22 = vpop.f32.mrf.mxu0  ;;  %v940_v23 = vpop.f32.mrf.mxu1 }
  0xf5   : > { %v1270_v24 = vadd.f32 %v1206_v16, %v1142_v20  ;;  %v1302_v25 = vadd.f32 %v1238_v17, %v1174_v21  ;;  %v1072_v26 = vmul.f32 %v1965_v10, %v812_v22  ;;  %v1104_v27 = vmul.f32 %v1965_v10, %v940_v23  ;;  %v1211_v22 = vld [vmem:[%s1971_s23 + $0x28] sm:$0xff] }
  0xf6   : > { %v814_v30 = vpop.f32.mrf.mxu0  ;;  %v942_v31 = vpop.f32.mrf.mxu1  ;;  %v1243_v23 = vld [vmem:[%s1971_s23 + $0x128] sm:$0xff] }
  0xf7   : > { %v1334_v32 = vmax.f32 %v1270_v24, 0.0  ;;  %v1366_v33 = vmax.f32 %v1302_v25, 0.0  ;;  %v1143_v34 = vadd.f32 %v1976_v12, %v1072_v26  ;;  %v1175_v35 = vadd.f32 %v1976_v12, %v1104_v27 }
  0xf8   : > { %v817_v36 = vpop.f32.mrf.mxu0  ;;  %v945_v37 = vpop.f32.mrf.mxu1 }
  0xf9   : > { %1398 = vst.msk [vmem:[%s1990_s29] sm:$0xff] %vm678_vm0, %v1334_v32  ;;  %1430 = vst.msk [vmem:[%s1990_s29 + $0x100] sm:$0xff] %vm678_vm0, %v1366_v33  ;;  %v1271_v38 = vadd.f32 %v1207_v28, %v1143_v34  ;;  %v1303_v39 = vadd.f32 %v1239_v29, %v1175_v35  ;;  %v1073_v40 = vmul.f32 %v1965_v10, %v817_v36  ;;  %v1212_v36 = vld [vmem:[%s1971_s23 + $0x30] sm:$0xff] }
  0xfa   : > { %v1105_v41 = vmul.f32 %v1965_v10, %v945_v37  ;;  %v819_v44 = vpop.f32.mrf.mxu0  ;;  %v947_v45 = vpop.f32.mrf.mxu1  ;;  %v1244_v37 = vld [vmem:[%s1971_s23 + $0x130] sm:$0xff] }
  0xfb   : > { %v1335_v46 = vmax.f32 %v1271_v38, 0.0  ;;  %v1367_v47 = vmax.f32 %v1303_v39, 0.0  ;;  %v1144_v48 = vadd.f32 %v1976_v12, %v1073_v40 }
  0xfc   : > { %v1176_v49 = vadd.f32 %v1976_v12, %v1105_v41  ;;  %v820_v50 = vpop.f32.mrf.mxu0  ;;  %v948_v51 = vpop.f32.mrf.mxu1 }
  0xfd   : > { %1399 = vst.msk [vmem:[%s1990_s29 + $0x8] sm:$0xff] %vm678_vm0, %v1335_v46  ;;  %1431 = vst.msk [vmem:[%s1990_s29 + $0x108] sm:$0xff] %vm678_vm0, %v1367_v47  ;;  %v1272_v52 = vadd.f32 %v1208_v42, %v1144_v48  ;;  %v1074_v54 = vmul.f32 %v1965_v10, %v820_v50  ;;  %v1106_v55 = vmul.f32 %v1965_v10, %v948_v51  ;;  %v1213_v50 = vld [vmem:[%s1971_s23 + $0x38] sm:$0xff] }
  0xfe   : > { %v1304_v53 = vadd.f32 %v1240_v43, %v1176_v49  ;;  %v822_v58 = vpop.f32.mrf.mxu0  ;;  %v950_v59 = vpop.f32.mrf.mxu1  ;;  %v1245_v51 = vld [vmem:[%s1971_s23 + $0x138] sm:$0xff] }
  0xff   : > { %v1336_v60 = vmax.f32 %v1272_v52, 0.0  ;;  %v1145_v62 = vadd.f32 %v1976_v12, %v1074_v54  ;;  %v1177_v63 = vadd.f32 %v1976_v12, %v1106_v55 }
 0x100   : > { %v1368_v61 = vmax.f32 %v1304_v53, 0.0  ;;  %v825_v0 = vpop.f32.mrf.mxu0  ;;  %v953_v1 = vpop.f32.mrf.mxu1 }
 0x101   : > { %1400 = vst.msk [vmem:[%s1990_s29 + $0x10] sm:$0xff] %vm678_vm0, %v1336_v60  ;;  %v1273_v2 = vadd.f32 %v1209_v56, %v1145_v62  ;;  %v1305_v3 = vadd.f32 %v1241_v57, %v1177_v63  ;;  %v1075_v4 = vmul.f32 %v1965_v10, %v825_v0  ;;  %v1107_v5 = vmul.f32 %v1965_v10, %v953_v1  ;;  %v1214_v0 = vld [vmem:[%s1971_s23 + $0x40] sm:$0xff] }
 0x102   : > { %1432 = vst.msk [vmem:[%s1990_s29 + $0x110] sm:$0xff] %vm678_vm0, %v1368_v61  ;;  %v827_v8 = vpop.f32.mrf.mxu0  ;;  %v955_v9 = vpop.f32.mrf.mxu1  ;;  %v1246_v1 = vld [vmem:[%s1971_s23 + $0x140] sm:$0xff] }
 0x103   : > { %v1337_v11 = vmax.f32 %v1273_v2, 0.0  ;;  %v1369_v13 = vmax.f32 %v1305_v3, 0.0  ;;  %v1146_v14 = vadd.f32 %v1976_v12, %v1075_v4  ;;  %v1178_v15 = vadd.f32 %v1976_v12, %v1107_v5 }
 0x104   : > { %v828_v16 = vpop.f32.mrf.mxu0  ;;  %v956_v17 = vpop.f32.mrf.mxu1 }
 0x105   : > { %1401 = vst.msk [vmem:[%s1990_s29 + $0x18] sm:$0xff] %vm678_vm0, %v1337_v11  ;;  %1433 = vst.msk [vmem:[%s1990_s29 + $0x118] sm:$0xff] %vm678_vm0, %v1369_v13  ;;  %v1274_v18 = vadd.f32 %v1210_v6, %v1146_v14  ;;  %v1306_v19 = vadd.f32 %v1242_v7, %v1178_v15  ;;  %v1076_v20 = vmul.f32 %v1965_v10, %v828_v16  ;;  %v1215_v16 = vld [vmem:[%s1971_s23 + $0x48] sm:$0xff] }
 0x106   : > { %v1108_v21 = vmul.f32 %v1965_v10, %v956_v17  ;;  %v830_v24 = vpop.f32.mrf.mxu0  ;;  %v958_v25 = vpop.f32.mrf.mxu1  ;;  %v1247_v17 = vld [vmem:[%s1971_s23 + $0x148] sm:$0xff] }
 0x107   : > { %v1338_v26 = vmax.f32 %v1274_v18, 0.0  ;;  %v1370_v27 = vmax.f32 %v1306_v19, 0.0  ;;  %v1147_v28 = vadd.f32 %v1976_v12, %v1076_v20 }
 0x108   : > { %v1179_v29 = vadd.f32 %v1976_v12, %v1108_v21  ;;  %v833_v30 = vpop.f32.mrf.mxu0  ;;  %v961_v31 = vpop.f32.mrf.mxu1 }
 0x109   : > { %1402 = vst.msk [vmem:[%s1990_s29 + $0x20] sm:$0xff] %vm678_vm0, %v1338_v26  ;;  %1434 = vst.msk [vmem:[%s1990_s29 + $0x120] sm:$0xff] %vm678_vm0, %v1370_v27  ;;  %v1275_v32 = vadd.f32 %v1211_v22, %v1147_v28  ;;  %v1077_v34 = vmul.f32 %v1965_v10, %v833_v30  ;;  %v1109_v35 = vmul.f32 %v1965_v10, %v961_v31  ;;  %v1216_v30 = vld [vmem:[%s1971_s23 + $0x50] sm:$0xff] }
 0x10a   : > { %v1307_v33 = vadd.f32 %v1243_v23, %v1179_v29  ;;  %v835_v38 = vpop.f32.mrf.mxu0  ;;  %v963_v39 = vpop.f32.mrf.mxu1  ;;  %v1248_v31 = vld [vmem:[%s1971_s23 + $0x150] sm:$0xff] }
 0x10b   : > { %v1339_v40 = vmax.f32 %v1275_v32, 0.0  ;;  %v1148_v42 = vadd.f32 %v1976_v12, %v1077_v34  ;;  %v1180_v43 = vadd.f32 %v1976_v12, %v1109_v35 }
 0x10c   : > { %v1371_v41 = vmax.f32 %v1307_v33, 0.0  ;;  %v836_v44 = vpop.f32.mrf.mxu0  ;;  %v964_v45 = vpop.f32.mrf.mxu1 }
 0x10d   : > { %1403 = vst.msk [vmem:[%s1990_s29 + $0x28] sm:$0xff] %vm678_vm0, %v1339_v40  ;;  %v1276_v46 = vadd.f32 %v1212_v36, %v1148_v42  ;;  %v1308_v47 = vadd.f32 %v1244_v37, %v1180_v43  ;;  %v1078_v48 = vmul.f32 %v1965_v10, %v836_v44  ;;  %v1110_v49 = vmul.f32 %v1965_v10, %v964_v45  ;;  %v1217_v44 = vld [vmem:[%s1971_s23 + $0x58] sm:$0xff] }
 0x10e   : > { %1435 = vst.msk [vmem:[%s1990_s29 + $0x128] sm:$0xff] %vm678_vm0, %v1371_v41  ;;  %v838_v52 = vpop.f32.mrf.mxu0  ;;  %v966_v53 = vpop.f32.mrf.mxu1  ;;  %v1249_v45 = vld [vmem:[%s1971_s23 + $0x158] sm:$0xff] }
 0x10f   : > { %v1340_v54 = vmax.f32 %v1276_v46, 0.0  ;;  %v1372_v55 = vmax.f32 %v1308_v47, 0.0  ;;  %v1149_v56 = vadd.f32 %v1976_v12, %v1078_v48  ;;  %v1181_v57 = vadd.f32 %v1976_v12, %v1110_v49 }
 0x110   : > { %v841_v58 = vpop.f32.mrf.mxu0  ;;  %v969_v59 = vpop.f32.mrf.mxu1 }
 0x111   : > { %1404 = vst.msk [vmem:[%s1990_s29 + $0x30] sm:$0xff] %vm678_vm0, %v1340_v54  ;;  %1436 = vst.msk [vmem:[%s1990_s29 + $0x130] sm:$0xff] %vm678_vm0, %v1372_v55  ;;  %v1277_v60 = vadd.f32 %v1213_v50, %v1149_v56  ;;  %v1309_v61 = vadd.f32 %v1245_v51, %v1181_v57  ;;  %v1079_v62 = vmul.f32 %v1965_v10, %v841_v58  ;;  %v1218_v58 = vld [vmem:[%s1971_s23 + $0x60] sm:$0xff] }
 0x112   : > { %v1111_v63 = vmul.f32 %v1965_v10, %v969_v59  ;;  %v843_v2 = vpop.f32.mrf.mxu0  ;;  %v971_v3 = vpop.f32.mrf.mxu1  ;;  %v1250_v59 = vld [vmem:[%s1971_s23 + $0x160] sm:$0xff] }
 0x113   : > { %v1341_v4 = vmax.f32 %v1277_v60, 0.0  ;;  %v1373_v5 = vmax.f32 %v1309_v61, 0.0  ;;  %v1150_v6 = vadd.f32 %v1976_v12, %v1079_v62 }
 0x114   : > { %v1182_v7 = vadd.f32 %v1976_v12, %v1111_v63  ;;  %v844_v8 = vpop.f32.mrf.mxu0  ;;  %v972_v9 = vpop.f32.mrf.mxu1 }
 0x115   : > { %1405 = vst.msk [vmem:[%s1990_s29 + $0x38] sm:$0xff] %vm678_vm0, %v1341_v4  ;;  %1437 = vst.msk [vmem:[%s1990_s29 + $0x138] sm:$0xff] %vm678_vm0, %v1373_v5  ;;  %v1278_v11 = vadd.f32 %v1214_v0, %v1150_v6  ;;  %v1080_v14 = vmul.f32 %v1965_v10, %v844_v8  ;;  %v1112_v15 = vmul.f32 %v1965_v10, %v972_v9  ;;  %v1219_v8 = vld [vmem:[%s1971_s23 + $0x68] sm:$0xff] }
 0x116   : > { %v1310_v13 = vadd.f32 %v1246_v1, %v1182_v7  ;;  %v846_v18 = vpop.f32.mrf.mxu0  ;;  %v974_v19 = vpop.f32.mrf.mxu1  ;;  %v1251_v9 = vld [vmem:[%s1971_s23 + $0x168] sm:$0xff] }
 0x117   : > { %v1342_v20 = vmax.f32 %v1278_v11, 0.0  ;;  %v1151_v22 = vadd.f32 %v1976_v12, %v1080_v14  ;;  %v1183_v23 = vadd.f32 %v1976_v12, %v1112_v15 }
 0x118   : > { %v1374_v21 = vmax.f32 %v1310_v13, 0.0  ;;  %v849_v24 = vpop.f32.mrf.mxu0  ;;  %v977_v25 = vpop.f32.mrf.mxu1 }
 0x119   : > { %1406 = vst.msk [vmem:[%s1990_s29 + $0x40] sm:$0xff] %vm678_vm0, %v1342_v20  ;;  %v1279_v26 = vadd.f32 %v1215_v16, %v1151_v22  ;;  %v1311_v27 = vadd.f32 %v1247_v17, %v1183_v23  ;;  %v1081_v28 = vmul.f32 %v1965_v10, %v849_v24  ;;  %v1113_v29 = vmul.f32 %v1965_v10, %v977_v25  ;;  %v1220_v24 = vld [vmem:[%s1971_s23 + $0x70] sm:$0xff] }
 0x11a   : > { %1438 = vst.msk [vmem:[%s1990_s29 + $0x140] sm:$0xff] %vm678_vm0, %v1374_v21  ;;  %v851_v32 = vpop.f32.mrf.mxu0  ;;  %v979_v33 = vpop.f32.mrf.mxu1  ;;  %v1252_v25 = vld [vmem:[%s1971_s23 + $0x170] sm:$0xff] }
 0x11b   : > { %v1343_v34 = vmax.f32 %v1279_v26, 0.0  ;;  %v1375_v35 = vmax.f32 %v1311_v27, 0.0  ;;  %v1152_v36 = vadd.f32 %v1976_v12, %v1081_v28  ;;  %v1184_v37 = vadd.f32 %v1976_v12, %v1113_v29 }
 0x11c   : > { %v852_v38 = vpop.f32.mrf.mxu0  ;;  %v980_v39 = vpop.f32.mrf.mxu1 }
 0x11d   : > { %1407 = vst.msk [vmem:[%s1990_s29 + $0x48] sm:$0xff] %vm678_vm0, %v1343_v34  ;;  %1439 = vst.msk [vmem:[%s1990_s29 + $0x148] sm:$0xff] %vm678_vm0, %v1375_v35  ;;  %v1280_v40 = vadd.f32 %v1216_v30, %v1152_v36  ;;  %v1312_v41 = vadd.f32 %v1248_v31, %v1184_v37  ;;  %v1082_v42 = vmul.f32 %v1965_v10, %v852_v38  ;;  %v1221_v38 = vld [vmem:[%s1971_s23 + $0x78] sm:$0xff] }
 0x11e   : > { %v1114_v43 = vmul.f32 %v1965_v10, %v980_v39  ;;  %v854_v46 = vpop.f32.mrf.mxu0  ;;  %v982_v47 = vpop.f32.mrf.mxu1  ;;  %v1253_v39 = vld [vmem:[%s1971_s23 + $0x178] sm:$0xff] }
 0x11f   : > { %v1344_v48 = vmax.f32 %v1280_v40, 0.0  ;;  %v1376_v49 = vmax.f32 %v1312_v41, 0.0  ;;  %v1153_v50 = vadd.f32 %v1976_v12, %v1082_v42 }
 0x120   : > { %v1185_v51 = vadd.f32 %v1976_v12, %v1114_v43  ;;  %v857_v52 = vpop.f32.mrf.mxu0  ;;  %v985_v53 = vpop.f32.mrf.mxu1 }
 0x121   : > { %1408 = vst.msk [vmem:[%s1990_s29 + $0x50] sm:$0xff] %vm678_vm0, %v1344_v48  ;;  %1440 = vst.msk [vmem:[%s1990_s29 + $0x150] sm:$0xff] %vm678_vm0, %v1376_v49  ;;  %v1281_v54 = vadd.f32 %v1217_v44, %v1153_v50  ;;  %v1083_v56 = vmul.f32 %v1965_v10, %v857_v52  ;;  %v1115_v57 = vmul.f32 %v1965_v10, %v985_v53  ;;  %v1222_v52 = vld [vmem:[%s1971_s23 + $0x80] sm:$0xff] }
 0x122   : > { %v1313_v55 = vadd.f32 %v1249_v45, %v1185_v51  ;;  %v859_v60 = vpop.f32.mrf.mxu0  ;;  %v987_v61 = vpop.f32.mrf.mxu1  ;;  %v1254_v53 = vld [vmem:[%s1971_s23 + $0x180] sm:$0xff] }
 0x123   : > { %v1345_v62 = vmax.f32 %v1281_v54, 0.0  ;;  %v1154_v0 = vadd.f32 %v1976_v12, %v1083_v56  ;;  %v1186_v1 = vadd.f32 %v1976_v12, %v1115_v57 }
 0x124   : > { %v1377_v63 = vmax.f32 %v1313_v55, 0.0  ;;  %v860_v2 = vpop.f32.mrf.mxu0  ;;  %v988_v3 = vpop.f32.mrf.mxu1 }
 0x125   : > { %1409 = vst.msk [vmem:[%s1990_s29 + $0x58] sm:$0xff] %vm678_vm0, %v1345_v62  ;;  %v1282_v4 = vadd.f32 %v1218_v58, %v1154_v0  ;;  %v1314_v5 = vadd.f32 %v1250_v59, %v1186_v1  ;;  %v1084_v6 = vmul.f32 %v1965_v10, %v860_v2  ;;  %v1116_v7 = vmul.f32 %v1965_v10, %v988_v3  ;;  %v1223_v2 = vld [vmem:[%s1971_s23 + $0x88] sm:$0xff] }
 0x126   : > { %1441 = vst.msk [vmem:[%s1990_s29 + $0x158] sm:$0xff] %vm678_vm0, %v1377_v63  ;;  %v862_v11 = vpop.f32.mrf.mxu0  ;;  %v990_v13 = vpop.f32.mrf.mxu1  ;;  %v1255_v3 = vld [vmem:[%s1971_s23 + $0x188] sm:$0xff] }
 0x127   : > { %v1346_v14 = vmax.f32 %v1282_v4, 0.0  ;;  %v1378_v15 = vmax.f32 %v1314_v5, 0.0  ;;  %v1155_v16 = vadd.f32 %v1976_v12, %v1084_v6  ;;  %v1187_v17 = vadd.f32 %v1976_v12, %v1116_v7 }
 0x128   : > { %v865_v18 = vpop.f32.mrf.mxu0  ;;  %v993_v19 = vpop.f32.mrf.mxu1 }
 0x129   : > { %1410 = vst.msk [vmem:[%s1990_s29 + $0x60] sm:$0xff] %vm678_vm0, %v1346_v14  ;;  %1442 = vst.msk [vmem:[%s1990_s29 + $0x160] sm:$0xff] %vm678_vm0, %v1378_v15  ;;  %v1283_v20 = vadd.f32 %v1219_v8, %v1155_v16  ;;  %v1315_v21 = vadd.f32 %v1251_v9, %v1187_v17  ;;  %v1085_v22 = vmul.f32 %v1965_v10, %v865_v18  ;;  %v1224_v18 = vld [vmem:[%s1971_s23 + $0x90] sm:$0xff] }
 0x12a   : > { %v1117_v23 = vmul.f32 %v1965_v10, %v993_v19  ;;  %v867_v26 = vpop.f32.mrf.mxu0  ;;  %v995_v27 = vpop.f32.mrf.mxu1  ;;  %v1256_v19 = vld [vmem:[%s1971_s23 + $0x190] sm:$0xff] }
 0x12b   : > { %v1347_v28 = vmax.f32 %v1283_v20, 0.0  ;;  %v1379_v29 = vmax.f32 %v1315_v21, 0.0  ;;  %v1156_v30 = vadd.f32 %v1976_v12, %v1085_v22 }
 0x12c   : > { %v1188_v31 = vadd.f32 %v1976_v12, %v1117_v23  ;;  %v868_v32 = vpop.f32.mrf.mxu0  ;;  %v996_v33 = vpop.f32.mrf.mxu1 }
 0x12d   : > { %1411 = vst.msk [vmem:[%s1990_s29 + $0x68] sm:$0xff] %vm678_vm0, %v1347_v28  ;;  %1443 = vst.msk [vmem:[%s1990_s29 + $0x168] sm:$0xff] %vm678_vm0, %v1379_v29  ;;  %v1284_v34 = vadd.f32 %v1220_v24, %v1156_v30  ;;  %v1086_v36 = vmul.f32 %v1965_v10, %v868_v32  ;;  %v1118_v37 = vmul.f32 %v1965_v10, %v996_v33  ;;  %v1225_v32 = vld [vmem:[%s1971_s23 + $0x98] sm:$0xff] }
 0x12e   : > { %v1316_v35 = vadd.f32 %v1252_v25, %v1188_v31  ;;  %v870_v40 = vpop.f32.mrf.mxu0  ;;  %v998_v41 = vpop.f32.mrf.mxu1  ;;  %v1257_v33 = vld [vmem:[%s1971_s23 + $0x198] sm:$0xff] }
 0x12f   : > { %v1348_v42 = vmax.f32 %v1284_v34, 0.0  ;;  %v1157_v44 = vadd.f32 %v1976_v12, %v1086_v36  ;;  %v1189_v45 = vadd.f32 %v1976_v12, %v1118_v37 }
 0x130   : > { %v1380_v43 = vmax.f32 %v1316_v35, 0.0  ;;  %v873_v46 = vpop.f32.mrf.mxu0  ;;  %v1001_v47 = vpop.f32.mrf.mxu1 }
 0x131   : > { %1412 = vst.msk [vmem:[%s1990_s29 + $0x70] sm:$0xff] %vm678_vm0, %v1348_v42  ;;  %v1285_v48 = vadd.f32 %v1221_v38, %v1157_v44  ;;  %v1317_v49 = vadd.f32 %v1253_v39, %v1189_v45  ;;  %v1087_v50 = vmul.f32 %v1965_v10, %v873_v46  ;;  %v1119_v51 = vmul.f32 %v1965_v10, %v1001_v47  ;;  %v1226_v46 = vld [vmem:[%s1971_s23 + $0xa0] sm:$0xff] }
 0x132   : > { %1444 = vst.msk [vmem:[%s1990_s29 + $0x170] sm:$0xff] %vm678_vm0, %v1380_v43  ;;  %v875_v54 = vpop.f32.mrf.mxu0  ;;  %v1003_v55 = vpop.f32.mrf.mxu1  ;;  %v1258_v47 = vld [vmem:[%s1971_s23 + $0x1a0] sm:$0xff] }
 0x133   : > { %v1349_v56 = vmax.f32 %v1285_v48, 0.0  ;;  %v1381_v57 = vmax.f32 %v1317_v49, 0.0  ;;  %v1158_v58 = vadd.f32 %v1976_v12, %v1087_v50  ;;  %v1190_v59 = vadd.f32 %v1976_v12, %v1119_v51 }
 0x134   : > { %v876_v60 = vpop.f32.mrf.mxu0  ;;  %v1004_v61 = vpop.f32.mrf.mxu1 }
 0x135   : > { %1413 = vst.msk [vmem:[%s1990_s29 + $0x78] sm:$0xff] %vm678_vm0, %v1349_v56  ;;  %1445 = vst.msk [vmem:[%s1990_s29 + $0x178] sm:$0xff] %vm678_vm0, %v1381_v57  ;;  %v1286_v62 = vadd.f32 %v1222_v52, %v1158_v58  ;;  %v1318_v63 = vadd.f32 %v1254_v53, %v1190_v59  ;;  %v1088_v0 = vmul.f32 %v1965_v10, %v876_v60  ;;  %v1227_v60 = vld [vmem:[%s1971_s23 + $0xa8] sm:$0xff] }
 0x136   : > { %v1120_v1 = vmul.f32 %v1965_v10, %v1004_v61  ;;  %v878_v4 = vpop.f32.mrf.mxu0  ;;  %v1006_v5 = vpop.f32.mrf.mxu1  ;;  %v1259_v61 = vld [vmem:[%s1971_s23 + $0x1a8] sm:$0xff] }
 0x137   : > { %v1350_v6 = vmax.f32 %v1286_v62, 0.0  ;;  %v1382_v7 = vmax.f32 %v1318_v63, 0.0  ;;  %v1159_v8 = vadd.f32 %v1976_v12, %v1088_v0 }
 0x138   : > { %v1191_v9 = vadd.f32 %v1976_v12, %v1120_v1  ;;  %v881_v11 = vpop.f32.mrf.mxu0  ;;  %v1009_v13 = vpop.f32.mrf.mxu1 }
 0x139   : > { %1414 = vst.msk [vmem:[%s1990_s29 + $0x80] sm:$0xff] %vm678_vm0, %v1350_v6  ;;  %1446 = vst.msk [vmem:[%s1990_s29 + $0x180] sm:$0xff] %vm678_vm0, %v1382_v7  ;;  %v1287_v14 = vadd.f32 %v1223_v2, %v1159_v8  ;;  %v1089_v16 = vmul.f32 %v1965_v10, %v881_v11  ;;  %v1121_v17 = vmul.f32 %v1965_v10, %v1009_v13  ;;  %v1228_v11 = vld [vmem:[%s1971_s23 + $0xb0] sm:$0xff] }
 0x13a   : > { %v1319_v15 = vadd.f32 %v1255_v3, %v1191_v9  ;;  %v883_v20 = vpop.f32.mrf.mxu0  ;;  %v1011_v21 = vpop.f32.mrf.mxu1  ;;  %v1260_v13 = vld [vmem:[%s1971_s23 + $0x1b0] sm:$0xff] }
 0x13b   : > { %v1351_v22 = vmax.f32 %v1287_v14, 0.0  ;;  %v1160_v24 = vadd.f32 %v1976_v12, %v1089_v16  ;;  %v1192_v25 = vadd.f32 %v1976_v12, %v1121_v17 }
 0x13c   : > { %v1383_v23 = vmax.f32 %v1319_v15, 0.0  ;;  %v884_v26 = vpop.f32.mrf.mxu0  ;;  %v1012_v27 = vpop.f32.mrf.mxu1 }
 0x13d   : > { %1415 = vst.msk [vmem:[%s1990_s29 + $0x88] sm:$0xff] %vm678_vm0, %v1351_v22  ;;  %v1288_v28 = vadd.f32 %v1224_v18, %v1160_v24  ;;  %v1320_v29 = vadd.f32 %v1256_v19, %v1192_v25  ;;  %v1090_v30 = vmul.f32 %v1965_v10, %v884_v26  ;;  %v1122_v31 = vmul.f32 %v1965_v10, %v1012_v27  ;;  %v1229_v26 = vld [vmem:[%s1971_s23 + $0xb8] sm:$0xff] }
 0x13e   : > { %1447 = vst.msk [vmem:[%s1990_s29 + $0x188] sm:$0xff] %vm678_vm0, %v1383_v23  ;;  %v886_v34 = vpop.f32.mrf.mxu0  ;;  %v1014_v35 = vpop.f32.mrf.mxu1  ;;  %v1261_v27 = vld [vmem:[%s1971_s23 + $0x1b8] sm:$0xff] }
 0x13f   : > { %v1352_v36 = vmax.f32 %v1288_v28, 0.0  ;;  %v1384_v37 = vmax.f32 %v1320_v29, 0.0  ;;  %v1161_v38 = vadd.f32 %v1976_v12, %v1090_v30  ;;  %v1193_v39 = vadd.f32 %v1976_v12, %v1122_v31 }
 0x140   : > { %v889_v40 = vpop.f32.mrf.mxu0  ;;  %v1017_v41 = vpop.f32.mrf.mxu1 }
 0x141   : > { %1416 = vst.msk [vmem:[%s1990_s29 + $0x90] sm:$0xff] %vm678_vm0, %v1352_v36  ;;  %1448 = vst.msk [vmem:[%s1990_s29 + $0x190] sm:$0xff] %vm678_vm0, %v1384_v37  ;;  %v1289_v42 = vadd.f32 %v1225_v32, %v1161_v38  ;;  %v1321_v43 = vadd.f32 %v1257_v33, %v1193_v39  ;;  %v1091_v44 = vmul.f32 %v1965_v10, %v889_v40  ;;  %v1230_v40 = vld [vmem:[%s1971_s23 + $0xc0] sm:$0xff] }
 0x142   : > { %v1123_v45 = vmul.f32 %v1965_v10, %v1017_v41  ;;  %v891_v48 = vpop.f32.mrf.mxu0  ;;  %v1019_v49 = vpop.f32.mrf.mxu1  ;;  %v1262_v41 = vld [vmem:[%s1971_s23 + $0x1c0] sm:$0xff] }
 0x143   : > { %v1353_v50 = vmax.f32 %v1289_v42, 0.0  ;;  %v1385_v51 = vmax.f32 %v1321_v43, 0.0  ;;  %v1162_v52 = vadd.f32 %v1976_v12, %v1091_v44 }
 0x144   : > { %v1194_v53 = vadd.f32 %v1976_v12, %v1123_v45  ;;  %v892_v54 = vpop.f32.mrf.mxu0  ;;  %v1020_v55 = vpop.f32.mrf.mxu1 }
 0x145   : > { %1417 = vst.msk [vmem:[%s1990_s29 + $0x98] sm:$0xff] %vm678_vm0, %v1353_v50  ;;  %1449 = vst.msk [vmem:[%s1990_s29 + $0x198] sm:$0xff] %vm678_vm0, %v1385_v51  ;;  %v1290_v56 = vadd.f32 %v1226_v46, %v1162_v52  ;;  %v1092_v58 = vmul.f32 %v1965_v10, %v892_v54  ;;  %v1124_v59 = vmul.f32 %v1965_v10, %v1020_v55  ;;  %v1231_v54 = vld [vmem:[%s1971_s23 + $0xc8] sm:$0xff] }
 0x146   : > { %v1322_v57 = vadd.f32 %v1258_v47, %v1194_v53  ;;  %v894_v62 = vpop.f32.mrf.mxu0  ;;  %v1022_v63 = vpop.f32.mrf.mxu1  ;;  %v1263_v55 = vld [vmem:[%s1971_s23 + $0x1c8] sm:$0xff] }
 0x147   : > { %v1354_v0 = vmax.f32 %v1290_v56, 0.0  ;;  %v1163_v2 = vadd.f32 %v1976_v12, %v1092_v58  ;;  %v1195_v3 = vadd.f32 %v1976_v12, %v1124_v59 }
 0x148   : > { %v1386_v1 = vmax.f32 %v1322_v57, 0.0  ;;  %v897_v4 = vpop.f32.mrf.mxu0  ;;  %v1025_v5 = vpop.f32.mrf.mxu1 }
 0x149   : > { %1418 = vst.msk [vmem:[%s1990_s29 + $0xa0] sm:$0xff] %vm678_vm0, %v1354_v0  ;;  %v1291_v6 = vadd.f32 %v1227_v60, %v1163_v2  ;;  %v1323_v7 = vadd.f32 %v1259_v61, %v1195_v3  ;;  %v1093_v8 = vmul.f32 %v1965_v10, %v897_v4  ;;  %v1125_v9 = vmul.f32 %v1965_v10, %v1025_v5  ;;  %v1232_v4 = vld [vmem:[%s1971_s23 + $0xd0] sm:$0xff] }
 0x14a   : > { %1450 = vst.msk [vmem:[%s1990_s29 + $0x1a0] sm:$0xff] %vm678_vm0, %v1386_v1  ;;  %v899_v14 = vpop.f32.mrf.mxu0  ;;  %v1027_v15 = vpop.f32.mrf.mxu1  ;;  %v1264_v5 = vld [vmem:[%s1971_s23 + $0x1d0] sm:$0xff] }
 0x14b   : > { %v1355_v16 = vmax.f32 %v1291_v6, 0.0  ;;  %v1387_v17 = vmax.f32 %v1323_v7, 0.0  ;;  %v1164_v18 = vadd.f32 %v1976_v12, %v1093_v8  ;;  %v1196_v19 = vadd.f32 %v1976_v12, %v1125_v9 }
 0x14c   : > { %v900_v20 = vpop.f32.mrf.mxu0  ;;  %v1028_v21 = vpop.f32.mrf.mxu1 }
 0x14d   : > { %1419 = vst.msk [vmem:[%s1990_s29 + $0xa8] sm:$0xff] %vm678_vm0, %v1355_v16  ;;  %1451 = vst.msk [vmem:[%s1990_s29 + $0x1a8] sm:$0xff] %vm678_vm0, %v1387_v17  ;;  %v1292_v22 = vadd.f32 %v1228_v11, %v1164_v18  ;;  %v1324_v23 = vadd.f32 %v1260_v13, %v1196_v19  ;;  %v1094_v24 = vmul.f32 %v1965_v10, %v900_v20  ;;  %v1233_v20 = vld [vmem:[%s1971_s23 + $0xd8] sm:$0xff] }
 0x14e   : > { %v1126_v25 = vmul.f32 %v1965_v10, %v1028_v21  ;;  %v902_v28 = vpop.f32.mrf.mxu0  ;;  %v1030_v29 = vpop.f32.mrf.mxu1  ;;  %v1265_v21 = vld [vmem:[%s1971_s23 + $0x1d8] sm:$0xff] }
 0x14f   : > { %v1356_v30 = vmax.f32 %v1292_v22, 0.0  ;;  %v1388_v31 = vmax.f32 %v1324_v23, 0.0  ;;  %v1165_v32 = vadd.f32 %v1976_v12, %v1094_v24 }
 0x150   : > { %v1197_v33 = vadd.f32 %v1976_v12, %v1126_v25  ;;  %v905_v34 = vpop.f32.mrf.mxu0  ;;  %v1033_v35 = vpop.f32.mrf.mxu1 }
 0x151   : > { %1420 = vst.msk [vmem:[%s1990_s29 + $0xb0] sm:$0xff] %vm678_vm0, %v1356_v30  ;;  %1452 = vst.msk [vmem:[%s1990_s29 + $0x1b0] sm:$0xff] %vm678_vm0, %v1388_v31  ;;  %v1293_v36 = vadd.f32 %v1229_v26, %v1165_v32  ;;  %v1095_v38 = vmul.f32 %v1965_v10, %v905_v34  ;;  %v1127_v39 = vmul.f32 %v1965_v10, %v1033_v35  ;;  %v1234_v34 = vld [vmem:[%s1971_s23 + $0xe0] sm:$0xff] }
 0x152   : > { %v1325_v37 = vadd.f32 %v1261_v27, %v1197_v33  ;;  %v907_v42 = vpop.f32.mrf.mxu0  ;;  %v1035_v43 = vpop.f32.mrf.mxu1  ;;  %v1266_v35 = vld [vmem:[%s1971_s23 + $0x1e0] sm:$0xff] }
 0x153   : > { %v1357_v44 = vmax.f32 %v1293_v36, 0.0  ;;  %v1166_v46 = vadd.f32 %v1976_v12, %v1095_v38  ;;  %v1198_v47 = vadd.f32 %v1976_v12, %v1127_v39 }
 0x154   : > { %v1389_v45 = vmax.f32 %v1325_v37, 0.0  ;;  %v908_v48 = vpop.f32.mrf.mxu0  ;;  %v1036_v49 = vpop.f32.mrf.mxu1 }
 0x155   : > { %1421 = vst.msk [vmem:[%s1990_s29 + $0xb8] sm:$0xff] %vm678_vm0, %v1357_v44  ;;  %v1294_v50 = vadd.f32 %v1230_v40, %v1166_v46  ;;  %v1326_v51 = vadd.f32 %v1262_v41, %v1198_v47  ;;  %v1096_v52 = vmul.f32 %v1965_v10, %v908_v48  ;;  %v1128_v53 = vmul.f32 %v1965_v10, %v1036_v49  ;;  %v1235_v48 = vld [vmem:[%s1971_s23 + $0xe8] sm:$0xff] }
 0x156   : > { %1453 = vst.msk [vmem:[%s1990_s29 + $0x1b8] sm:$0xff] %vm678_vm0, %v1389_v45  ;;  %v910_v56 = vpop.f32.mrf.mxu0  ;;  %v1038_v57 = vpop.f32.mrf.mxu1  ;;  %v1267_v49 = vld [vmem:[%s1971_s23 + $0x1e8] sm:$0xff] }
 0x157   : > { %v1358_v58 = vmax.f32 %v1294_v50, 0.0  ;;  %v1390_v59 = vmax.f32 %v1326_v51, 0.0  ;;  %v1167_v60 = vadd.f32 %v1976_v12, %v1096_v52  ;;  %v1199_v61 = vadd.f32 %v1976_v12, %v1128_v53 }
 0x158   : > { %v913_v62 = vpop.f32.mrf.mxu0  ;;  %v1041_v63 = vpop.f32.mrf.mxu1 }
 0x159   : > { %1422 = vst.msk [vmem:[%s1990_s29 + $0xc0] sm:$0xff] %vm678_vm0, %v1358_v58  ;;  %1454 = vst.msk [vmem:[%s1990_s29 + $0x1c0] sm:$0xff] %vm678_vm0, %v1390_v59  ;;  %v1295_v0 = vadd.f32 %v1231_v54, %v1167_v60  ;;  %v1327_v1 = vadd.f32 %v1263_v55, %v1199_v61  ;;  %v1097_v2 = vmul.f32 %v1965_v10, %v913_v62  ;;  %v1236_v62 = vld [vmem:[%s1971_s23 + $0xf0] sm:$0xff] }
 0x15a   : > { %v1129_v3 = vmul.f32 %v1965_v10, %v1041_v63  ;;  %v915_v6 = vpop.f32.mrf.mxu0  ;;  %v1043_v7 = vpop.f32.mrf.mxu1  ;;  %v1268_v63 = vld [vmem:[%s1971_s23 + $0x1f0] sm:$0xff] }
 0x15b   : > { %v1359_v8 = vmax.f32 %v1295_v0, 0.0  ;;  %v1391_v9 = vmax.f32 %v1327_v1, 0.0  ;;  %v1168_v11 = vadd.f32 %v1976_v12, %v1097_v2 }
 0x15c   : > { %v1200_v13 = vadd.f32 %v1976_v12, %v1129_v3  ;;  %v916_v14 = vpop.f32.mrf.mxu0  ;;  %v1044_v15 = vpop.f32.mrf.mxu1 }
 0x15d   : > { %1423 = vst.msk [vmem:[%s1990_s29 + $0xc8] sm:$0xff] %vm678_vm0, %v1359_v8  ;;  %1455 = vst.msk [vmem:[%s1990_s29 + $0x1c8] sm:$0xff] %vm678_vm0, %v1391_v9  ;;  %v1296_v16 = vadd.f32 %v1232_v4, %v1168_v11  ;;  %v1098_v18 = vmul.f32 %v1965_v10, %v916_v14  ;;  %v1130_v19 = vmul.f32 %v1965_v10, %v1044_v15  ;;  %v1237_v14 = vld [vmem:[%s1971_s23 + $0xf8] sm:$0xff] }
 0x15e   : > { %v1328_v17 = vadd.f32 %v1264_v5, %v1200_v13  ;;  %v918_v22 = vpop.f32.mrf.mxu0  ;;  %v1046_v23 = vpop.f32.mrf.mxu1  ;;  %v1269_v15 = vld [vmem:[%s1971_s23 + $0x1f8] sm:$0xff] }
 0x15f   : > { %v1360_v24 = vmax.f32 %v1296_v16, 0.0  ;;  %v1169_v26 = vadd.f32 %v1976_v12, %v1098_v18  ;;  %v1201_v27 = vadd.f32 %v1976_v12, %v1130_v19 }
 0x160   : > { %v1392_v25 = vmax.f32 %v1328_v17, 0.0  ;;  %v921_v28 = vpop.f32.mrf.mxu0  ;;  %v1049_v29 = vpop.f32.mrf.mxu1 }
 0x161   : > { %1424 = vst.msk [vmem:[%s1990_s29 + $0xd0] sm:$0xff] %vm678_vm0, %v1360_v24  ;;  %v1297_v30 = vadd.f32 %v1233_v20, %v1169_v26  ;;  %v1329_v31 = vadd.f32 %v1265_v21, %v1201_v27  ;;  %v1099_v32 = vmul.f32 %v1965_v10, %v921_v28  ;;  %v1131_v33 = vmul.f32 %v1965_v10, %v1049_v29 }
 0x162   : > { %1456 = vst.msk [vmem:[%s1990_s29 + $0x1d0] sm:$0xff] %vm678_vm0, %v1392_v25  ;;  %v923_v36 = vpop.f32.mrf.mxu0  ;;  %v1051_v37 = vpop.f32.mrf.mxu1 }
 0x163   : > { %v1361_v38 = vmax.f32 %v1297_v30, 0.0  ;;  %v1393_v39 = vmax.f32 %v1329_v31, 0.0  ;;  %v1170_v40 = vadd.f32 %v1976_v12, %v1099_v32  ;;  %v1202_v41 = vadd.f32 %v1976_v12, %v1131_v33 }
 0x164   : > { %v924_v42 = vpop.f32.mrf.mxu0  ;;  %v1052_v43 = vpop.f32.mrf.mxu1 }
 0x165   : > { %1425 = vst.msk [vmem:[%s1990_s29 + $0xd8] sm:$0xff] %vm678_vm0, %v1361_v38  ;;  %1457 = vst.msk [vmem:[%s1990_s29 + $0x1d8] sm:$0xff] %vm678_vm0, %v1393_v39  ;;  %v1298_v44 = vadd.f32 %v1234_v34, %v1170_v40  ;;  %v1330_v45 = vadd.f32 %v1266_v35, %v1202_v41  ;;  %v1100_v46 = vmul.f32 %v1965_v10, %v924_v42 }
 0x166   : > { %v1132_v47 = vmul.f32 %v1965_v10, %v1052_v43  ;;  %v926_v50 = vpop.f32.mrf.mxu0  ;;  %v1054_v51 = vpop.f32.mrf.mxu1 }
 0x167   : > { %v1362_v52 = vmax.f32 %v1298_v44, 0.0  ;;  %v1394_v53 = vmax.f32 %v1330_v45, 0.0  ;;  %v1171_v54 = vadd.f32 %v1976_v12, %v1100_v46 }
 0x168   : > { %v1203_v55 = vadd.f32 %v1976_v12, %v1132_v47  ;;  %v929_v56 = vpop.f32.mrf.mxu0  ;;  %v1057_v57 = vpop.f32.mrf.mxu1 }
 0x169   : > { %1426 = vst.msk [vmem:[%s1990_s29 + $0xe0] sm:$0xff] %vm678_vm0, %v1362_v52  ;;  %1458 = vst.msk [vmem:[%s1990_s29 + $0x1e0] sm:$0xff] %vm678_vm0, %v1394_v53  ;;  %v1299_v58 = vadd.f32 %v1235_v48, %v1171_v54  ;;  %v1101_v60 = vmul.f32 %v1965_v10, %v929_v56  ;;  %v1133_v61 = vmul.f32 %v1965_v10, %v1057_v57 }
 0x16a   : > { %v1331_v59 = vadd.f32 %v1267_v49, %v1203_v55  ;;  %v931_v0 = vpop.f32.mrf.mxu0  ;;  %v1059_v1 = vpop.f32.mrf.mxu1 }
 0x16b   : > { %v1363_v2 = vmax.f32 %v1299_v58, 0.0  ;;  %v1172_v4 = vadd.f32 %v1976_v12, %v1101_v60  ;;  %v1204_v5 = vadd.f32 %v1976_v12, %v1133_v61 }
 0x16c   : > { %v1395_v3 = vmax.f32 %v1331_v59, 0.0  ;;  %v932_v6 = vpop.f32.mrf.mxu0  ;;  %v1060_v7 = vpop.f32.mrf.mxu1 }
 0x16d   : > { %1427 = vst.msk [vmem:[%s1990_s29 + $0xe8] sm:$0xff] %vm678_vm0, %v1363_v2  ;;  %v1300_v8 = vadd.f32 %v1236_v62, %v1172_v4  ;;  %v1332_v9 = vadd.f32 %v1268_v63, %v1204_v5  ;;  %v1102_v11 = vmul.f32 %v1965_v10, %v932_v6  ;;  %v1134_v13 = vmul.f32 %v1965_v10, %v1060_v7 }
 0x16e   : > { %1459 = vst.msk [vmem:[%s1990_s29 + $0x1e8] sm:$0xff] %vm678_vm0, %v1395_v3  ;;  %v934_v16 = vpop.f32.mrf.mxu0  ;;  %v1062_v17 = vpop.f32.mrf.mxu1 }
 0x16f   : > { %v1364_v18 = vmax.f32 %v1300_v8, 0.0  ;;  %v1396_v19 = vmax.f32 %v1332_v9, 0.0  ;;  %v1173_v20 = vadd.f32 %v1976_v12, %v1102_v11  ;;  %v1205_v21 = vadd.f32 %v1976_v12, %v1134_v13 }
 0x171   : > { %1428 = vst.msk [vmem:[%s1990_s29 + $0xf0] sm:$0xff] %vm678_vm0, %v1364_v18  ;;  %1460 = vst.msk [vmem:[%s1990_s29 + $0x1f0] sm:$0xff] %vm678_vm0, %v1396_v19  ;;  %v1301_v22 = vadd.f32 %v1237_v14, %v1173_v20  ;;  %v1333_v23 = vadd.f32 %v1269_v15, %v1205_v21 }
 0x173   : > { %v1365_v24 = vmax.f32 %v1301_v22, 0.0  ;;  %v1397_v25 = vmax.f32 %v1333_v23, 0.0 }
 0x175   : > { %1429 = vst.msk [vmem:[%s1990_s29 + $0xf8] sm:$0xff] %vm678_vm0, %v1365_v24  ;;  %1461 = vst.msk [vmem:[%s1990_s29 + $0x1f8] sm:$0xff] %vm678_vm0, %v1397_v25 }
 0x176 PF: > { %s15_s18 = sadd.s32 1, %s1790_s18  }
 0x177   : > { %p12_p4 = scmp.ge.s32.totalorder %s15_s18, 4  }
 0x179   :  { %14 = sbr.rel (!%p12_p4) target bundleno = 1 (0x1), region = 73 }

// kernel: hdispnet_forward.10
= control target key start
LH: loop header
LB: loop body
LE: loop exit
PB: predicated region body
PF: predicated region fallthrough
CT: control target
= control target key end

     0   :  { %s764_s15 = smov 0   ;;  %s917_s0 = inlined_call_operand.vmem [shape: bf16[256,144], index: 0, kind: input, shape index: {}]   ;;  %s918_s1 = inlined_call_operand.vmem [shape: bf16[144,32], index: 1, kind: input, shape index: {}]   ;;  %s919_s2 = inlined_call_operand.vmem [shape: f32[1,32], index: 2, kind: input, shape index: {}]   ;;  %s920_s3 = inlined_call_operand.vmem [shape: f32[1,32], index: 3, kind: input, shape index: {}]   ;;  %s921_s4 = inlined_call_operand.vmem [shape: f32[256,32], index: 4, kind: output, shape index: {}]  }
   0x1 LB: > { %s622_s16 = sadd.s32 4294967295, %s736_s15   ;;  %p626_p0 = scmp.ge.s32.totalorder %s736_s15, 1  ;;  %s736_s15 = sphi %s764_s15, %s14_s15  }
   0x2   : > { %p164_p1 = scmp.lt.s32.totalorder %s736_s15, 3 }
   0x4   : > { %p165_p2 = pnand %p626_p0, %p164_p1 }
   0x5   : > { %s627_s19 = sshll.u32 (!%p165_p2), %s622_s16, 4 }
   0x6   : > { %168 = sbr.rel (%p165_p2) target bundleno = 276 (0x114), region = 36  ;;  %p192_p3 = scmp.lt.s32.totalorder (!%p165_p2), %s627_s19, 31 }
   0xb   : > { %v697_v0 = vld [vmem:[%s918_s1 + $0x38] sm:$0xff]   ;;  %v738_v1 = vmov 0   ;;  %v698_v2 = vld [vmem:[%s918_s1 + $0x30] sm:$0xff]   ;;  %s923_s19 = smov (!%p192_p3, %s627_s19), 31  ;;  %v699_v3 = vld [vmem:[%s918_s1 + $0x28] sm:$0xff]   ;;  %vm365_vm0 = vcmask 130048  }
   0xc   : > { %390 = vmatprep.subr.bf16.mxu0 %v738_v1  ;;  %670 = vmatprep.subr.bf16.mxu1 %v738_v1  ;;  %s669_s24 = sshll.u32 %s923_s19, 3  ;;  %v700_v4 = vld [vmem:[%s918_s1 + $0x20] sm:$0xff]   ;;  %v701_v7 = vld [vmem:[%s918_s1 + $0x18] sm:$0xff]   ;;  %v702_v8 = vld [vmem:[%s918_s1 + $0x10] sm:$0xff]   ;;  %vm549_vm1 = vcmask 261120  }
   0xd   : > { %391 = vmatpush1.bf16.msra.mxu0 %v697_v0  ;;  %679 = vmatpush1.bf16.msra.mxu1 %v697_v0  ;;  %s789_s27 = scalar_lea.vmem %s917_s0, %s669_s24  ;;  %v703_v9 = vld [vmem:[%s918_s1 + $0x8] sm:$0xff]   ;;  %v704_v10 = vld [vmem:[%s918_s1] sm:$0xff]   ;;  %s852_s22 = scalar_lea.vmem %s921_s4, %s669_s24 }
   0xe   : > { %392 = vmatprep.subr.bf16.mxu0 %v738_v1  ;;  %671 = vmatprep.subr.bf16.mxu1 %v738_v1  ;;  %v708_v5 = vld [vmem:[%s789_s27 + $0x4] ss:$8 sps:$4 sm:$0xff]   ;;  %v706_v12 = vld [vmem:[%s789_s27] ss:$8 sps:$4 sm:$0xff]   ;;  %v712_v14 = vld [vmem:[%s789_s27 + $0x14] ss:$8 sps:$4 sm:$0xff]  }
   0xf   : > { %v711_v6 = vld [vmem:[%s789_s27 + $0x44] ss:$8 sps:$4 sm:$0xff]   ;;  %657 = vmatprep.mubr.msk.bf16.mxu0 %vm365_vm0, %v708_v5  ;;  %v709_v13 = vld [vmem:[%s789_s27 + $0x40] ss:$8 sps:$4 sm:$0xff]   ;;  %v714_v15 = vld [vmem:[%s789_s27 + $0x54] ss:$8 sps:$4 sm:$0xff]  }
  0x10   : > { %661 = vmatprep.mubr.msk.bf16.mxu1 %vm365_vm0, %v711_v6  ;;  %v705_v11 = vld [vmem:[%s918_s1 + $0x40] sm:$0xff]   ;;  %v716_v16 = vld [vmem:[%s789_s27 + $0x10] ss:$8 sps:$4 sm:$0xff]   ;;  %v724_v22 = vld [vmem:[%s789_s27 + $0x34] ss:$8 sps:$4 sm:$0xff]  }
  0x11   : > { %393 = vmatpush1.bf16.msra.mxu0 %v698_v2  ;;  %680 = vmatpush1.bf16.msra.mxu1 %v698_v2  ;;  %v717_v17 = vld [vmem:[%s789_s27 + $0x50] ss:$8 sps:$4 sm:$0xff]   ;;  %v718_v18 = vld [vmem:[%s789_s27 + $0x24] ss:$8 sps:$4 sm:$0xff]   ;;  %v722_v20 = vld [vmem:[%s789_s27 + $0x20] ss:$8 sps:$4 sm:$0xff]  }
  0x12   : > { %394 = vmatprep.subr.bf16.mxu0 %v738_v1  ;;  %672 = vmatprep.subr.bf16.mxu1 %v738_v1  ;;  %v720_v19 = vld [vmem:[%s789_s27 + $0x64] ss:$8 sps:$4 sm:$0xff]   ;;  %v723_v21 = vld [vmem:[%s789_s27 + $0x60] ss:$8 sps:$4 sm:$0xff]   ;;  %v726_v23 = vld [vmem:[%s789_s27 + $0x74] ss:$8 sps:$4 sm:$0xff]  }
  0x13   : > { %v728_v24 = vld [vmem:[%s789_s27 + $0x30] ss:$8 sps:$4 sm:$0xff]   ;;  %v836_v26 = vld [vmem:[%s919_s2] ss:$0 sm:$0xff] }
  0x14   : > { %v729_v25 = vld [vmem:[%s789_s27 + $0x70] ss:$8 sps:$4 sm:$0xff]   ;;  %v841_v28 = vld [vmem:[%s920_s3] ss:$0 sm:$0xff] }
  0x15   : > { %395 = vmatpush1.bf16.msra.mxu0 %v699_v3  ;;  %681 = vmatpush1.bf16.msra.mxu1 %v699_v3 }
  0x16   : > { %396 = vmatprep.subr.bf16.mxu0 %v738_v1  ;;  %673 = vmatprep.subr.bf16.mxu1 %v738_v1 }
  0x19   : > { %397 = vmatpush1.bf16.msra.mxu0 %v700_v4  ;;  %682 = vmatpush1.bf16.msra.mxu1 %v700_v4 }
  0x1a   : > { %398 = vmatprep.subr.bf16.mxu0 %v738_v1  ;;  %674 = vmatprep.subr.bf16.mxu1 %v738_v1 }
  0x1d   : > { %399 = vmatpush1.bf16.msra.mxu0 %v701_v7  ;;  %683 = vmatpush1.bf16.msra.mxu1 %v701_v7 }
  0x1e   : > { %400 = vmatprep.subr.bf16.mxu0 %v738_v1  ;;  %675 = vmatprep.subr.bf16.mxu1 %v738_v1 }
  0x21   : > { %401 = vmatpush1.bf16.msra.mxu0 %v702_v8  ;;  %684 = vmatpush1.bf16.msra.mxu1 %v702_v8 }
  0x22   : > { %402 = vmatprep.subr.bf16.mxu0 %v738_v1  ;;  %676 = vmatprep.subr.bf16.mxu1 %v738_v1 }
  0x25   : > { %403 = vmatpush1.bf16.msra.mxu0 %v703_v9  ;;  %685 = vmatpush1.bf16.msra.mxu1 %v703_v9 }
  0x26   : > { %404 = vmatprep.subr.bf16.mxu0 %v738_v1  ;;  %677 = vmatprep.subr.bf16.mxu1 %v738_v1 }
  0x29   : > { %405 = vmatpush1.bf16.msra.mxu0 %v704_v10  ;;  %686 = vmatpush1.bf16.msra.mxu1 %v704_v10 }
  0x2a   : > { %420 = vmatprep.subr.bf16.mxu0 %v738_v1  ;;  %678 = vmatprep.subr.bf16.mxu1 %v738_v1 }
  0x2d   : > { %421 = vmatpush2.bf16.msra.mxu0 %v705_v11  ;;  %687 = vmatpush2.bf16.msra.mxu1 %v705_v11 }
  0x30   : > { %423 = vmatmul.mubr.bf16.vlgmr.msra.gmra.mxu0 %v706_v12  ;;  %455 = vmatmul.mubr.bf16.vlgmr.msra.gmra.mxu1 %v709_v13 }
  0x31   : > { %658 = vmatprep.mubr.msk.bf16.mxu0 %vm365_vm0, %v712_v14  ;;  %662 = vmatprep.mubr.msk.bf16.mxu1 %vm365_vm0, %v714_v15 }
  0x38   : > { %431 = vmatmul.mubr.bf16.gmra.mxu0 %v716_v16  ;;  %463 = vmatmul.mubr.bf16.gmra.mxu1 %v717_v17 }
  0x39   : > { %659 = vmatprep.mubr.msk.bf16.mxu0 %vm365_vm0, %v718_v18  ;;  %663 = vmatprep.mubr.msk.bf16.mxu1 %vm365_vm0, %v720_v19 }
  0x40   : > { %439 = vmatmul.mubr.bf16.gmra.mxu0 %v722_v20  ;;  %471 = vmatmul.mubr.bf16.gmra.mxu1 %v723_v21 }
  0x41   : > { %660 = vmatprep.mubr.msk.bf16.mxu0 %vm365_vm0, %v724_v22  ;;  %664 = vmatprep.mubr.msk.bf16.mxu1 %vm365_vm0, %v726_v23 }
  0x48   : > { %447 = vmatmul.mubr.bf16.gmra.mxu0 %v728_v24  ;;  %479 = vmatmul.mubr.bf16.gmra.mxu1 %v729_v25 }
  0xf0   : > { %v424_v27 = vpop.f32.mrf.mxu0  ;;  %v456_v29 = vpop.f32.mrf.mxu1 }
  0xf1   : > { %v494_v30 = vmul.f32 %v836_v26, %v424_v27  ;;  %v502_v31 = vmul.f32 %v836_v26, %v456_v29 }
  0xf2   : > { %v426_v32 = vpop.f32.mrf.mxu0  ;;  %v458_v33 = vpop.f32.mrf.mxu1 }
  0xf3   : > { %v517_v34 = vadd.f32 %v841_v28, %v494_v30  ;;  %v525_v35 = vadd.f32 %v841_v28, %v502_v31 }
  0xf4   : > { %v427_v36 = vpop.f32.mrf.mxu0  ;;  %v459_v37 = vpop.f32.mrf.mxu1 }
  0xf5   : > { %v533_v38 = vmax.f32 %v517_v34, 0.0  ;;  %v541_v39 = vmax.f32 %v525_v35, 0.0  ;;  %v495_v40 = vmul.f32 %v836_v26, %v427_v36  ;;  %v503_v41 = vmul.f32 %v836_v26, %v459_v37 }
  0xf6   : > { %v429_v42 = vpop.f32.mrf.mxu0  ;;  %v461_v43 = vpop.f32.mrf.mxu1 }
  0xf7   : > { %550 = vst.msk [vmem:[%s852_s22] sm:$0xff] %vm549_vm1, %v533_v38  ;;  %558 = vst.msk [vmem:[%s852_s22 + $0x40] sm:$0xff] %vm549_vm1, %v541_v39  ;;  %v518_v44 = vadd.f32 %v841_v28, %v495_v40  ;;  %v526_v45 = vadd.f32 %v841_v28, %v503_v41 }
  0xf8   : > { %v432_v46 = vpop.f32.mrf.mxu0  ;;  %v464_v47 = vpop.f32.mrf.mxu1 }
  0xf9   : > { %v534_v48 = vmax.f32 %v518_v44, 0.0  ;;  %v542_v49 = vmax.f32 %v526_v45, 0.0  ;;  %v496_v50 = vmul.f32 %v836_v26, %v432_v46  ;;  %v504_v51 = vmul.f32 %v836_v26, %v464_v47 }
  0xfa   : > { %v434_v52 = vpop.f32.mrf.mxu0  ;;  %v466_v53 = vpop.f32.mrf.mxu1 }
  0xfb   : > { %551 = vst.msk [vmem:[%s852_s22 + $0x8] sm:$0xff] %vm549_vm1, %v534_v48  ;;  %559 = vst.msk [vmem:[%s852_s22 + $0x48] sm:$0xff] %vm549_vm1, %v542_v49  ;;  %v519_v54 = vadd.f32 %v841_v28, %v496_v50  ;;  %v527_v55 = vadd.f32 %v841_v28, %v504_v51 }
  0xfc   : > { %v435_v56 = vpop.f32.mrf.mxu0  ;;  %v467_v57 = vpop.f32.mrf.mxu1 }
  0xfd   : > { %v535_v58 = vmax.f32 %v519_v54, 0.0  ;;  %v543_v59 = vmax.f32 %v527_v55, 0.0  ;;  %v497_v60 = vmul.f32 %v836_v26, %v435_v56  ;;  %v505_v61 = vmul.f32 %v836_v26, %v467_v57 }
  0xfe   : > { %v437_v62 = vpop.f32.mrf.mxu0  ;;  %v469_v63 = vpop.f32.mrf.mxu1 }
  0xff   : > { %552 = vst.msk [vmem:[%s852_s22 + $0x10] sm:$0xff] %vm549_vm1, %v535_v58  ;;  %560 = vst.msk [vmem:[%s852_s22 + $0x50] sm:$0xff] %vm549_vm1, %v543_v59  ;;  %v520_v0 = vadd.f32 %v841_v28, %v497_v60  ;;  %v528_v1 = vadd.f32 %v841_v28, %v505_v61 }
 0x100   : > { %v440_v2 = vpop.f32.mrf.mxu0  ;;  %v472_v3 = vpop.f32.mrf.mxu1 }
 0x101   : > { %v536_v4 = vmax.f32 %v520_v0, 0.0  ;;  %v544_v5 = vmax.f32 %v528_v1, 0.0  ;;  %v498_v6 = vmul.f32 %v836_v26, %v440_v2  ;;  %v506_v7 = vmul.f32 %v836_v26, %v472_v3 }
 0x102   : > { %v442_v8 = vpop.f32.mrf.mxu0  ;;  %v474_v9 = vpop.f32.mrf.mxu1 }
 0x103   : > { %553 = vst.msk [vmem:[%s852_s22 + $0x18] sm:$0xff] %vm549_vm1, %v536_v4  ;;  %561 = vst.msk [vmem:[%s852_s22 + $0x58] sm:$0xff] %vm549_vm1, %v544_v5  ;;  %v521_v10 = vadd.f32 %v841_v28, %v498_v6  ;;  %v529_v11 = vadd.f32 %v841_v28, %v506_v7 }
 0x104   : > { %v443_v12 = vpop.f32.mrf.mxu0  ;;  %v475_v13 = vpop.f32.mrf.mxu1 }
 0x105   : > { %v537_v14 = vmax.f32 %v521_v10, 0.0  ;;  %v545_v15 = vmax.f32 %v529_v11, 0.0  ;;  %v499_v16 = vmul.f32 %v836_v26, %v443_v12  ;;  %v507_v17 = vmul.f32 %v836_v26, %v475_v13 }
 0x106   : > { %v445_v18 = vpop.f32.mrf.mxu0  ;;  %v477_v19 = vpop.f32.mrf.mxu1 }
 0x107   : > { %554 = vst.msk [vmem:[%s852_s22 + $0x20] sm:$0xff] %vm549_vm1, %v537_v14  ;;  %562 = vst.msk [vmem:[%s852_s22 + $0x60] sm:$0xff] %vm549_vm1, %v545_v15  ;;  %v522_v20 = vadd.f32 %v841_v28, %v499_v16  ;;  %v530_v21 = vadd.f32 %v841_v28, %v507_v17 }
 0x108   : > { %v448_v22 = vpop.f32.mrf.mxu0  ;;  %v480_v23 = vpop.f32.mrf.mxu1 }
 0x109   : > { %v538_v24 = vmax.f32 %v522_v20, 0.0  ;;  %v546_v25 = vmax.f32 %v530_v21, 0.0  ;;  %v500_v27 = vmul.f32 %v836_v26, %v448_v22  ;;  %v508_v29 = vmul.f32 %v836_v26, %v480_v23 }
 0x10a   : > { %v450_v30 = vpop.f32.mrf.mxu0  ;;  %v482_v31 = vpop.f32.mrf.mxu1 }
 0x10b   : > { %555 = vst.msk [vmem:[%s852_s22 + $0x28] sm:$0xff] %vm549_vm1, %v538_v24  ;;  %563 = vst.msk [vmem:[%s852_s22 + $0x68] sm:$0xff] %vm549_vm1, %v546_v25  ;;  %v523_v32 = vadd.f32 %v841_v28, %v500_v27  ;;  %v531_v33 = vadd.f32 %v841_v28, %v508_v29 }
 0x10c   : > { %v451_v34 = vpop.f32.mrf.mxu0  ;;  %v483_v35 = vpop.f32.mrf.mxu1 }
 0x10d   : > { %v539_v36 = vmax.f32 %v523_v32, 0.0  ;;  %v547_v37 = vmax.f32 %v531_v33, 0.0  ;;  %v501_v38 = vmul.f32 %v836_v26, %v451_v34  ;;  %v509_v39 = vmul.f32 %v836_v26, %v483_v35 }
 0x10e   : > { %v453_v40 = vpop.f32.mrf.mxu0  ;;  %v485_v41 = vpop.f32.mrf.mxu1 }
 0x10f   : > { %556 = vst.msk [vmem:[%s852_s22 + $0x30] sm:$0xff] %vm549_vm1, %v539_v36  ;;  %564 = vst.msk [vmem:[%s852_s22 + $0x70] sm:$0xff] %vm549_vm1, %v547_v37  ;;  %v524_v42 = vadd.f32 %v841_v28, %v501_v38  ;;  %v532_v43 = vadd.f32 %v841_v28, %v509_v39 }
 0x111   : > { %v540_v44 = vmax.f32 %v524_v42, 0.0  ;;  %v548_v45 = vmax.f32 %v532_v43, 0.0 }
 0x113   : > { %557 = vst.msk [vmem:[%s852_s22 + $0x38] sm:$0xff] %vm549_vm1, %v540_v44  ;;  %565 = vst.msk [vmem:[%s852_s22 + $0x78] sm:$0xff] %vm549_vm1, %v548_v45 }
 0x114 PF: > { %s14_s15 = sadd.s32 1, %s736_s15  }
 0x115   : > { %p11_p4 = scmp.ge.s32.totalorder %s14_s15, 4  }
 0x117   :  { %13 = sbr.rel (!%p11_p4) target bundleno = 1 (0x1), region = 66 }

// kernel: hdispnet_forward.11
= control target key start
LH: loop header
LB: loop body
LE: loop exit
PB: predicated region body
PF: predicated region fallthrough
CT: control target
= control target key end

     0   :  { %s1119_s15 = smov 0   ;;  %s1328_s0 = inlined_call_operand.vmem [shape: bf16[256,288], index: 0, kind: input, shape index: {}]   ;;  %s1329_s1 = inlined_call_operand.vmem [shape: bf16[288,32], index: 1, kind: input, shape index: {}]   ;;  %s1330_s2 = inlined_call_operand.vmem [shape: f32[1,32], index: 2, kind: input, shape index: {}]   ;;  %s1331_s3 = inlined_call_operand.vmem [shape: f32[1,32], index: 3, kind: input, shape index: {}]   ;;  %s1332_s4 = inlined_call_operand.vmem [shape: f32[256,32], index: 4, kind: output, shape index: {}]  }
   0x1 LB: > { %s854_s16 = sadd.s32 4294967295, %s1092_s15   ;;  %p858_p0 = scmp.ge.s32.totalorder %s1092_s15, 1  ;;  %s1092_s15 = sphi %s1119_s15, %s14_s15  }
   0x2   : > { %p164_p1 = scmp.lt.s32.totalorder %s1092_s15, 3 }
   0x4   : > { %p165_p2 = pnand %p858_p0, %p164_p1 }
   0x5   : > { %s859_s19 = sshll.u32 (!%p165_p2), %s854_s16, 4 }
   0x6   : > { %168 = sbr.rel (%p165_p2) target bundleno = 295 (0x127), region = 36  ;;  %p192_p3 = scmp.lt.s32.totalorder (!%p165_p2), %s859_s19, 31 }
   0xb   : > { %v1036_v0 = vld [vmem:[%s1329_s1 + $0x78] sm:$0xff]   ;;  %v1038_v2 = vld [vmem:[%s1329_s1 + $0x70] sm:$0xff]   ;;  %v1040_v4 = vld [vmem:[%s1329_s1 + $0x68] sm:$0xff]   ;;  %s1334_s19 = smov (!%p192_p3, %s859_s19), 31  ;;  %vm501_vm0 = vcmask 261120  }
   0xc   : > { %v1037_v1 = vld [vmem:[%s1329_s1 + $0x38] sm:$0xff]   ;;  %917 = vmatprep.subr.bf16.mxu0 %v1036_v0  ;;  %1011 = vmatprep.subr.bf16.mxu1 %v1036_v0  ;;  %v1039_v3 = vld [vmem:[%s1329_s1 + $0x30] sm:$0xff]   ;;  %v1041_v5 = vld [vmem:[%s1329_s1 + $0x28] sm:$0xff]   ;;  %s1027_s6 = smul.u32 12, %s1334_s19  ;;  %s862_s12 = sshll.u32 %s1334_s19, 3 }
   0xd   : > { %918 = vmatpush3.bf16.msra.mxu0 %v1037_v1  ;;  %1019 = vmatpush3.bf16.msra.mxu1 %v1037_v1  ;;  %v1042_v6 = vld [vmem:[%s1329_s1 + $0x60] sm:$0xff]   ;;  %v1044_v8 = vld [vmem:[%s1329_s1 + $0x58] sm:$0xff]   ;;  %v1046_v10 = vld [vmem:[%s1329_s1 + $0x50] sm:$0xff]   ;;  %s1254_s16 = scalar_lea.vmem %s1332_s4, %s862_s12 }
   0xe   : > { %919 = vmatprep.subr.bf16.mxu0 %v1038_v2  ;;  %1012 = vmatprep.subr.bf16.mxu1 %v1038_v2  ;;  %v1043_v7 = vld [vmem:[%s1329_s1 + $0x20] sm:$0xff]   ;;  %s1160_s13 = scalar_lea.vmem %s1328_s0, %s1027_s6  ;;  %v1045_v9 = vld [vmem:[%s1329_s1 + $0x18] sm:$0xff]   ;;  %v1047_v13 = vld [vmem:[%s1329_s1 + $0x10] sm:$0xff]  }
   0xf   : > { %v1054_v11 = vld [vmem:[%s1160_s13 + $0x4] ss:$12 sps:$4 sm:$0xff]   ;;  %v1057_v12 = vld [vmem:[%s1160_s13 + $0x94] ss:$12 sps:$4 sm:$0xff]   ;;  %v1048_v14 = vld [vmem:[%s1329_s1 + $0x48] sm:$0xff]  }
  0x10   : > { %558 = vmatprep.mubr.bf16.mxu0 %v1054_v11  ;;  %606 = vmatprep.mubr.bf16.mxu1 %v1057_v12  ;;  %v1049_v15 = vld [vmem:[%s1329_s1 + $0x8] sm:$0xff]   ;;  %v1050_v16 = vld [vmem:[%s1329_s1 + $0x40] sm:$0xff]   ;;  %v1055_v20 = vld [vmem:[%s1160_s13 + $0x90] ss:$12 sps:$4 sm:$0xff]  }
  0x11   : > { %920 = vmatpush3.bf16.msra.mxu0 %v1039_v3  ;;  %1020 = vmatpush3.bf16.msra.mxu1 %v1039_v3  ;;  %v1051_v17 = vld [vmem:[%s1329_s1] sm:$0xff]   ;;  %v1058_v19 = vld [vmem:[%s1329_s1 + $0x88] sm:$0xff]   ;;  %v1069_v28 = vld [vmem:[%s1160_s13 + $0x30] ss:$12 sps:$4 sm:$0xff]  }
  0x12   : > { %921 = vmatprep.subr.bf16.mxu0 %v1040_v4  ;;  %1013 = vmatprep.subr.bf16.mxu1 %v1040_v4  ;;  %v1052_v18 = vld [vmem:[%s1160_s13] ss:$12 sps:$4 sm:$0xff]   ;;  %v1059_v21 = vld [vmem:[%s1160_s13 + $0x1c] ss:$12 sps:$4 sm:$0xff]   ;;  %v1063_v24 = vld [vmem:[%s1160_s13 + $0x18] ss:$12 sps:$4 sm:$0xff]  }
  0x13   : > { %v1061_v22 = vld [vmem:[%s1160_s13 + $0xac] ss:$12 sps:$4 sm:$0xff]   ;;  %v1065_v23 = vld [vmem:[%s1329_s1 + $0x80] sm:$0xff]   ;;  %v1064_v25 = vld [vmem:[%s1160_s13 + $0xa8] ss:$12 sps:$4 sm:$0xff]  }
  0x14   : > { %v1066_v26 = vld [vmem:[%s1160_s13 + $0x34] ss:$12 sps:$4 sm:$0xff]   ;;  %v1071_v30 = vld [vmem:[%s1160_s13 + $0x4c] ss:$12 sps:$4 sm:$0xff]   ;;  %v1075_v33 = vld [vmem:[%s1160_s13 + $0x50] ss:$12 sps:$4 sm:$0xff]  }
  0x15   : > { %922 = vmatpush3.bf16.msra.mxu0 %v1041_v5  ;;  %1021 = vmatpush3.bf16.msra.mxu1 %v1041_v5  ;;  %v1068_v27 = vld [vmem:[%s1160_s13 + $0x8] ss:$12 sps:$4 sm:$0xff]   ;;  %v1070_v29 = vld [vmem:[%s1160_s13 + $0x20] ss:$12 sps:$4 sm:$0xff]   ;;  %v1073_v31 = vld [vmem:[%s1160_s13 + $0x38] ss:$12 sps:$4 sm:$0xff]  }
  0x16   : > { %923 = vmatprep.subr.bf16.mxu0 %v1042_v6  ;;  %1014 = vmatprep.subr.bf16.mxu1 %v1042_v6  ;;  %v1074_v32 = vld [vmem:[%s1160_s13 + $0x48] ss:$12 sps:$4 sm:$0xff]   ;;  %v1076_v34 = vld [vmem:[%s1160_s13 + $0x64] ss:$12 sps:$4 sm:$0xff]   ;;  %v1079_v36 = vld [vmem:[%s1160_s13 + $0x60] ss:$12 sps:$4 sm:$0xff]  }
  0x17   : > { %v1078_v35 = vld [vmem:[%s1160_s13 + $0x68] ss:$12 sps:$4 sm:$0xff]   ;;  %v1080_v37 = vld [vmem:[%s1160_s13 + $0x80] ss:$12 sps:$4 sm:$0xff]   ;;  %v1083_v39 = vld [vmem:[%s1160_s13 + $0x98] ss:$12 sps:$4 sm:$0xff]  }
  0x18   : > { %v1081_v38 = vld [vmem:[%s1160_s13 + $0x7c] ss:$12 sps:$4 sm:$0xff]   ;;  %v1084_v40 = vld [vmem:[%s1160_s13 + $0x78] ss:$12 sps:$4 sm:$0xff]   ;;  %v1240_v61 = vld [vmem:[%s1330_s2] ss:$0 sm:$0xff] }
  0x19   : > { %924 = vmatpush3.bf16.msra.mxu0 %v1043_v7  ;;  %1022 = vmatpush3.bf16.msra.mxu1 %v1043_v7  ;;  %v1085_v41 = vld [vmem:[%s1160_s13 + $0xb0] ss:$12 sps:$4 sm:$0xff]   ;;  %v1245_v0 = vld [vmem:[%s1331_s3] ss:$0 sm:$0xff] }
  0x1a   : > { %925 = vmatprep.subr.bf16.mxu0 %v1044_v8  ;;  %1015 = vmatprep.subr.bf16.mxu1 %v1044_v8 }
  0x1d   : > { %926 = vmatpush3.bf16.msra.mxu0 %v1045_v9  ;;  %1023 = vmatpush3.bf16.msra.mxu1 %v1045_v9 }
  0x1e   : > { %927 = vmatprep.subr.bf16.mxu0 %v1046_v10  ;;  %1016 = vmatprep.subr.bf16.mxu1 %v1046_v10 }
  0x21   : > { %928 = vmatpush3.bf16.msra.mxu0 %v1047_v13  ;;  %1024 = vmatpush3.bf16.msra.mxu1 %v1047_v13 }
  0x22   : > { %929 = vmatprep.subr.bf16.mxu0 %v1048_v14  ;;  %1017 = vmatprep.subr.bf16.mxu1 %v1048_v14 }
  0x25   : > { %930 = vmatpush3.bf16.msra.mxu0 %v1049_v15  ;;  %1025 = vmatpush3.bf16.msra.mxu1 %v1049_v15 }
  0x26   : > { %931 = vmatprep.subr.bf16.mxu0 %v1050_v16  ;;  %1018 = vmatprep.subr.bf16.mxu1 %v1050_v16 }
  0x29   : > { %932 = vmatpush3.bf16.msra.mxu0 %v1051_v17  ;;  %1026 = vmatpush3.bf16.msra.mxu1 %v1051_v17 }
  0x2a   : > { %991 = vmatprep.subr.bf16.mxu1 %v1058_v19 }
  0x2c   : > { %559 = vmatmul.mubr.bf16.vlgmr.msra.gmra.mxu0 %v1052_v18  ;;  %607 = vmatmul.mubr.bf16.vlgmr.msra.gmra.mxu1 %v1055_v20 }
  0x2d   : > { %992 = vmatpush3.bf16.msra.mxu1 %v1058_v19  ;;  %566 = vmatprep.mubr.bf16.mxu0 %v1059_v21 }
  0x2e   : > { %614 = vmatprep.mubr.bf16.mxu1 %v1061_v22  ;;  %993 = vmatprep.subr.bf16.mxu1 %v1065_v23 }
  0x31   : > { %994 = vmatpush3.bf16.msra.mxu1 %v1065_v23 }
  0x34   : > { %567 = vmatmul.mubr.bf16.gmra.mxu0 %v1063_v24  ;;  %615 = vmatmul.mubr.bf16.gmra.mxu1 %v1064_v25 }
  0x35   : > { %574 = vmatprep.mubr.bf16.mxu0 %v1066_v26  ;;  %995 = vmatprep.mubr.msk.bf16.mxu1 %vm501_vm0, %v1068_v27 }
  0x3c   : > { %575 = vmatmul.mubr.bf16.gmra.mxu0 %v1069_v28  ;;  %996 = vmatmul.mubr.msk.bf16.vlgmr.msra.gmra.mxu1 %vm501_vm0, %v1070_v29 }
  0x3d   : > { %582 = vmatprep.mubr.bf16.mxu0 %v1071_v30  ;;  %999 = vmatprep.mubr.msk.bf16.mxu1 %vm501_vm0, %v1073_v31 }
  0x44   : > { %583 = vmatmul.mubr.bf16.gmra.mxu0 %v1074_v32  ;;  %1000 = vmatmul.mubr.msk.bf16.gmra.mxu1 %vm501_vm0, %v1075_v33 }
  0x45   : > { %590 = vmatprep.mubr.bf16.mxu0 %v1076_v34  ;;  %1003 = vmatprep.mubr.msk.bf16.mxu1 %vm501_vm0, %v1078_v35 }
  0x4c   : > { %591 = vmatmul.mubr.bf16.gmra.mxu0 %v1079_v36  ;;  %1004 = vmatmul.mubr.msk.bf16.gmra.mxu1 %vm501_vm0, %v1080_v37 }
  0x4d   : > { %598 = vmatprep.mubr.bf16.mxu0 %v1081_v38  ;;  %1007 = vmatprep.mubr.msk.bf16.mxu1 %vm501_vm0, %v1083_v39 }
  0x54   : > { %599 = vmatmul.mubr.bf16.gmra.mxu0 %v1084_v40  ;;  %1008 = vmatmul.mubr.msk.bf16.gmra.mxu1 %vm501_vm0, %v1085_v41 }
  0xec   : > { %v933_v42 = vpop.f32.mrf.mxu0  ;;  %v1221_v43 = vpop.f32.mrf.mxu1 }
  0xee   : > { %v934_v44 = vpop.f32.mrf.mxu0  ;;  %v1223_v45 = vpop.f32.mrf.mxu1 }
  0xef   : > { %v935_v62 = vadd.f32 %v934_v44, %v933_v42 }
  0xf0   : > { %v936_v46 = vpop.f32.mrf.mxu0  ;;  %v1225_v47 = vpop.f32.mrf.mxu1 }
  0xf2   : > { %v937_v48 = vpop.f32.mrf.mxu0  ;;  %v1227_v49 = vpop.f32.mrf.mxu1 }
  0xf3   : > { %v938_v11 = vadd.f32 %v937_v48, %v936_v46 }
  0xf4   : > { %v939_v50 = vpop.f32.mrf.mxu0  ;;  %v1229_v51 = vpop.f32.mrf.mxu1 }
  0xf6   : > { %v940_v52 = vpop.f32.mrf.mxu0  ;;  %v1231_v53 = vpop.f32.mrf.mxu1 }
  0xf7   : > { %v941_v58 = vadd.f32 %v940_v52, %v939_v50 }
  0xf8   : > { %v942_v54 = vpop.f32.mrf.mxu0  ;;  %v1233_v55 = vpop.f32.mrf.mxu1 }
  0xfa   : > { %v943_v56 = vpop.f32.mrf.mxu0  ;;  %v1235_v57 = vpop.f32.mrf.mxu1 }
  0xfb   : > { %v944_v3 = vadd.f32 %v943_v56, %v942_v54 }
  0xfc   : > { %v945_v59 = vpop.f32.mrf.mxu0  ;;  %v997_v60 = vpop.f32.mrf.mxu1 }
  0xfd   : > { %v666_v63 = vadd.f32 %v997_v60, %v941_v58 }
  0xfe   : > { %v946_v1 = vpop.f32.mrf.mxu0  ;;  %v657_v2 = vpop.f32.mrf.mxu1 }
  0xff   : > { %v729_v4 = vmul.f32 %v1240_v61, %v666_v63  ;;  %v658_v5 = vadd.f32 %v935_v62, %v657_v2  ;;  %v947_v20 = vadd.f32 %v946_v1, %v945_v59 }
 0x100   : > { %v948_v6 = vpop.f32.mrf.mxu0  ;;  %v998_v7 = vpop.f32.mrf.mxu1 }
 0x101   : > { %v752_v8 = vadd.f32 %v1245_v0, %v729_v4  ;;  %v727_v9 = vmul.f32 %v1240_v61, %v658_v5  ;;  %v669_v10 = vadd.f32 %v998_v7, %v944_v3  ;;  %v977_v7 = vadd.f32 %v1231_v53, %v1229_v51 }
 0x102   : > { %v949_v12 = vpop.f32.mrf.mxu0  ;;  %v660_v13 = vpop.f32.mrf.mxu1  ;;  %v980_v51 = vadd.f32 %v1235_v57, %v1233_v55  ;;  %v974_v57 = vadd.f32 %v1227_v49, %v1225_v47 }
 0x103   : > { %v768_v14 = vmax.f32 %v752_v8, 0.0  ;;  %v750_v15 = vadd.f32 %v1245_v0, %v727_v9  ;;  %v730_v16 = vmul.f32 %v1240_v61, %v669_v10  ;;  %v661_v17 = vadd.f32 %v938_v11, %v660_v13 }
 0x104   : > { %v951_v18 = vpop.f32.mrf.mxu0  ;;  %v1001_v19 = vpop.f32.mrf.mxu1  ;;  %v950_v32 = vadd.f32 %v949_v12, %v948_v6 }
 0x105   : > { %784 = vst.msk [vmem:[%s1254_s16 + $0x10] sm:$0xff] %vm501_vm0, %v768_v14  ;;  %v766_v21 = vmax.f32 %v750_v15, 0.0  ;;  %v753_v22 = vadd.f32 %v1245_v0, %v730_v16  ;;  %v728_v23 = vmul.f32 %v1240_v61, %v661_v17  ;;  %v971_v16 = vadd.f32 %v1223_v45, %v1221_v43 }
 0x106   : > { %v952_v24 = vpop.f32.mrf.mxu0  ;;  %v673_v25 = vpop.f32.mrf.mxu1 }
 0x107   : > { %782 = vst.msk [vmem:[%s1254_s16] sm:$0xff] %vm501_vm0, %v766_v21  ;;  %v769_v26 = vmax.f32 %v753_v22, 0.0  ;;  %v953_v27 = vadd.f32 %v952_v24, %v951_v18  ;;  %v674_v28 = vadd.f32 %v947_v20, %v673_v25  ;;  %v751_v29 = vadd.f32 %v1245_v0, %v728_v23 }
 0x108   : > { %v954_v30 = vpop.f32.mrf.mxu0  ;;  %v1002_v31 = vpop.f32.mrf.mxu1 }
 0x109   : > { %785 = vst.msk [vmem:[%s1254_s16 + $0x18] sm:$0xff] %vm501_vm0, %v769_v26  ;;  %v682_v33 = vadd.f32 %v1001_v19, %v953_v27  ;;  %v731_v34 = vmul.f32 %v1240_v61, %v674_v28  ;;  %v767_v35 = vmax.f32 %v751_v29, 0.0 }
 0x10a   : > { %v955_v36 = vpop.f32.mrf.mxu0  ;;  %v676_v37 = vpop.f32.mrf.mxu1 }
 0x10b   : > { %v733_v38 = vmul.f32 %v1240_v61, %v682_v33  ;;  %v754_v39 = vadd.f32 %v1245_v0, %v731_v34  ;;  %v956_v40 = vadd.f32 %v955_v36, %v954_v30  ;;  %v677_v41 = vadd.f32 %v950_v32, %v676_v37  ;;  %783 = vst.msk [vmem:[%s1254_s16 + $0x8] sm:$0xff] %vm501_vm0, %v767_v35 }
 0x10c   : > { %v957_v42 = vpop.f32.mrf.mxu0  ;;  %v1005_v44 = vpop.f32.mrf.mxu1 }
 0x10d   : > { %v756_v46 = vadd.f32 %v1245_v0, %v733_v38  ;;  %v770_v48 = vmax.f32 %v754_v39, 0.0  ;;  %v685_v50 = vadd.f32 %v1002_v31, %v956_v40  ;;  %v732_v52 = vmul.f32 %v1240_v61, %v677_v41 }
 0x10e   : > { %v958_v54 = vpop.f32.mrf.mxu0  ;;  %v689_v56 = vpop.f32.mrf.mxu1 }
 0x10f   : > { %v772_v58 = vmax.f32 %v756_v46, 0.0  ;;  %786 = vst.msk [vmem:[%s1254_s16 + $0x20] sm:$0xff] %vm501_vm0, %v770_v48  ;;  %v734_v59 = vmul.f32 %v1240_v61, %v685_v50  ;;  %v755_v60 = vadd.f32 %v1245_v0, %v732_v52  ;;  %v959_v62 = vadd.f32 %v958_v54, %v957_v42 }
 0x110   : > { %v960_v63 = vpop.f32.mrf.mxu0  ;;  %v1006_v1 = vpop.f32.mrf.mxu1 }
 0x111   : > { %788 = vst.msk [vmem:[%s1254_s16 + $0x30] sm:$0xff] %vm501_vm0, %v772_v58  ;;  %v757_v2 = vadd.f32 %v1245_v0, %v734_v59  ;;  %v771_v3 = vmax.f32 %v755_v60, 0.0  ;;  %v690_v4 = vadd.f32 %v959_v62, %v689_v56 }
 0x112   : > { %v961_v5 = vpop.f32.mrf.mxu0  ;;  %v692_v6 = vpop.f32.mrf.mxu1 }
 0x113   : > { %v773_v8 = vmax.f32 %v757_v2, 0.0  ;;  %787 = vst.msk [vmem:[%s1254_s16 + $0x28] sm:$0xff] %vm501_vm0, %v771_v3  ;;  %v735_v9 = vmul.f32 %v1240_v61, %v690_v4  ;;  %v962_v10 = vadd.f32 %v961_v5, %v960_v63 }
 0x114   : > { %v963_v11 = vpop.f32.mrf.mxu0  ;;  %v1009_v12 = vpop.f32.mrf.mxu1 }
 0x115   : > { %789 = vst.msk [vmem:[%s1254_s16 + $0x38] sm:$0xff] %vm501_vm0, %v773_v8  ;;  %v758_v13 = vadd.f32 %v1245_v0, %v735_v9  ;;  %v693_v14 = vadd.f32 %v962_v10, %v692_v6  ;;  %v714_v15 = vadd.f32 %v1009_v12, %v977_v7 }
 0x116   : > { %v964_v53 = vpop.f32.mrf.mxu0  ;;  %v705_v17 = vpop.f32.mrf.mxu1 }
 0x117   : > { %v774_v18 = vmax.f32 %v758_v13, 0.0  ;;  %v736_v19 = vmul.f32 %v1240_v61, %v693_v14  ;;  %v741_v20 = vmul.f32 %v1240_v61, %v714_v15  ;;  %v965_v21 = vadd.f32 %v964_v53, %v963_v11 }
 0x118   : > { %v706_v22 = vadd.f32 %v971_v16, %v705_v17  ;;  %v966_v23 = vpop.f32.mrf.mxu0  ;;  %v1010_v24 = vpop.f32.mrf.mxu1 }
 0x119   : > { %790 = vst.msk [vmem:[%s1254_s16 + $0x40] sm:$0xff] %vm501_vm0, %v774_v18  ;;  %v759_v25 = vadd.f32 %v1245_v0, %v736_v19  ;;  %v764_v43 = vadd.f32 %v1245_v0, %v741_v20  ;;  %v698_v45 = vadd.f32 %v1005_v44, %v965_v21  ;;  %v717_v55 = vadd.f32 %v1010_v24, %v980_v51 }
 0x11a   : > { %v739_v26 = vmul.f32 %v1240_v61, %v706_v22  ;;  %v967_v27 = vpop.f32.mrf.mxu0  ;;  %v708_v28 = vpop.f32.mrf.mxu1 }
 0x11b   : > { %v775_v29 = vmax.f32 %v759_v25, 0.0  ;;  %v780_v30 = vmax.f32 %v764_v43, 0.0  ;;  %v737_v31 = vmul.f32 %v1240_v61, %v698_v45  ;;  %v742_v32 = vmul.f32 %v1240_v61, %v717_v55 }
 0x11c   : > { %v762_v33 = vadd.f32 %v1245_v0, %v739_v26  ;;  %v968_v34 = vadd.f32 %v967_v27, %v966_v23  ;;  %v709_v35 = vadd.f32 %v974_v57, %v708_v28 }
 0x11d   : > { %791 = vst.msk [vmem:[%s1254_s16 + $0x48] sm:$0xff] %vm501_vm0, %v775_v29  ;;  %796 = vst.msk [vmem:[%s1254_s16 + $0x70] sm:$0xff] %vm501_vm0, %v780_v30  ;;  %v760_v47 = vadd.f32 %v1245_v0, %v737_v31  ;;  %v765_v49 = vadd.f32 %v1245_v0, %v742_v32 }
 0x11e   : > { %v778_v36 = vmax.f32 %v762_v33, 0.0  ;;  %v701_v37 = vadd.f32 %v1006_v1, %v968_v34  ;;  %v740_v38 = vmul.f32 %v1240_v61, %v709_v35 }
 0x11f   : > { %v776_v39 = vmax.f32 %v760_v47, 0.0  ;;  %v781_v40 = vmax.f32 %v765_v49, 0.0 }
 0x120   : > { %794 = vst.msk [vmem:[%s1254_s16 + $0x60] sm:$0xff] %vm501_vm0, %v778_v36  ;;  %v738_v41 = vmul.f32 %v1240_v61, %v701_v37  ;;  %v763_v42 = vadd.f32 %v1245_v0, %v740_v38 }
 0x121   : > { %792 = vst.msk [vmem:[%s1254_s16 + $0x50] sm:$0xff] %vm501_vm0, %v776_v39  ;;  %797 = vst.msk [vmem:[%s1254_s16 + $0x78] sm:$0xff] %vm501_vm0, %v781_v40 }
 0x122   : > { %v761_v44 = vadd.f32 %v1245_v0, %v738_v41  ;;  %v779_v46 = vmax.f32 %v763_v42, 0.0 }
 0x124   : > { %v777_v48 = vmax.f32 %v761_v44, 0.0  ;;  %795 = vst.msk [vmem:[%s1254_s16 + $0x68] sm:$0xff] %vm501_vm0, %v779_v46 }
 0x126   : > { %793 = vst.msk [vmem:[%s1254_s16 + $0x58] sm:$0xff] %vm501_vm0, %v777_v48 }
 0x127 PF: > { %s14_s15 = sadd.s32 1, %s1092_s15  }
 0x128   : > { %p11_p4 = scmp.ge.s32.totalorder %s14_s15, 4  }
 0x12a   :  { %13 = sbr.rel (!%p11_p4) target bundleno = 1 (0x1), region = 66 }

// kernel: hdispnet_forward.13
= control target key start
LH: loop header
LB: loop body
LE: loop exit
PB: predicated region body
PF: predicated region fallthrough
CT: control target
= control target key end

     0   :  { %s729_s9 = smov 0   ;;  %s949_s0 = inlined_call_operand.vmem [shape: f32[4,8,8,32], index: 0, kind: input, shape index: {}, may-alias: {0,1}]   ;;  %s950_s1 = inlined_call_operand.vmem [shape: f32[4,8,8,32], index: 1, kind: input, shape index: {}, may-alias: {0,1}]   ;;  %s951_s2 = inlined_call_operand.vmem [shape: f32[2,8,8], index: 2, kind: output, shape index: {}]  }
   0x1 LB: > { %s735_s10 = sadd.s32 4294967295, %s712_s9   ;;  %p678_p0 = scmp.ge.s32.totalorder %s712_s9, 1  ;;  %s712_s9 = sphi %s729_s9, %s12_s9  }
   0x2   : > { %p126_p1 = scmp.lt.s32.totalorder %s712_s9, 3 }
   0x4   : > { %p127_p2 = pnand %p678_p0, %p126_p1 }
   0x5   : > { %p153_p3 = scmp.lt.s32.totalorder (!%p127_p2), %s735_s10, 3  ;;  %s158_s11 = sadd.s32 (!%p127_p2), 2, %s735_s10 }
   0x6   : > { %130 = sbr.rel (%p127_p2) target bundleno = 271 (0x10f), region = 28  ;;  %p159_p4 = scmp.lt.s32.totalorder (!%p127_p2), %s158_s11, 3 }
   0x7   : > { %p165_p5 = scmp.lt.s32.totalorder (!%p127_p2), %s735_s10, 1 }
   0xb   : > { %s154_s12 = scalar_select %p153_p3, %s735_s10, 3  ;;  %vm195_vm0 = vcmask 261120   ;;  %vm269_vm1 = vcmask 1041409   ;;  %vm271_vm2 = vcmask 1042434   ;;  %vm273_vm3 = vcmask 1043459  }
   0xc   : > { %s953_s11 = smov (!%p159_p4, %s158_s11), 3  ;;  %vm275_vm4 = vcmask 1044484   ;;  %vm277_vm5 = vcmask 1045509   ;;  %vm279_vm6 = vcmask 1046534   ;;  %vm281_vm7 = vcmask 1047559   ;;  %s955_s10 = smov (!%p165_p5, %s735_s10), 1 }
   0xd   : > { %s686_s13 = sshll.u32 %s154_s12, 6  ;;  %s687_s17 = sshll.u32 %s953_s11, 6  ;;  %vm607_vm11 = vcmask 64512  }
   0xe   : > { %s745_s16 = scalar_lea.vmem %s949_s0, %s686_s13  ;;  %s750_s20 = scalar_lea.vmem %s950_s1, %s687_s17 }
   0xf   : > { %v169_v0 = vld [vmem:[%s745_s16] sm:$0xff]  ;;  %v754_v1 = vld [vmem:[%s745_s16 + $0x8] sm:$0xff]  ;;  %v761_v4 = vld [vmem:[%s750_s20 + $0x10] sm:$0xff]  ;;  %s683_s21 = sshll.u32 %s955_s10, 3 }
  0x10   : > { %v177_v2 = vld [vmem:[%s750_s20] sm:$0xff]  ;;  %v758_v3 = vld [vmem:[%s750_s20 + $0x8] sm:$0xff]  ;;  %v767_v9 = vld [vmem:[%s745_s16 + $0x10] sm:$0xff]  ;;  %v287_v13 = vrot.slane %v761_v4, 7  ;;  %v385_v31 = vrot.slane %v761_v4, 6  ;;  %s168_s24 = scalar_lea.vmem %s951_s2, %s683_s21 }
  0x11   : > { %v187_v5 = vmul.f32 %v177_v2, %v169_v0  ;;  %v285_v6 = vrot.slane %v177_v2, 7  ;;  %v188_v7 = vmul.f32 %v758_v3, %v754_v1  ;;  %v286_v8 = vrot.slane %v758_v3, 7  ;;  %v773_v14 = vld [vmem:[%s750_s20 + $0x18] sm:$0xff]  ;;  %v790_v28 = vld [vmem:[%s750_s20 + $0x20] sm:$0xff]  ;;  %v797_v32 = vld [vmem:[%s750_s20 + $0x28] sm:$0xff] }
  0x12   : > { %v189_v17 = vmul.f32 %v761_v4, %v767_v9  ;;  %v383_v18 = vrot.slane %v177_v2, 6  ;;  %v295_v20 = vmul.f32 %v287_v13, %v767_v9  ;;  %v288_v21 = vrot.slane %v773_v14, 7  ;;  %v783_v22 = vld [vmem:[%s745_s16 + $0x18] sm:$0xff]  ;;  %v803_v36 = vld [vmem:[%s745_s16 + $0x20] sm:$0xff]  ;;  %v809_v40 = vld [vmem:[%s745_s16 + $0x28] sm:$0xff] }
  0x13   : > { %v196_v10 = vsel %vm195_vm0, %v187_v5, 0.0  ;;  %v293_v11 = vmul.f32 %v285_v6, %v169_v0  ;;  %v294_v12 = vmul.f32 %v286_v8, %v754_v1  ;;  %v199_v16 = vsel %vm195_vm0, %v188_v7, 0.0  ;;  %v824_v54 = vld [vmem:[%s750_s20 + $0x30] sm:$0xff]  ;;  %v184_v5 = vld [vmem:[%s750_s20 + $0x38] sm:$0xff] }
  0x14   : > { %197 = vadd.xlane.f32.xlu1 %v196_v10  ;;  %v202_v23 = vsel %vm195_vm0, %v189_v17, 0.0  ;;  %v391_v24 = vmul.f32 %v383_v18, %v169_v0  ;;  %v307_v25 = vsel %vm195_vm0, %v295_v20, 0.0  ;;  %v296_v26 = vmul.f32 %v288_v21, %v783_v22  ;;  %v175_v61 = vld [vmem:[%s745_s16 + $0x30] sm:$0xff] }
  0x15   : > { %v301_v15 = vsel %vm195_vm0, %v293_v11, 0.0  ;;  %v304_v19 = vsel %vm195_vm0, %v294_v12, 0.0  ;;  %v384_v27 = vrot.slane %v758_v3, 6  ;;  %v190_v30 = vmul.f32 %v773_v14, %v783_v22  ;;  %v176_v12 = vld [vmem:[%s745_s16 + $0x38] sm:$0xff] }
  0x16   : > { %302 = vadd.xlane.f32.xlu0 %v301_v15  ;;  %v399_v29 = vsel %vm195_vm0, %v391_v24, 0.0  ;;  %v310_v33 = vsel %vm195_vm0, %v296_v26, 0.0  ;;  %v289_v35 = vrot.slane %v790_v28, 7  ;;  %v393_v38 = vmul.f32 %v385_v31, %v767_v9 }
  0x17   : > { %v392_v34 = vmul.f32 %v384_v27, %v754_v1  ;;  %v205_v37 = vsel %vm195_vm0, %v190_v30, 0.0  ;;  %v290_v39 = vrot.slane %v797_v32, 7  ;;  %v481_v45 = vrot.slane %v177_v2, 5 }
  0x18   : > { %200 = vadd.xlane.f32.xlu1 %v199_v16  ;;  %v297_v42 = vmul.f32 %v289_v35, %v803_v36  ;;  %v405_v43 = vsel %vm195_vm0, %v393_v38, 0.0  ;;  %v191_v47 = vmul.f32 %v790_v28, %v803_v36  ;;  %v386_v48 = vrot.slane %v773_v14, 6 }
  0x19   : > { %v402_v41 = vsel %vm195_vm0, %v392_v34, 0.0  ;;  %v298_v44 = vmul.f32 %v290_v39, %v809_v40  ;;  %v489_v50 = vmul.f32 %v481_v45, %v169_v0  ;;  %v482_v53 = vrot.slane %v758_v3, 5 }
  0x1a   : > { %305 = vadd.xlane.f32.xlu0 %v304_v19  ;;  %v313_v46 = vsel %vm195_vm0, %v297_v42, 0.0  ;;  %v208_v51 = vsel %vm195_vm0, %v191_v47, 0.0  ;;  %v394_v52 = vmul.f32 %v386_v48, %v783_v22  ;;  %v192_v56 = vmul.f32 %v797_v32, %v809_v40 }
  0x1b   : > { %v316_v49 = vsel %vm195_vm0, %v298_v44, 0.0  ;;  %v497_v55 = vsel %vm195_vm0, %v489_v50, 0.0  ;;  %v387_v57 = vrot.slane %v790_v28, 6  ;;  %v490_v59 = vmul.f32 %v482_v53, %v754_v1 }
  0x1c   : > { %203 = vadd.xlane.f32.xlu1 %v202_v23  ;;  %v408_v58 = vsel %vm195_vm0, %v394_v52, 0.0  ;;  %v291_v60 = vrot.slane %v824_v54, 7  ;;  %v211_v62 = vsel %vm195_vm0, %v192_v56, 0.0  ;;  %v483_v3 = vrot.slane %v761_v4, 5 }
  0x1d   : > { %v395_v63 = vmul.f32 %v387_v57, %v803_v36  ;;  %v500_v0 = vsel %vm195_vm0, %v490_v59, 0.0  ;;  %v193_v1 = vmul.f32 %v824_v54, %v175_v61  ;;  %v388_v7 = vrot.slane %v797_v32, 6 }
  0x1e   : > { %308 = vadd.xlane.f32.xlu0 %v307_v25  ;;  %v299_v2 = vmul.f32 %v291_v60, %v175_v61  ;;  %v491_v10 = vmul.f32 %v483_v3, %v767_v9  ;;  %v292_v11 = vrot.slane %v184_v5, 7  ;;  %v484_v17 = vrot.slane %v773_v14, 5 }
  0x1f   : > { %v411_v6 = vsel %vm195_vm0, %v395_v63, 0.0  ;;  %v214_v13 = vsel %vm195_vm0, %v193_v1, 0.0  ;;  %v396_v4 = vmul.f32 %v388_v7, %v809_v40  ;;  %v194_v19 = vmul.f32 %v184_v5, %v176_v12 }
  0x20   : > { %400 = vadd.xlane.f32.xlu1 %v399_v29  ;;  %v319_v8 = vsel %vm195_vm0, %v299_v2, 0.0  ;;  %v503_v15 = vsel %vm195_vm0, %v491_v10, 0.0  ;;  %v300_v16 = vmul.f32 %v292_v11, %v176_v12  ;;  %v485_v20 = vrot.slane %v790_v28, 5 }
  0x21   : > { %v414_v18 = vsel %vm195_vm0, %v396_v4, 0.0  ;;  %v492_v21 = vmul.f32 %v484_v17, %v783_v22  ;;  %v389_v23 = vrot.slane %v824_v54, 6  ;;  %v217_v24 = vsel %vm195_vm0, %v194_v19, 0.0 }
  0x22   : > { %311 = vadd.xlane.f32.xlu0 %v310_v33  ;;  %v322_v9 = vsel %vm195_vm0, %v300_v16, 0.0  ;;  %v493_v25 = vmul.f32 %v485_v20, %v803_v36  ;;  %v486_v14 = vrot.slane %v797_v32, 5  ;;  %v390_v29 = vrot.slane %v184_v5, 6 }
  0x23   : > { %v506_v26 = vsel %vm195_vm0, %v492_v21, 0.0  ;;  %v397_v27 = vmul.f32 %v389_v23, %v175_v61  ;;  %v488_v22 = vrot.slane %v184_v5, 5  ;;  %v487_v34 = vrot.slane %v824_v54, 5 }
  0x24   : > { %206 = vadd.xlane.f32.xlu1 %v205_v37  ;;  %v509_v28 = vsel %vm195_vm0, %v493_v25, 0.0  ;;  %v494_v30 = vmul.f32 %v486_v14, %v809_v40  ;;  %v398_v33 = vmul.f32 %v390_v29, %v176_v12  ;;  %v185_v56 = vlaneseq }
  0x25   : > { %v417_v31 = vsel %vm195_vm0, %v397_v27, 0.0  ;;  %v496_v35 = vmul.f32 %v488_v22, %v176_v12  ;;  %v495_v37 = vmul.f32 %v487_v34, %v175_v61 }
  0x26   : > { %403 = vadd.xlane.f32.xlu0 %v402_v41  ;;  %v512_v32 = vsel %vm195_vm0, %v494_v30, 0.0  ;;  %v420_v36 = vsel %vm195_vm0, %v398_v33, 0.0  ;;  %v868_v59 = vand.u32 127, %v185_v56  ;;  %v238_v60 = vshrl.u32 %v185_v56, 7 }
  0x27   : > { %v518_v38 = vsel %vm195_vm0, %v496_v35, 0.0  ;;  %v515_v39 = vsel %vm195_vm0, %v495_v37, 0.0 }
  0x28   : > { %406 = vadd.xlane.f32.xlu1 %v405_v43  ;;  %v871_v63 = vsub.s32 %v868_v59, %v238_v60  ;;  %vm333_vm8 = vcmp.ge.s32.totalorder %v868_v59, 1  ;;  %vm431_vm9 = vcmp.ge.s32.totalorder %v868_v59, 2  ;;  %vm529_vm10 = vcmp.ge.s32.totalorder %v868_v59, 3 }
  0x2a   : > { %314 = vadd.xlane.f32.xlu0 %v313_v46 }
  0x2c   : > { %317 = vadd.xlane.f32.xlu1 %v316_v49 }
  0x2e   : > { %209 = vadd.xlane.f32.xlu0 %v208_v51 }
  0x30   : > { %498 = vadd.xlane.f32.xlu1 %v497_v55 }
  0x32   : > { %409 = vadd.xlane.f32.xlu0 %v408_v58 }
  0x34   : > { %212 = vadd.xlane.f32.xlu1 %v211_v62 }
  0x36   : > { %501 = vadd.xlane.f32.xlu0 %v500_v0 }
  0x38   : > { %412 = vadd.xlane.f32.xlu1 %v411_v6 }
  0x3a   : > { %320 = vadd.xlane.f32.xlu0 %v319_v8 }
  0x3c   : > { %215 = vadd.xlane.f32.xlu1 %v214_v13 }
  0x3e   : > { %504 = vadd.xlane.f32.xlu0 %v503_v15 }
  0x40   : > { %415 = vadd.xlane.f32.xlu1 %v414_v18 }
  0x42   : > { %323 = vadd.xlane.f32.xlu0 %v322_v9 }
  0x44   : > { %218 = vadd.xlane.f32.xlu1 %v217_v24 }
  0x46   : > { %507 = vadd.xlane.f32.xlu0 %v506_v26 }
  0x48   : > { %510 = vadd.xlane.f32.xlu1 %v509_v28 }
  0x4a   : > { %418 = vadd.xlane.f32.xlu0 %v417_v31 }
  0x4c   : > { %513 = vadd.xlane.f32.xlu1 %v512_v32 }
  0x4e   : > { %421 = vadd.xlane.f32.xlu0 %v420_v36 }
  0x50   : > { %519 = vadd.xlane.f32.xlu1 %v518_v38 }
  0x52   : > { %516 = vadd.xlane.f32.xlu0 %v515_v39 }
  0x9d   : > { %v198_v40 = vpop.xlane.xlu1 %197 }
  0x9e   : > { %v220_v0 = vmul.f32 0.03125, %v198_v40 }
  0x9f   : > { %v303_v41 = vpop.xlane.xlu0 %302 }
  0xa0   : > { %v325_v6 = vmul.f32 0.03125, %v303_v41  ;;  %v240_v4 = vrot.slane %v220_v0, %v871_v63 }
  0xa1   : > { %v201_v42 = vpop.xlane.xlu1 %200 }
  0xa2   : > { %v221_v2 = vmul.f32 0.03125, %v201_v42  ;;  %v345_v19 = vrot.slane %v325_v6, %v871_v63 }
  0xa3   : > { %v306_v43 = vpop.xlane.xlu0 %305 }
  0xa4   : > { %v326_v3 = vmul.f32 0.03125, %v306_v43  ;;  %v244_v15 = vrot.slane %v221_v2, %v871_v63 }
  0xa5   : > { %v204_v44 = vpop.xlane.xlu1 %203 }
  0xa6   : > { %v222_v1 = vmul.f32 0.03125, %v204_v44  ;;  %v349_v16 = vrot.slane %v326_v3, %v871_v63  ;;  %v270_v28 = vsel %vm269_vm1, %v244_v15, %v240_v4 }
  0xa7   : > { %v309_v45 = vpop.xlane.xlu0 %308 }
  0xa8   : > { %v327_v7 = vmul.f32 0.03125, %v309_v45  ;;  %v248_v20 = vrot.slane %v222_v1, %v871_v63  ;;  %v374_v30 = vsel %vm269_vm1, %v349_v16, %v345_v19 }
  0xa9   : > { %v401_v46 = vpop.xlane.xlu1 %400 }
  0xaa   : > { %v423_v17 = vmul.f32 0.03125, %v401_v46  ;;  %v353_v9 = vrot.slane %v327_v7, %v871_v63  ;;  %v272_v33 = vsel %vm271_vm2, %v248_v20, %v270_v28 }
  0xab   : > { %v312_v47 = vpop.xlane.xlu0 %311 }
  0xac   : > { %v328_v8 = vmul.f32 0.03125, %v312_v47  ;;  %v443_v22 = vrot.slane %v423_v17, %v871_v63  ;;  %v375_v34 = vsel %vm271_vm2, %v353_v9, %v374_v30 }
  0xad   : > { %v207_v48 = vpop.xlane.xlu1 %206 }
  0xae   : > { %v223_v12 = vmul.f32 0.03125, %v207_v48  ;;  %v357_v23 = vrot.slane %v328_v8, %v871_v63 }
  0xaf   : > { %v404_v49 = vpop.xlane.xlu0 %403 }
  0xb0   : > { %v424_v10 = vmul.f32 0.03125, %v404_v49  ;;  %v252_v27 = vrot.slane %v223_v12, %v871_v63  ;;  %v376_v36 = vsel %vm273_vm3, %v357_v23, %v375_v34 }
  0xb1   : > { %v407_v50 = vpop.xlane.xlu1 %406 }
  0xb2   : > { %v425_v21 = vmul.f32 0.03125, %v407_v50  ;;  %v447_v24 = vrot.slane %v424_v10, %v871_v63  ;;  %v274_v41 = vsel %vm273_vm3, %v252_v27, %v272_v33 }
  0xb3   : > { %v315_v51 = vpop.xlane.xlu0 %314 }
  0xb4   : > { %v329_v13 = vmul.f32 0.03125, %v315_v51  ;;  %v451_v32 = vrot.slane %v425_v21, %v871_v63  ;;  %v472_v37 = vsel %vm269_vm1, %v447_v24, %v443_v22 }
  0xb5   : > { %v318_v52 = vpop.xlane.xlu1 %317 }
  0xb6   : > { %v330_v25 = vmul.f32 0.03125, %v318_v52  ;;  %v361_v29 = vrot.slane %v329_v13, %v871_v63  ;;  %v473_v50 = vsel %vm271_vm2, %v451_v32, %v472_v37 }
  0xb7   : > { %v210_v53 = vpop.xlane.xlu0 %209 }
  0xb8   : > { %v224_v14 = vmul.f32 0.03125, %v210_v53  ;;  %v365_v38 = vrot.slane %v330_v25, %v871_v63  ;;  %v377_v42 = vsel %vm275_vm4, %v361_v29, %v376_v36 }
  0xb9   : > { %v866_v54 = vpop.xlane.xlu1 %498 }
  0xba   : > { %v256_v39 = vrot.slane %v224_v14, %v871_v63  ;;  %v521_v51 = vmul.f32 0.03125, %v866_v54 }
  0xbb   : > { %v410_v55 = vpop.xlane.xlu0 %409 }
  0xbc   : > { %v426_v35 = vmul.f32 0.03125, %v410_v55  ;;  %v378_v55 = vsel %vm277_vm5, %v365_v38, %v377_v42  ;;  %v276_v56 = vsel %vm275_vm4, %v256_v39, %v274_v41 }
  0xbd   : > { %v213_v57 = vpop.xlane.xlu1 %212 }
  0xbe   : > { %v225_v45 = vmul.f32 0.03125, %v213_v57  ;;  %v455_v52 = vrot.slane %v426_v35, %v871_v63 }
  0xbf   : > { %v502_v58 = vpop.xlane.xlu0 %501 }
  0xc0   : > { %v522_v43 = vmul.f32 0.03125, %v502_v58  ;;  %v260_v54 = vrot.slane %v225_v45, %v871_v63  ;;  %v474_v8 = vsel %vm273_vm3, %v455_v52, %v473_v50 }
  0xc1   : > { %v413_v61 = vpop.xlane.xlu1 %412 }
  0xc2   : > { %v427_v46 = vmul.f32 0.03125, %v413_v61  ;;  %v545_v61 = vrot.slane %v522_v43, %v871_v63  ;;  %v278_v9 = vsel %vm277_vm5, %v260_v54, %v276_v56 }
  0xc3   : > { %v321_v62 = vpop.xlane.xlu0 %320 }
  0xc4   : > { %v331_v44 = vmul.f32 0.03125, %v321_v62  ;;  %v459_v3 = vrot.slane %v427_v46, %v871_v63 }
  0xc5   : > { %v216_v5 = vpop.xlane.xlu1 %215 }
  0xc6   : > { %v226_v58 = vmul.f32 0.03125, %v216_v5  ;;  %v369_v62 = vrot.slane %v331_v44, %v871_v63  ;;  %v541_v5 = vrot.slane %v521_v51, %v871_v63  ;;  %v475_v21 = vsel %vm275_vm4, %v459_v3, %v474_v8 }
  0xc7   : > { %v505_v11 = vpop.xlane.xlu0 %504 }
  0xc8   : > { %v523_v47 = vmul.f32 0.03125, %v505_v11  ;;  %v264_v12 = vrot.slane %v226_v58, %v871_v63  ;;  %v570_v17 = vsel %vm269_vm1, %v545_v61, %v541_v5 }
  0xc9   : > { %v416_v18 = vpop.xlane.xlu1 %415 }
  0xca   : > { %v428_v53 = vmul.f32 0.03125, %v416_v18  ;;  %v549_v6 = vrot.slane %v523_v47, %v871_v63  ;;  %v379_v18 = vsel %vm279_vm6, %v369_v62, %v378_v55  ;;  %v280_v28 = vsel %vm279_vm6, %v264_v12, %v278_v9 }
  0xcb   : > { %v324_v26 = vpop.xlane.xlu0 %323 }
  0xcc   : > { %v332_v48 = vmul.f32 0.03125, %v324_v26  ;;  %v463_v10 = vrot.slane %v428_v53, %v871_v63  ;;  %v571_v23 = vsel %vm271_vm2, %v549_v6, %v570_v17 }
  0xcd   : > { %v219_v31 = vpop.xlane.xlu1 %218 }
  0xce   : > { %v227_v0 = vmul.f32 0.03125, %v219_v31  ;;  %v373_v1 = vrot.slane %v332_v48, %v871_v63  ;;  %v476_v14 = vsel %vm277_vm5, %v463_v10, %v475_v21 }
  0xcf   : > { %v508_v40 = vpop.xlane.xlu0 %507 }
  0xd0   : > { %v524_v60 = vmul.f32 0.03125, %v508_v40  ;;  %v268_v19 = vrot.slane %v227_v0, %v871_v63  ;;  %v380_v24 = vsel %vm281_vm7, %v373_v1, %v379_v18 }
  0xd1   : > { %v511_v49 = vpop.xlane.xlu1 %510  ;;  %v382_v34 = vsel %vm333_vm8, %v380_v24, -1e+30 }
  0xd2   : > { %v525_v11 = vmul.f32 0.03125, %v511_v49  ;;  %v553_v13 = vrot.slane %v524_v60, %v871_v63  ;;  %v282_v32 = vsel %vm281_vm7, %v268_v19, %v280_v28 }
  0xd3   : > { %v419_v57 = vpop.xlane.xlu0 %418  ;;  %v579_v41 = vmax.f32 %v282_v32, %v382_v34 }
  0xd4   : > { %v429_v2 = vmul.f32 0.03125, %v419_v57  ;;  %v557_v26 = vrot.slane %v525_v11, %v871_v63  ;;  %v572_v30 = vsel %vm273_vm3, %v553_v13, %v571_v23 }
  0xd5   : > { %v514_v7 = vpop.xlane.xlu1 %513 }
  0xd6   : > { %v467_v4 = vrot.slane %v429_v2, %v871_v63  ;;  %v526_v15 = vmul.f32 0.03125, %v514_v7  ;;  %v573_v38 = vsel %vm275_vm4, %v557_v26, %v572_v30 }
  0xd7   : > { %v422_v16 = vpop.xlane.xlu0 %421 }
  0xd8   : > { %v430_v20 = vmul.f32 0.03125, %v422_v16  ;;  %v477_v22 = vsel %vm279_vm6, %v467_v4, %v476_v14  ;;  %v561_v31 = vrot.slane %v526_v15, %v871_v63 }
  0xd9   : > { %v520_v25 = vpop.xlane.xlu1 %519 }
  0xda   : > { %v471_v27 = vrot.slane %v430_v20, %v871_v63  ;;  %v528_v29 = vmul.f32 0.03125, %v520_v25  ;;  %v574_v42 = vsel %vm277_vm5, %v561_v31, %v573_v38 }
  0xdb   : > { %v517_v33 = vpop.xlane.xlu0 %516 }
  0xdc   : > { %v478_v35 = vsel %vm281_vm7, %v471_v27, %v477_v22  ;;  %v527_v36 = vmul.f32 0.03125, %v517_v33  ;;  %v569_v37 = vrot.slane %v528_v29, %v871_v63 }
  0xdd   : > { %v480_v39 = vsel %vm431_vm9, %v478_v35, -1e+30 }
  0xde   : > { %v565_v40 = vrot.slane %v527_v36, %v871_v63  ;;  %v580_v44 = vmax.f32 %v579_v41, %v480_v39 }
  0xe0   : > { %v575_v43 = vsel %vm279_vm6, %v565_v40, %v574_v42 }
  0xe1   : > { %v576_v45 = vsel %vm281_vm7, %v569_v37, %v575_v43 }
  0xe2   : > { %v578_v46 = vsel %vm529_vm10, %v576_v45, -1e+30 }
  0xe3   : > { %v581_v47 = vmax.f32 %v580_v44, %v578_v46 }
  0xe5   : > { %v582_v48 = vsub.f32 %v282_v32, %v581_v47  ;;  %v588_v49 = vsub.f32 %v382_v34, %v581_v47  ;;  %v593_v50 = vsub.f32 %v480_v39, %v581_v47  ;;  %v599_v51 = vsub.f32 %v578_v46, %v581_v47 }
  0xe7   : > { %v583_v52 = vmul.f32 1.442695, %v582_v48  ;;  %v589_v53 = vmul.f32 1.442695, %v588_v49  ;;  %v594_v63 = vmul.f32 1.442695, %v593_v50 }
  0xe8   : > { %v600_v55 = vmul.f32 1.442695, %v599_v51 }
  0xe9   : > { %696 = vpow2.f32 %v583_v52 }
  0xea   : > { %698 = vpow2.f32 %v589_v53 }
  0xeb   : > { %700 = vpow2.f32 %v594_v63 }
  0xec   : > { %702 = vpow2.f32 %v600_v55 }
  0xf6   : > { %v697_v59 = vpop.eup %696 }
  0xf7   : > { %v699_v56 = vpop.eup %698  ;;  %v586_v0 = vmul.f32 0.0, %v697_v59 }
  0xf8   : > { %v591_v58 = vadd.f32 %v699_v56, %v697_v59  ;;  %v701_v60 = vpop.eup %700 }
  0xf9   : > { %v703_v61 = vpop.eup %702  ;;  %v592_v2 = vadd.f32 %v699_v56, %v586_v0  ;;  %v597_v54 = vmul.f32 2.0, %v701_v60 }
  0xfa   : > { %v596_v57 = vadd.f32 %v701_v60, %v591_v58  ;;  %v603_v6 = vmul.f32 3.0, %v703_v61 }
  0xfb   : > { %v598_v3 = vadd.f32 %v597_v54, %v592_v2 }
  0xfc   : > { %v602_v62 = vadd.f32 %v703_v61, %v596_v57 }
  0xfd   : > { %v604_v1 = vadd.f32 %v603_v6, %v598_v3 }
  0xfe   : > { %704 = vrcp.f32 %v602_v62 }
 0x10b   : > { %v705_v7 = vpop.eup %704 }
 0x10c   : > { %v606_v5 = vmul.f32 %v705_v7, %v604_v1 }
 0x10e   : > { %608 = vst.msk [vmem:[%s168_s24] sm:$0xff] %vm607_vm11, %v606_v5 }
 0x10f PF: > { %s12_s9 = sadd.s32 1, %s712_s9  }
 0x110   : > { %p9_p6 = scmp.ge.s32.totalorder %s12_s9, 4  }
 0x112   :  { %11 = sbr.rel (!%p9_p6) target bundleno = 1 (0x1), region = 61 }

// kernel: hdispnet_forward.12
= control target key start
LH: loop header
LB: loop body
LE: loop exit
PB: predicated region body
PF: predicated region fallthrough
CT: control target
= control target key end

     0   :  { %s1219_s18 = smov 0   ;;  %s1449_s0 = inlined_call_operand.vmem [shape: bf16[256,288], index: 0, kind: input, shape index: {}]   ;;  %s1450_s1 = inlined_call_operand.vmem [shape: bf16[288,32], index: 1, kind: input, shape index: {}]   ;;  %s1451_s2 = inlined_call_operand.vmem [shape: f32[1,32], index: 2, kind: input, shape index: {}]   ;;  %s1452_s3 = inlined_call_operand.vmem [shape: f32[1,32], index: 3, kind: input, shape index: {}]   ;;  %s1453_s4 = inlined_call_operand.vmem [shape: f32[256,32], index: 4, kind: input, shape index: {}]   ;;  %s1454_s5 = inlined_call_operand.vmem [shape: f32[256,32], index: 5, kind: output, shape index: {}]  }
   0x1 LB: > { %s947_s19 = sadd.s32 4294967295, %s1187_s18   ;;  %p951_p0 = scmp.ge.s32.totalorder %s1187_s18, 1  ;;  %s1187_s18 = sphi %s1219_s18, %s15_s18  }
   0x2   : > { %p200_p1 = scmp.lt.s32.totalorder %s1187_s18, 3 }
   0x4   : > { %p201_p2 = pnand %p951_p0, %p200_p1 }
   0x5   : > { %s952_s22 = sshll.u32 (!%p201_p2), %s947_s19, 4 }
   0x6   : > { %204 = sbr.rel (%p201_p2) target bundleno = 297 (0x129), region = 40  ;;  %p235_p3 = scmp.lt.s32.totalorder (!%p201_p2), %s952_s22, 31 }
   0xb   : > { %v1131_v0 = vld [vmem:[%s1450_s1 + $0x78] sm:$0xff]   ;;  %v1133_v2 = vld [vmem:[%s1450_s1 + $0x70] sm:$0xff]   ;;  %v1135_v4 = vld [vmem:[%s1450_s1 + $0x68] sm:$0xff]   ;;  %s1456_s22 = smov (!%p235_p3, %s952_s22), 31  ;;  %vm550_vm0 = vcmask 261120  }
   0xc   : > { %v1132_v1 = vld [vmem:[%s1450_s1 + $0x38] sm:$0xff]   ;;  %1012 = vmatprep.subr.bf16.mxu0 %v1131_v0  ;;  %1106 = vmatprep.subr.bf16.mxu1 %v1131_v0  ;;  %v1134_v3 = vld [vmem:[%s1450_s1 + $0x30] sm:$0xff]   ;;  %v1136_v5 = vld [vmem:[%s1450_s1 + $0x28] sm:$0xff]   ;;  %s1122_s10 = smul.u32 12, %s1456_s22  ;;  %s955_s13 = sshll.u32 %s1456_s22, 3 }
   0xd   : > { %1013 = vmatpush3.bf16.msra.mxu0 %v1132_v1  ;;  %1114 = vmatpush3.bf16.msra.mxu1 %v1132_v1  ;;  %v1137_v6 = vld [vmem:[%s1450_s1 + $0x60] sm:$0xff]   ;;  %v1139_v8 = vld [vmem:[%s1450_s1 + $0x58] sm:$0xff]   ;;  %v1141_v10 = vld [vmem:[%s1450_s1 + $0x50] sm:$0xff]   ;;  %s1346_s19 = scalar_lea.vmem %s1453_s4, %s955_s13  ;;  %s1363_s24 = scalar_lea.vmem %s1454_s5, %s955_s13 }
   0xe   : > { %1014 = vmatprep.subr.bf16.mxu0 %v1133_v2  ;;  %1107 = vmatprep.subr.bf16.mxu1 %v1133_v2  ;;  %v1138_v7 = vld [vmem:[%s1450_s1 + $0x20] sm:$0xff]   ;;  %s1260_s17 = scalar_lea.vmem %s1449_s0, %s1122_s10  ;;  %v1140_v9 = vld [vmem:[%s1450_s1 + $0x18] sm:$0xff]   ;;  %v1142_v13 = vld [vmem:[%s1450_s1 + $0x10] sm:$0xff]  }
   0xf   : > { %v1149_v11 = vld [vmem:[%s1260_s17 + $0x4] ss:$12 sps:$4 sm:$0xff]   ;;  %v1152_v12 = vld [vmem:[%s1260_s17 + $0x94] ss:$12 sps:$4 sm:$0xff]   ;;  %v1143_v14 = vld [vmem:[%s1450_s1 + $0x48] sm:$0xff]  }
  0x10   : > { %607 = vmatprep.mubr.bf16.mxu0 %v1149_v11  ;;  %655 = vmatprep.mubr.bf16.mxu1 %v1152_v12  ;;  %v1144_v15 = vld [vmem:[%s1450_s1 + $0x8] sm:$0xff]   ;;  %v1145_v16 = vld [vmem:[%s1450_s1 + $0x40] sm:$0xff]   ;;  %v1150_v20 = vld [vmem:[%s1260_s17 + $0x90] ss:$12 sps:$4 sm:$0xff]  }
  0x11   : > { %1015 = vmatpush3.bf16.msra.mxu0 %v1134_v3  ;;  %1115 = vmatpush3.bf16.msra.mxu1 %v1134_v3  ;;  %v1146_v17 = vld [vmem:[%s1450_s1] sm:$0xff]   ;;  %v1153_v19 = vld [vmem:[%s1450_s1 + $0x88] sm:$0xff]   ;;  %v1164_v28 = vld [vmem:[%s1260_s17 + $0x30] ss:$12 sps:$4 sm:$0xff]  }
  0x12   : > { %1016 = vmatprep.subr.bf16.mxu0 %v1135_v4  ;;  %1108 = vmatprep.subr.bf16.mxu1 %v1135_v4  ;;  %v1147_v18 = vld [vmem:[%s1260_s17] ss:$12 sps:$4 sm:$0xff]   ;;  %v1154_v21 = vld [vmem:[%s1260_s17 + $0x1c] ss:$12 sps:$4 sm:$0xff]   ;;  %v1158_v24 = vld [vmem:[%s1260_s17 + $0x18] ss:$12 sps:$4 sm:$0xff]  }
  0x13   : > { %v1156_v22 = vld [vmem:[%s1260_s17 + $0xac] ss:$12 sps:$4 sm:$0xff]   ;;  %v1160_v23 = vld [vmem:[%s1450_s1 + $0x80] sm:$0xff]   ;;  %v1159_v25 = vld [vmem:[%s1260_s17 + $0xa8] ss:$12 sps:$4 sm:$0xff]  }
  0x14   : > { %v1161_v26 = vld [vmem:[%s1260_s17 + $0x34] ss:$12 sps:$4 sm:$0xff]   ;;  %v1166_v30 = vld [vmem:[%s1260_s17 + $0x4c] ss:$12 sps:$4 sm:$0xff]   ;;  %v1170_v33 = vld [vmem:[%s1260_s17 + $0x50] ss:$12 sps:$4 sm:$0xff]  }
  0x15   : > { %1017 = vmatpush3.bf16.msra.mxu0 %v1136_v5  ;;  %1116 = vmatpush3.bf16.msra.mxu1 %v1136_v5  ;;  %v1163_v27 = vld [vmem:[%s1260_s17 + $0x8] ss:$12 sps:$4 sm:$0xff]   ;;  %v1165_v29 = vld [vmem:[%s1260_s17 + $0x20] ss:$12 sps:$4 sm:$0xff]   ;;  %v1168_v31 = vld [vmem:[%s1260_s17 + $0x38] ss:$12 sps:$4 sm:$0xff]  }
  0x16   : > { %1018 = vmatprep.subr.bf16.mxu0 %v1137_v6  ;;  %1109 = vmatprep.subr.bf16.mxu1 %v1137_v6  ;;  %v1169_v32 = vld [vmem:[%s1260_s17 + $0x48] ss:$12 sps:$4 sm:$0xff]   ;;  %v1171_v34 = vld [vmem:[%s1260_s17 + $0x64] ss:$12 sps:$4 sm:$0xff]   ;;  %v1174_v36 = vld [vmem:[%s1260_s17 + $0x60] ss:$12 sps:$4 sm:$0xff]  }
  0x17   : > { %v1173_v35 = vld [vmem:[%s1260_s17 + $0x68] ss:$12 sps:$4 sm:$0xff]   ;;  %v1175_v37 = vld [vmem:[%s1260_s17 + $0x80] ss:$12 sps:$4 sm:$0xff]   ;;  %v1178_v39 = vld [vmem:[%s1260_s17 + $0x98] ss:$12 sps:$4 sm:$0xff]  }
  0x18   : > { %v1176_v38 = vld [vmem:[%s1260_s17 + $0x7c] ss:$12 sps:$4 sm:$0xff]   ;;  %v1179_v40 = vld [vmem:[%s1260_s17 + $0x78] ss:$12 sps:$4 sm:$0xff]   ;;  %v1341_v61 = vld [vmem:[%s1451_s2] ss:$0 sm:$0xff] }
  0x19   : > { %1019 = vmatpush3.bf16.msra.mxu0 %v1138_v7  ;;  %1117 = vmatpush3.bf16.msra.mxu1 %v1138_v7  ;;  %v1180_v41 = vld [vmem:[%s1260_s17 + $0xb0] ss:$12 sps:$4 sm:$0xff]   ;;  %v1351_v0 = vld [vmem:[%s1452_s3] ss:$0 sm:$0xff] }
  0x1a   : > { %1020 = vmatprep.subr.bf16.mxu0 %v1139_v8  ;;  %1110 = vmatprep.subr.bf16.mxu1 %v1139_v8  ;;  %v817_v6 = vld [vmem:[%s1346_s19 + $0x10] sm:$0xff] }
  0x1d   : > { %1021 = vmatpush3.bf16.msra.mxu0 %v1140_v9  ;;  %1118 = vmatpush3.bf16.msra.mxu1 %v1140_v9 }
  0x1e   : > { %1022 = vmatprep.subr.bf16.mxu0 %v1141_v10  ;;  %1111 = vmatprep.subr.bf16.mxu1 %v1141_v10 }
  0x21   : > { %1023 = vmatpush3.bf16.msra.mxu0 %v1142_v13  ;;  %1119 = vmatpush3.bf16.msra.mxu1 %v1142_v13  ;;  %v815_v13 = vld [vmem:[%s1346_s19] sm:$0xff] }
  0x22   : > { %1024 = vmatprep.subr.bf16.mxu0 %v1143_v14  ;;  %1112 = vmatprep.subr.bf16.mxu1 %v1143_v14 }
  0x25   : > { %1025 = vmatpush3.bf16.msra.mxu0 %v1144_v15  ;;  %1120 = vmatpush3.bf16.msra.mxu1 %v1144_v15 }
  0x26   : > { %1026 = vmatprep.subr.bf16.mxu0 %v1145_v16  ;;  %1113 = vmatprep.subr.bf16.mxu1 %v1145_v16 }
  0x29   : > { %1027 = vmatpush3.bf16.msra.mxu0 %v1146_v17  ;;  %1121 = vmatpush3.bf16.msra.mxu1 %v1146_v17 }
  0x2a   : > { %1086 = vmatprep.subr.bf16.mxu1 %v1153_v19 }
  0x2c   : > { %608 = vmatmul.mubr.bf16.vlgmr.msra.gmra.mxu0 %v1147_v18  ;;  %656 = vmatmul.mubr.bf16.vlgmr.msra.gmra.mxu1 %v1150_v20 }
  0x2d   : > { %1087 = vmatpush3.bf16.msra.mxu1 %v1153_v19  ;;  %615 = vmatprep.mubr.bf16.mxu0 %v1154_v21  ;;  %v818_v19 = vld [vmem:[%s1346_s19 + $0x18] sm:$0xff] }
  0x2e   : > { %663 = vmatprep.mubr.bf16.mxu1 %v1156_v22  ;;  %1088 = vmatprep.subr.bf16.mxu1 %v1160_v23 }
  0x31   : > { %1089 = vmatpush3.bf16.msra.mxu1 %v1160_v23 }
  0x34   : > { %616 = vmatmul.mubr.bf16.gmra.mxu0 %v1158_v24  ;;  %664 = vmatmul.mubr.bf16.gmra.mxu1 %v1159_v25 }
  0x35   : > { %623 = vmatprep.mubr.bf16.mxu0 %v1161_v26  ;;  %1090 = vmatprep.mubr.msk.bf16.mxu1 %vm550_vm0, %v1163_v27 }
  0x3c   : > { %624 = vmatmul.mubr.bf16.gmra.mxu0 %v1164_v28  ;;  %1091 = vmatmul.mubr.msk.bf16.vlgmr.msra.gmra.mxu1 %vm550_vm0, %v1165_v29 }
  0x3d   : > { %631 = vmatprep.mubr.bf16.mxu0 %v1166_v30  ;;  %1094 = vmatprep.mubr.msk.bf16.mxu1 %vm550_vm0, %v1168_v31 }
  0x44   : > { %632 = vmatmul.mubr.bf16.gmra.mxu0 %v1169_v32  ;;  %1095 = vmatmul.mubr.msk.bf16.gmra.mxu1 %vm550_vm0, %v1170_v33  ;;  %v816_v32 = vld [vmem:[%s1346_s19 + $0x8] sm:$0xff] }
  0x45   : > { %639 = vmatprep.mubr.bf16.mxu0 %v1171_v34  ;;  %1098 = vmatprep.mubr.msk.bf16.mxu1 %vm550_vm0, %v1173_v35 }
  0x4c   : > { %640 = vmatmul.mubr.bf16.gmra.mxu0 %v1174_v36  ;;  %1099 = vmatmul.mubr.msk.bf16.gmra.mxu1 %vm550_vm0, %v1175_v37 }
  0x4d   : > { %647 = vmatprep.mubr.bf16.mxu0 %v1176_v38  ;;  %1102 = vmatprep.mubr.msk.bf16.mxu1 %vm550_vm0, %v1178_v39 }
  0x54   : > { %648 = vmatmul.mubr.bf16.gmra.mxu0 %v1179_v40  ;;  %1103 = vmatmul.mubr.msk.bf16.gmra.mxu1 %vm550_vm0, %v1180_v41 }
  0xec   : > { %v1028_v42 = vpop.f32.mrf.mxu0  ;;  %v1321_v43 = vpop.f32.mrf.mxu1 }
  0xee   : > { %v1029_v44 = vpop.f32.mrf.mxu0  ;;  %v1323_v45 = vpop.f32.mrf.mxu1 }
  0xef   : > { %v1030_v62 = vadd.f32 %v1029_v44, %v1028_v42  ;;  %v819_v44 = vld [vmem:[%s1346_s19 + $0x20] sm:$0xff] }
  0xf0   : > { %v1031_v46 = vpop.f32.mrf.mxu0  ;;  %v1325_v47 = vpop.f32.mrf.mxu1 }
  0xf2   : > { %v1032_v48 = vpop.f32.mrf.mxu0  ;;  %v1327_v49 = vpop.f32.mrf.mxu1 }
  0xf3   : > { %v1033_v12 = vadd.f32 %v1032_v48, %v1031_v46 }
  0xf4   : > { %v1034_v50 = vpop.f32.mrf.mxu0  ;;  %v1329_v51 = vpop.f32.mrf.mxu1 }
  0xf6   : > { %v1035_v52 = vpop.f32.mrf.mxu0  ;;  %v1331_v53 = vpop.f32.mrf.mxu1 }
  0xf7   : > { %v1036_v58 = vadd.f32 %v1035_v52, %v1034_v50 }
  0xf8   : > { %v1037_v54 = vpop.f32.mrf.mxu0  ;;  %v1333_v55 = vpop.f32.mrf.mxu1 }
  0xfa   : > { %v1038_v56 = vpop.f32.mrf.mxu0  ;;  %v1335_v57 = vpop.f32.mrf.mxu1 }
  0xfb   : > { %v1039_v3 = vadd.f32 %v1038_v56, %v1037_v54 }
  0xfc   : > { %v1040_v59 = vpop.f32.mrf.mxu0  ;;  %v1092_v60 = vpop.f32.mrf.mxu1 }
  0xfd   : > { %v715_v63 = vadd.f32 %v1092_v60, %v1036_v58 }
  0xfe   : > { %v1041_v1 = vpop.f32.mrf.mxu0  ;;  %v706_v2 = vpop.f32.mrf.mxu1 }
  0xff   : > { %v778_v4 = vmul.f32 %v1341_v61, %v715_v63  ;;  %v707_v5 = vadd.f32 %v1030_v62, %v706_v2  ;;  %v1042_v24 = vadd.f32 %v1041_v1, %v1040_v59  ;;  %v821_v59 = vld [vmem:[%s1346_s19 + $0x30] sm:$0xff] }
 0x100   : > { %v1043_v7 = vpop.f32.mrf.mxu0  ;;  %v1093_v8 = vpop.f32.mrf.mxu1 }
 0x101   : > { %v801_v9 = vadd.f32 %v1351_v0, %v778_v4  ;;  %v776_v10 = vmul.f32 %v1341_v61, %v707_v5  ;;  %v718_v11 = vadd.f32 %v1093_v8, %v1039_v3  ;;  %v820_v4 = vld [vmem:[%s1346_s19 + $0x28] sm:$0xff] }
 0x102   : > { %v1044_v14 = vpop.f32.mrf.mxu0  ;;  %v709_v15 = vpop.f32.mrf.mxu1 }
 0x103   : > { %v833_v16 = vadd.f32 %v817_v6, %v801_v9  ;;  %v799_v17 = vadd.f32 %v1351_v0, %v776_v10  ;;  %v779_v18 = vmul.f32 %v1341_v61, %v718_v11  ;;  %v710_v20 = vadd.f32 %v1033_v12, %v709_v15  ;;  %v822_v11 = vld [vmem:[%s1346_s19 + $0x38] sm:$0xff] }
 0x104   : > { %v1046_v21 = vpop.f32.mrf.mxu0  ;;  %v1096_v22 = vpop.f32.mrf.mxu1  ;;  %v1045_v39 = vadd.f32 %v1044_v14, %v1043_v7 }
 0x105   : > { %v849_v23 = vmax.f32 %v833_v16, 0.0  ;;  %v831_v25 = vadd.f32 %v815_v13, %v799_v17  ;;  %v802_v26 = vadd.f32 %v1351_v0, %v779_v18  ;;  %v777_v27 = vmul.f32 %v1341_v61, %v710_v20 }
 0x106   : > { %v1047_v28 = vpop.f32.mrf.mxu0  ;;  %v722_v29 = vpop.f32.mrf.mxu1 }
 0x107   : > { %865 = vst.msk [vmem:[%s1363_s24 + $0x10] sm:$0xff] %vm550_vm0, %v849_v23  ;;  %v847_v30 = vmax.f32 %v831_v25, 0.0  ;;  %v834_v31 = vadd.f32 %v818_v19, %v802_v26  ;;  %v1048_v33 = vadd.f32 %v1047_v28, %v1046_v21  ;;  %v723_v34 = vadd.f32 %v1042_v24, %v722_v29 }
 0x108   : > { %v800_v35 = vadd.f32 %v1351_v0, %v777_v27  ;;  %v1049_v36 = vpop.f32.mrf.mxu0  ;;  %v1097_v37 = vpop.f32.mrf.mxu1  ;;  %v1072_v21 = vadd.f32 %v1331_v53, %v1329_v51  ;;  %v1066_v28 = vadd.f32 %v1323_v45, %v1321_v43 }
 0x109   : > { %863 = vst.msk [vmem:[%s1363_s24] sm:$0xff] %vm550_vm0, %v847_v30  ;;  %v850_v38 = vmax.f32 %v834_v31, 0.0  ;;  %v731_v40 = vadd.f32 %v1096_v22, %v1048_v33  ;;  %v780_v41 = vmul.f32 %v1341_v61, %v723_v34  ;;  %v823_v30 = vld [vmem:[%s1346_s19 + $0x40] sm:$0xff] }
 0x10a   : > { %v832_v42 = vadd.f32 %v816_v32, %v800_v35  ;;  %v1050_v46 = vpop.f32.mrf.mxu0  ;;  %v725_v48 = vpop.f32.mrf.mxu1 }
 0x10b   : > { %866 = vst.msk [vmem:[%s1363_s24 + $0x18] sm:$0xff] %vm550_vm0, %v850_v38  ;;  %v782_v50 = vmul.f32 %v1341_v61, %v731_v40  ;;  %v803_v52 = vadd.f32 %v1351_v0, %v780_v41  ;;  %v1051_v54 = vadd.f32 %v1050_v46, %v1049_v36  ;;  %v726_v56 = vadd.f32 %v1045_v39, %v725_v48  ;;  %v824_v38 = vld [vmem:[%s1346_s19 + $0x48] sm:$0xff]  ;;  %v829_v39 = vld [vmem:[%s1346_s19 + $0x70] sm:$0xff] }
 0x10c   : > { %v848_v58 = vmax.f32 %v832_v42, 0.0  ;;  %v1052_v60 = vpop.f32.mrf.mxu0  ;;  %v1100_v62 = vpop.f32.mrf.mxu1  ;;  %v1075_v36 = vadd.f32 %v1335_v57, %v1333_v55 }
 0x10d   : > { %v805_v63 = vadd.f32 %v1351_v0, %v782_v50  ;;  %v835_v1 = vadd.f32 %v819_v44, %v803_v52  ;;  %v734_v2 = vadd.f32 %v1097_v37, %v1051_v54  ;;  %v781_v3 = vmul.f32 %v1341_v61, %v726_v56  ;;  %v827_v54 = vld [vmem:[%s1346_s19 + $0x60] sm:$0xff] }
 0x10e   : > { %864 = vst.msk [vmem:[%s1363_s24 + $0x8] sm:$0xff] %vm550_vm0, %v848_v58  ;;  %v1053_v5 = vpop.f32.mrf.mxu0  ;;  %v738_v6 = vpop.f32.mrf.mxu1  ;;  %v1069_v50 = vadd.f32 %v1327_v49, %v1325_v47 }
 0x10f   : > { %v837_v7 = vadd.f32 %v821_v59, %v805_v63  ;;  %v851_v8 = vmax.f32 %v835_v1, 0.0  ;;  %v783_v9 = vmul.f32 %v1341_v61, %v734_v2  ;;  %v804_v10 = vadd.f32 %v1351_v0, %v781_v3 }
 0x110   : > { %v1054_v12 = vadd.f32 %v1053_v5, %v1052_v60  ;;  %v1055_v13 = vpop.f32.mrf.mxu0  ;;  %v1101_v14 = vpop.f32.mrf.mxu1 }
 0x111   : > { %v853_v15 = vmax.f32 %v837_v7, 0.0  ;;  %867 = vst.msk [vmem:[%s1363_s24 + $0x20] sm:$0xff] %vm550_vm0, %v851_v8  ;;  %v806_v16 = vadd.f32 %v1351_v0, %v783_v9  ;;  %v836_v17 = vadd.f32 %v820_v4, %v804_v10 }
 0x112   : > { %v739_v18 = vadd.f32 %v1054_v12, %v738_v6  ;;  %v1056_v19 = vpop.f32.mrf.mxu0  ;;  %v741_v20 = vpop.f32.mrf.mxu1  ;;  %v830_v6 = vld [vmem:[%s1346_s19 + $0x78] sm:$0xff]  ;;  %v828_v12 = vld [vmem:[%s1346_s19 + $0x68] sm:$0xff] }
 0x113   : > { %869 = vst.msk [vmem:[%s1363_s24 + $0x30] sm:$0xff] %vm550_vm0, %v853_v15  ;;  %v838_v22 = vadd.f32 %v822_v11, %v806_v16  ;;  %v852_v23 = vmax.f32 %v836_v17, 0.0  ;;  %v1057_v24 = vadd.f32 %v1056_v19, %v1055_v13 }
 0x114   : > { %v784_v25 = vmul.f32 %v1341_v61, %v739_v18  ;;  %v1058_v26 = vpop.f32.mrf.mxu0  ;;  %v1104_v27 = vpop.f32.mrf.mxu1 }
 0x115   : > { %v854_v29 = vmax.f32 %v838_v22, 0.0  ;;  %868 = vst.msk [vmem:[%s1363_s24 + $0x28] sm:$0xff] %vm550_vm0, %v852_v23  ;;  %v742_v51 = vadd.f32 %v1057_v24, %v741_v20  ;;  %v763_v53 = vadd.f32 %v1104_v27, %v1072_v21 }
 0x116   : > { %v807_v31 = vadd.f32 %v1351_v0, %v784_v25  ;;  %v1059_v32 = vpop.f32.mrf.mxu0  ;;  %v754_v33 = vpop.f32.mrf.mxu1 }
 0x117   : > { %870 = vst.msk [vmem:[%s1363_s24 + $0x38] sm:$0xff] %vm550_vm0, %v854_v29  ;;  %v785_v34 = vmul.f32 %v1341_v61, %v742_v51  ;;  %v790_v35 = vmul.f32 %v1341_v61, %v763_v53  ;;  %v1060_v43 = vadd.f32 %v1059_v32, %v1058_v26  ;;  %v755_v45 = vadd.f32 %v1066_v28, %v754_v33 }
 0x118   : > { %v839_v37 = vadd.f32 %v823_v30, %v807_v31  ;;  %v1061_v40 = vpop.f32.mrf.mxu0  ;;  %v1105_v41 = vpop.f32.mrf.mxu1 }
 0x119   : > { %v808_v42 = vadd.f32 %v1351_v0, %v785_v34  ;;  %v813_v44 = vadd.f32 %v1351_v0, %v790_v35  ;;  %v747_v46 = vadd.f32 %v1100_v62, %v1060_v43  ;;  %v788_v48 = vmul.f32 %v1341_v61, %v755_v45  ;;  %v825_v62 = vld [vmem:[%s1346_s19 + $0x50] sm:$0xff] }
 0x11a   : > { %v855_v52 = vmax.f32 %v839_v37, 0.0  ;;  %v766_v55 = vadd.f32 %v1105_v41, %v1075_v36  ;;  %v1062_v57 = vpop.f32.mrf.mxu0  ;;  %v757_v56 = vpop.f32.mrf.mxu1 }
 0x11b   : > { %v840_v58 = vadd.f32 %v824_v38, %v808_v42  ;;  %v845_v59 = vadd.f32 %v829_v39, %v813_v44  ;;  %v786_v60 = vmul.f32 %v1341_v61, %v747_v46  ;;  %v811_v63 = vadd.f32 %v1351_v0, %v788_v48 }
 0x11c   : > { %871 = vst.msk [vmem:[%s1363_s24 + $0x40] sm:$0xff] %vm550_vm0, %v855_v52  ;;  %v791_v47 = vmul.f32 %v1341_v61, %v766_v55  ;;  %v1063_v49 = vadd.f32 %v1062_v57, %v1061_v40  ;;  %v758_v1 = vadd.f32 %v1069_v50, %v757_v56 }
 0x11d   : > { %v856_v2 = vmax.f32 %v840_v58, 0.0  ;;  %v861_v3 = vmax.f32 %v845_v59, 0.0  ;;  %v809_v4 = vadd.f32 %v1351_v0, %v786_v60  ;;  %v843_v5 = vadd.f32 %v827_v54, %v811_v63 }
 0x11e   : > { %v814_v7 = vadd.f32 %v1351_v0, %v791_v47  ;;  %v750_v8 = vadd.f32 %v1101_v14, %v1063_v49  ;;  %v789_v9 = vmul.f32 %v1341_v61, %v758_v1  ;;  %v826_v14 = vld [vmem:[%s1346_s19 + $0x58] sm:$0xff] }
 0x11f   : > { %872 = vst.msk [vmem:[%s1363_s24 + $0x48] sm:$0xff] %vm550_vm0, %v856_v2  ;;  %877 = vst.msk [vmem:[%s1363_s24 + $0x70] sm:$0xff] %vm550_vm0, %v861_v3  ;;  %v841_v10 = vadd.f32 %v825_v62, %v809_v4  ;;  %v859_v11 = vmax.f32 %v843_v5, 0.0 }
 0x120   : > { %v846_v13 = vadd.f32 %v830_v6, %v814_v7  ;;  %v787_v15 = vmul.f32 %v1341_v61, %v750_v8  ;;  %v812_v16 = vadd.f32 %v1351_v0, %v789_v9 }
 0x121   : > { %v857_v17 = vmax.f32 %v841_v10, 0.0  ;;  %875 = vst.msk [vmem:[%s1363_s24 + $0x60] sm:$0xff] %vm550_vm0, %v859_v11 }
 0x122   : > { %v862_v18 = vmax.f32 %v846_v13, 0.0  ;;  %v810_v19 = vadd.f32 %v1351_v0, %v787_v15  ;;  %v844_v20 = vadd.f32 %v828_v12, %v812_v16 }
 0x123   : > { %873 = vst.msk [vmem:[%s1363_s24 + $0x50] sm:$0xff] %vm550_vm0, %v857_v17 }
 0x124   : > { %878 = vst.msk [vmem:[%s1363_s24 + $0x78] sm:$0xff] %vm550_vm0, %v862_v18  ;;  %v842_v21 = vadd.f32 %v826_v14, %v810_v19  ;;  %v860_v22 = vmax.f32 %v844_v20, 0.0 }
 0x126   : > { %v858_v23 = vmax.f32 %v842_v21, 0.0  ;;  %876 = vst.msk [vmem:[%s1363_s24 + $0x68] sm:$0xff] %vm550_vm0, %v860_v22 }
 0x128   : > { %874 = vst.msk [vmem:[%s1363_s24 + $0x58] sm:$0xff] %vm550_vm0, %v858_v23 }
 0x129 PF: > { %s15_s18 = sadd.s32 1, %s1187_s18  }
 0x12a   : > { %p12_p4 = scmp.ge.s32.totalorder %s15_s18, 4  }
 0x12c   :  { %14 = sbr.rel (!%p12_p4) target bundleno = 1 (0x1), region = 73 }

</bundles_post_ra>
